<compile_context>
chip_gen: v7x
topology: tpu7x:2x2x1
jax: 0.10.0
libtpu: 0.0.40
codegen_flags: <defaults>
</compile_context>

<pallas_src>
import functools

import jax
import jax.numpy as jnp
from jax.experimental import pallas as pl
from jax.experimental.pallas import tpu as pltpu

K = 7
P = (K - 1) // 2


def _att_kernel(w_ref, s_ref, x_ref, att_ref, mxp_ref, smp_ref, *, H, W):
    """Pass 1: channel max/sum pooling (accumulated over C tiles), folded 7x7 conv,
    folded BN + sigmoid -> att (H, W) per batch element.

    w_ref: SMEM (2*K*K,) f32 folded taps [max-map taps | (sum-map) taps (already * 1/C)]
    s_ref: SMEM (1,)   f32 folded shift (conv bias + eval-mode BN)
    x_ref: VMEM (1, Ct, H, W) input tile
    att_ref: VMEM (1, H, W) f32 output attention map
    mxp_ref/smp_ref: VMEM (Hp, Wp) f32 zero-padded running max / running sum maps
    """
    c = pl.program_id(1)
    nc = pl.num_programs(1)

    x = x_ref[0].astype(jnp.float32)          # (Ct, H, W)
    pmax = jnp.max(x, axis=0)                 # (H, W)
    psum = jnp.sum(x, axis=0)                 # (H, W)

    @pl.when(c == 0)
    def _init():
        # Zero border emulates nn.Conv2d(padding=3) zero padding of the pooled maps.
        mxp_ref[...] = jnp.zeros_like(mxp_ref)
        smp_ref[...] = jnp.zeros_like(smp_ref)
        mxp_ref[P:P + H, P:P + W] = pmax
        smp_ref[P:P + H, P:P + W] = psum

    @pl.when(c > 0)
    def _accum():
        mxp_ref[P:P + H, P:P + W] = jnp.maximum(mxp_ref[P:P + H, P:P + W], pmax)
        smp_ref[P:P + H, P:P + W] = smp_ref[P:P + H, P:P + W] + psum

    @pl.when(c == nc - 1)
    def _finalize():
        mxp = mxp_ref[...]                    # (Hp, Wp)
        smp = smp_ref[...]
        acc = jnp.zeros((H, W), jnp.float32)
        # Hoist the lane (dx) realignment out of the tap loop: 7 lane slices per pooled
        # map; the inner loop only slices along the sublane (dy) axis.
        for dx in range(K):
            mx_dx = mxp[:, dx:dx + W]         # (Hp, W)
            sm_dx = smp[:, dx:dx + W]
            for dy in range(K):
                acc = acc + w_ref[dy * K + dx] * mx_dx[dy:dy + H, :]
                acc = acc + w_ref[K * K + dy * K + dx] * sm_dx[dy:dy + H, :]
        # 1/C mean-normalisation, conv bias and eval-mode BN are folded into w/shift.
        att_ref[0] = jax.nn.sigmoid(acc + s_ref[0])


def _apply_kernel(x_ref, a_ref, o_ref):
    """Pass 2: out = x * att, broadcast over the channel tile."""
    x = x_ref[0].astype(jnp.float32)                     # (Ct, H, W)
    o_ref[0] = (x * a_ref[...]).astype(o_ref.dtype)      # a_ref: (1, H, W) broadcasts over C


def _largest_divisor_at_most(n, cap):
    cap = max(1, min(n, cap))
    for d in range(cap, 0, -1):
        if n % d == 0:
            return d
    return 1


def _vmem_limit(block_bytes):
    # Generous headroom over the double-buffered working set, clamped below v7x's
    # 64 MiB physical VMEM per TensorCore.
    return int(min(48 * 1024 * 1024, max(16 * 1024 * 1024, 3 * block_bytes)))


def posatt3c_pallas(x, conv_w, conv_b, bn_gamma, bn_beta, bn_mean, bn_var, eps=1e-5):
    """x: (B, C, H, W) NCHW.  conv_w: (1, 2, 7, 7).  conv_b / bn_*: (1,)."""
    B, C, H, W = x.shape
    Hp, Wp = H + 2 * P, W + 2 * P
    f32 = jnp.float32
    itemsize = x.dtype.itemsize

    # Fold eval-mode BN, conv bias and the 1/C mean normalisation into weights / shift.
    s = (bn_gamma / jnp.sqrt(bn_var + eps)).astype(f32)              # (1,)
    shift = (conv_b * s + bn_beta - bn_mean * s).astype(f32)         # (1,)
    w_max = conv_w[0, 0].astype(f32) * s                             # (7,7) * BN scale
    w_mean = conv_w[0, 1].astype(f32) * (s / C)                      # (7,7) * BN scale * 1/C
    w_flat = jnp.concatenate([w_max.reshape(-1), w_mean.reshape(-1)])  # (98,)

    # ---------------- pass 1: attention map (B, H, W) ----------------
    per_c_bytes = H * W * itemsize
    ct1 = _largest_divisor_at_most(C, max(1, (8 * 1024 * 1024) // max(per_c_bytes, 1)))
    nct1 = C // ct1
    p1_block_bytes = 2 * ct1 * per_c_bytes + 2 * H * W * 4 + 2 * Hp * Wp * 4

    att = pl.pallas_call(
        functools.partial(_att_kernel, H=H, W=W),
        out_shape=jax.ShapeDtypeStruct((B, H, W), f32),
        grid_spec=pltpu.PrefetchScalarGridSpec(
            num_scalar_prefetch=2,
            grid=(B, nct1),
            in_specs=[
                pl.BlockSpec((1, ct1, H, W), lambda b, c, w, t: (b, c, 0, 0)),
            ],
            out_specs=pl.BlockSpec((1, H, W), lambda b, c, w, t: (b, 0, 0)),
            scratch_shapes=[
                pltpu.VMEM((Hp, Wp), f32),
                pltpu.VMEM((Hp, Wp), f32),
            ],
        ),
        compiler_params=pltpu.CompilerParams(
            dimension_semantics=("parallel", "arbitrary"),
            vmem_limit_bytes=_vmem_limit(p1_block_bytes),
        ),
    )(w_flat, shift, x)

    # ---------------- pass 2: out = x * att ----------------
    ct2 = _largest_divisor_at_most(C, max(1, (4 * 1024 * 1024) // max(per_c_bytes, 1)))
    nct2 = C // ct2
    p2_block_bytes = 4 * ct2 * per_c_bytes + 2 * H * W * 4

    out = pl.pallas_call(
        _apply_kernel,
        out_shape=jax.ShapeDtypeStruct((B, C, H, W), x.dtype),
        grid=(B, nct2),
        in_specs=[
            pl.BlockSpec((1, ct2, H, W), lambda b, c: (b, c, 0, 0)),
            pl.BlockSpec((1, H, W), lambda b, c: (b, 0, 0)),
        ],
        out_specs=pl.BlockSpec((1, ct2, H, W), lambda b, c: (b, c, 0, 0)),
        compiler_params=pltpu.CompilerParams(
            dimension_semantics=("parallel", "parallel"),
            vmem_limit_bytes=_vmem_limit(p2_block_bytes),
        ),
    )(x, att)
    return out


def _reference(x, conv_w, conv_b, bn_gamma, bn_beta, bn_mean, bn_var, eps=1e-5):
    # Pure-JAX reference mirroring the PyTorch module (eval-mode BN).
    mx = jnp.max(x, axis=1, keepdims=True)
    mn = jnp.mean(x, axis=1, keepdims=True)
    x1 = jnp.concatenate([mx, mn], axis=1)
    y = jax.lax.conv_general_dilated(
        x1, conv_w, window_strides=(1, 1), padding=((3, 3), (3, 3)),
        dimension_numbers=("NCHW", "OIHW", "NCHW"),
    ) + conv_b.reshape(1, -1, 1, 1)
    y = (y - bn_mean.reshape(1, -1, 1, 1)) / jnp.sqrt(bn_var.reshape(1, -1, 1, 1) + eps)
    y = y * bn_gamma.reshape(1, -1, 1, 1) + bn_beta.reshape(1, -1, 1, 1)
    att = jax.nn.sigmoid(y)
    return x * att


if __name__ == "__main__":
    key = jax.random.PRNGKey(0)
    k_x, k_w, k_b, k_g, k_be = jax.random.split(key, 5)

    B, C, H, W = 2, 4, 16, 16
    x = jax.random.normal(k_x, (B, C, H, W), dtype=jnp.float32)

    # Deterministic synthetic parameters (no checkpoint).
    conv_w = jax.random.normal(k_w, (1, 2, 7, 7), dtype=jnp.float32) * 0.1
    conv_b = jax.random.normal(k_b, (1,), dtype=jnp.float32) * 0.1
    bn_gamma = 1.0 + 0.1 * jax.random.normal(k_g, (1,), dtype=jnp.float32)
    bn_beta = 0.1 * jax.random.normal(k_be, (1,), dtype=jnp.float32)
    bn_mean = jnp.zeros((1,), jnp.float32)   # BatchNorm2d running stats (eval mode)
    bn_var = jnp.ones((1,), jnp.float32)
    # TODO(synk): training-mode BatchNorm (batch statistics) not implemented; eval-mode used.

    out = posatt3c_pallas(x, conv_w, conv_b, bn_gamma, bn_beta, bn_mean, bn_var)
    out = jax.block_until_ready(out)

    ref = _reference(x, conv_w, conv_b, bn_gamma, bn_beta, bn_mean, bn_var)
    assert out.shape == (B, C, H, W)
    assert jnp.allclose(out, ref, atol=1e-5, rtol=1e-5), float(jnp.max(jnp.abs(out - ref)))

    print("KERNEL_OK")
</pallas_src>

<mosaic_0001>
module attributes {stable_mosaic.version = 11 : i64} {
  func.func @_att_kernel(%arg0: i32, %arg1: i32, %arg2: memref<98xf32, #tpu.memory_space<smem>>, %arg3: memref<1xf32, #tpu.memory_space<smem>>, %arg4: memref<1x4x16x16xf32, #tpu.memory_space<vmem>>, %arg5: memref<1x16x16xf32, #tpu.memory_space<vmem>>, %arg6: memref<22x22xf32, #tpu.memory_space<vmem>>, %arg7: memref<22x22xf32, #tpu.memory_space<vmem>>) attributes {dimension_semantics = [#tpu.dimension_semantics<parallel>, #tpu.dimension_semantics<arbitrary>], iteration_bounds = array<i64: 2, 1>, scalar_prefetch = 2 : i64, scratch_operands = 2 : i64, tpu.core_type = #tpu.core_type<tc>, window_params = [{transform_indices = @transform_0, window_bounds = array<i64: 1, 4, 16, 16>}, {transform_indices = @transform_1, window_bounds = array<i64: 1, 16, 16>}]} {
    %c0 = arith.constant 0 : index
    %c0_0 = arith.constant 0 : index
    %c0_1 = arith.constant 0 : index
    %c0_2 = arith.constant 0 : index
    %0 = vector.load %arg4[%c0, %c0_0, %c0_1, %c0_2] : memref<1x4x16x16xf32, #tpu.memory_space<vmem>>, vector<1x4x16x16xf32>
    %1 = vector.shape_cast %0 : vector<1x4x16x16xf32> to vector<4x16x16xf32>
    %cst = arith.constant dense<0xFF800000> : vector<16x16xf32>
    %2 = vector.multi_reduction <maximumf>, %1, %cst [0] : vector<4x16x16xf32> to vector<16x16xf32>
    %cst_3 = arith.constant dense<0.000000e+00> : vector<16x16xf32>
    %3 = vector.multi_reduction <add>, %1, %cst_3 [0] : vector<4x16x16xf32> to vector<16x16xf32>
    %c0_i32 = arith.constant 0 : i32
    %4 = arith.cmpi eq, %arg1, %c0_i32 : i32
    %5 = arith.extui %4 : i1 to i32
    %c0_i32_4 = arith.constant 0 : i32
    %6 = arith.cmpi ne, %5, %c0_i32_4 : i32
    scf.if %6 {
      %cst_9 = arith.constant 0.000000e+00 : f32
      %13 = vector.broadcast %cst_9 : f32 to vector<22x22xf32>
      %c0_10 = arith.constant 0 : index
      %c0_11 = arith.constant 0 : index
      %14 = vector.load %arg6[%c0_10, %c0_11] : memref<22x22xf32, #tpu.memory_space<vmem>>, vector<22x22xf32>
      tpu.vector_store %arg6[%c0_10, %c0_11], %13 {strides = array<i32>} : memref<22x22xf32, #tpu.memory_space<vmem>>, vector<22x22xf32>,
      %cst_12 = arith.constant 0.000000e+00 : f32
      %15 = vector.broadcast %cst_12 : f32 to vector<22x22xf32>
      %c0_13 = arith.constant 0 : index
      %c0_14 = arith.constant 0 : index
      %16 = vector.load %arg7[%c0_13, %c0_14] : memref<22x22xf32, #tpu.memory_space<vmem>>, vector<22x22xf32>
      tpu.vector_store %arg7[%c0_13, %c0_14], %15 {strides = array<i32>} : memref<22x22xf32, #tpu.memory_space<vmem>>, vector<22x22xf32>,
      %c3 = arith.constant 3 : index
      %c3_15 = arith.constant 3 : index
      %17 = vector.load %arg6[%c3, %c3_15] : memref<22x22xf32, #tpu.memory_space<vmem>>, vector<16x16xf32>
      tpu.vector_store %arg6[%c3, %c3_15], %2 {strides = array<i32>} : memref<22x22xf32, #tpu.memory_space<vmem>>, vector<16x16xf32>,
      %c3_16 = arith.constant 3 : index
      %c3_17 = arith.constant 3 : index
      %18 = vector.load %arg7[%c3_16, %c3_17] : memref<22x22xf32, #tpu.memory_space<vmem>>, vector<16x16xf32>
      tpu.vector_store %arg7[%c3_16, %c3_17], %3 {strides = array<i32>} : memref<22x22xf32, #tpu.memory_space<vmem>>, vector<16x16xf32>,
    } else {
    }
    %c0_i32_5 = arith.constant 0 : i32
    %7 = arith.cmpi sgt, %arg1, %c0_i32_5 : i32
    %8 = arith.extui %7 : i1 to i32
    %c0_i32_6 = arith.constant 0 : i32
    %9 = arith.cmpi ne, %8, %c0_i32_6 : i32
    scf.if %9 {
      %c3 = arith.constant 3 : index
      %c3_9 = arith.constant 3 : index
      %13 = vector.load %arg6[%c3, %c3_9] : memref<22x22xf32, #tpu.memory_space<vmem>>, vector<16x16xf32>
      %14 = arith.maximumf %13, %2 : vector<16x16xf32>
      %c3_10 = arith.constant 3 : index
      %c3_11 = arith.constant 3 : index
      %15 = vector.load %arg6[%c3_10, %c3_11] : memref<22x22xf32, #tpu.memory_space<vmem>>, vector<16x16xf32>
      tpu.vector_store %arg6[%c3_10, %c3_11], %14 {strides = array<i32>} : memref<22x22xf32, #tpu.memory_space<vmem>>, vector<16x16xf32>,
      %c3_12 = arith.constant 3 : index
      %c3_13 = arith.constant 3 : index
      %16 = vector.load %arg7[%c3_12, %c3_13] : memref<22x22xf32, #tpu.memory_space<vmem>>, vector<16x16xf32>
      %17 = arith.addf %16, %3 : vector<16x16xf32>
      %c3_14 = arith.constant 3 : index
      %c3_15 = arith.constant 3 : index
      %18 = vector.load %arg7[%c3_14, %c3_15] : memref<22x22xf32, #tpu.memory_space<vmem>>, vector<16x16xf32>
      tpu.vector_store %arg7[%c3_14, %c3_15], %17 {strides = array<i32>} : memref<22x22xf32, #tpu.memory_space<vmem>>, vector<16x16xf32>,
    } else {
    }
    %c0_i32_7 = arith.constant 0 : i32
    %10 = arith.cmpi eq, %arg1, %c0_i32_7 : i32
    %11 = arith.extui %10 : i1 to i32
    %c0_i32_8 = arith.constant 0 : i32
    %12 = arith.cmpi ne, %11, %c0_i32_8 : i32
    scf.if %12 {
      %c0_9 = arith.constant 0 : index
      %c0_10 = arith.constant 0 : index
      %13 = vector.load %arg6[%c0_9, %c0_10] : memref<22x22xf32, #tpu.memory_space<vmem>>, vector<22x22xf32>
      %c0_11 = arith.constant 0 : index
      %c0_12 = arith.constant 0 : index
      %14 = vector.load %arg7[%c0_11, %c0_12] : memref<22x22xf32, #tpu.memory_space<vmem>>, vector<22x22xf32>
      %cst_13 = arith.constant 0.000000e+00 : f32
      %15 = vector.broadcast %cst_13 : f32 to vector<16x16xf32>
      %16 = vector.extract_strided_slice %13 {offsets = [0, 0], sizes = [22, 16], strides = [1, 1]} : vector<22x22xf32> to vector<22x16xf32>
      %17 = vector.extract_strided_slice %14 {offsets = [0, 0], sizes = [22, 16], strides = [1, 1]} : vector<22x22xf32> to vector<22x16xf32>
      %c0_14 = arith.constant 0 : index
      %18 = memref.load %arg2[%c0_14] : memref<98xf32, #tpu.memory_space<smem>>
      %19 = vector.extract_strided_slice %16 {offsets = [0, 0], sizes = [16, 16], strides = [1, 1]} : vector<22x16xf32> to vector<16x16xf32>
      %20 = vector.broadcast %18 : f32 to vector<16x16xf32>
      %21 = arith.mulf %20, %19 : vector<16x16xf32>
      %22 = arith.addf %15, %21 : vector<16x16xf32>
      %c49 = arith.constant 49 : index
      %23 = memref.load %arg2[%c49] : memref<98xf32, #tpu.memory_space<smem>>
      %24 = vector.extract_strided_slice %17 {offsets = [0, 0], sizes = [16, 16], strides = [1, 1]} : vector<22x16xf32> to vector<16x16xf32>
      %25 = vector.broadcast %23 : f32 to vector<16x16xf32>
      %26 = arith.mulf %25, %24 : vector<16x16xf32>
      %27 = arith.addf %22, %26 : vector<16x16xf32>
      %c7 = arith.constant 7 : index
      %28 = memref.load %arg2[%c7] : memref<98xf32, #tpu.memory_space<smem>>
      %29 = vector.extract_strided_slice %16 {offsets = [1, 0], sizes = [16, 16], strides = [1, 1]} : vector<22x16xf32> to vector<16x16xf32>
      %30 = vector.broadcast %28 : f32 to vector<16x16xf32>
      %31 = arith.mulf %30, %29 : vector<16x16xf32>
      %32 = arith.addf %27, %31 : vector<16x16xf32>
      %c56 = arith.constant 56 : index
      %33 = memref.load %arg2[%c56] : memref<98xf32, #tpu.memory_space<smem>>
      %34 = vector.extract_strided_slice %17 {offsets = [1, 0], sizes = [16, 16], strides = [1, 1]} : vector<22x16xf32> to vector<16x16xf32>
      %35 = vector.broadcast %33 : f32 to vector<16x16xf32>
      %36 = arith.mulf %35, %34 : vector<16x16xf32>
      %37 = arith.addf %32, %36 : vector<16x16xf32>
      %c14 = arith.constant 14 : index
      %38 = memref.load %arg2[%c14] : memref<98xf32, #tpu.memory_space<smem>>
      %39 = vector.extract_strided_slice %16 {offsets = [2, 0], sizes = [16, 16], strides = [1, 1]} : vector<22x16xf32> to vector<16x16xf32>
      %40 = vector.broadcast %38 : f32 to vector<16x16xf32>
      %41 = arith.mulf %40, %39 : vector<16x16xf32>
      %42 = arith.addf %37, %41 : vector<16x16xf32>
      %c63 = arith.constant 63 : index
      %43 = memref.load %arg2[%c63] : memref<98xf32, #tpu.memory_space<smem>>
      %44 = vector.extract_strided_slice %17 {offsets = [2, 0], sizes = [16, 16], strides = [1, 1]} : vector<22x16xf32> to vector<16x16xf32>
      %45 = vector.broadcast %43 : f32 to vector<16x16xf32>
      %46 = arith.mulf %45, %44 : vector<16x16xf32>
      %47 = arith.addf %42, %46 : vector<16x16xf32>
      %c21 = arith.constant 21 : index
      %48 = memref.load %arg2[%c21] : memref<98xf32, #tpu.memory_space<smem>>
      %49 = vector.extract_strided_slice %16 {offsets = [3, 0], sizes = [16, 16], strides = [1, 1]} : vector<22x16xf32> to vector<16x16xf32>
      %50 = vector.broadcast %48 : f32 to vector<16x16xf32>
      %51 = arith.mulf %50, %49 : vector<16x16xf32>
      %52 = arith.addf %47, %51 : vector<16x16xf32>
      %c70 = arith.constant 70 : index
      %53 = memref.load %arg2[%c70] : memref<98xf32, #tpu.memory_space<smem>>
      %54 = vector.extract_strided_slice %17 {offsets = [3, 0], sizes = [16, 16], strides = [1, 1]} : vector<22x16xf32> to vector<16x16xf32>
      %55 = vector.broadcast %53 : f32 to vector<16x16xf32>
      %56 = arith.mulf %55, %54 : vector<16x16xf32>
      %57 = arith.addf %52, %56 : vector<16x16xf32>
      %c28 = arith.constant 28 : index
      %58 = memref.load %arg2[%c28] : memref<98xf32, #tpu.memory_space<smem>>
      %59 = vector.extract_strided_slice %16 {offsets = [4, 0], sizes = [16, 16], strides = [1, 1]} : vector<22x16xf32> to vector<16x16xf32>
      %60 = vector.broadcast %58 : f32 to vector<16x16xf32>
      %61 = arith.mulf %60, %59 : vector<16x16xf32>
      %62 = arith.addf %57, %61 : vector<16x16xf32>
      %c77 = arith.constant 77 : index
      %63 = memref.load %arg2[%c77] : memref<98xf32, #tpu.memory_space<smem>>
      %64 = vector.extract_strided_slice %17 {offsets = [4, 0], sizes = [16, 16], strides = [1, 1]} : vector<22x16xf32> to vector<16x16xf32>
      %65 = vector.broadcast %63 : f32 to vector<16x16xf32>
      %66 = arith.mulf %65, %64 : vector<16x16xf32>
      %67 = arith.addf %62, %66 : vector<16x16xf32>
      %c35 = arith.constant 35 : index
      %68 = memref.load %arg2[%c35] : memref<98xf32, #tpu.memory_space<smem>>
      %69 = vector.extract_strided_slice %16 {offsets = [5, 0], sizes = [16, 16], strides = [1, 1]} : vector<22x16xf32> to vector<16x16xf32>
      %70 = vector.broadcast %68 : f32 to vector<16x16xf32>
      %71 = arith.mulf %70, %69 : vector<16x16xf32>
      %72 = arith.addf %67, %71 : vector<16x16xf32>
      %c84 = arith.constant 84 : index
      %73 = memref.load %arg2[%c84] : memref<98xf32, #tpu.memory_space<smem>>
      %74 = vector.extract_strided_slice %17 {offsets = [5, 0], sizes = [16, 16], strides = [1, 1]} : vector<22x16xf32> to vector<16x16xf32>
      %75 = vector.broadcast %73 : f32 to vector<16x16xf32>
      %76 = arith.mulf %75, %74 : vector<16x16xf32>
      %77 = arith.addf %72, %76 : vector<16x16xf32>
      %c42 = arith.constant 42 : index
      %78 = memref.load %arg2[%c42] : memref<98xf32, #tpu.memory_space<smem>>
      %79 = vector.extract_strided_slice %16 {offsets = [6, 0], sizes = [16, 16], strides = [1, 1]} : vector<22x16xf32> to vector<16x16xf32>
      %80 = vector.broadcast %78 : f32 to vector<16x16xf32>
      %81 = arith.mulf %80, %79 : vector<16x16xf32>
      %82 = arith.addf %77, %81 : vector<16x16xf32>
      %c91 = arith.constant 91 : index
      %83 = memref.load %arg2[%c91] : memref<98xf32, #tpu.memory_space<smem>>
      %84 = vector.extract_strided_slice %17 {offsets = [6, 0], sizes = [16, 16], strides = [1, 1]} : vector<22x16xf32> to vector<16x16xf32>
      %85 = vector.broadcast %83 : f32 to vector<16x16xf32>
      %86 = arith.mulf %85, %84 : vector<16x16xf32>
      %87 = arith.addf %82, %86 : vector<16x16xf32>
      %88 = vector.extract_strided_slice %13 {offsets = [0, 1], sizes = [22, 16], strides = [1, 1]} : vector<22x22xf32> to vector<22x16xf32>
      %89 = vector.extract_strided_slice %14 {offsets = [0, 1], sizes = [22, 16], strides = [1, 1]} : vector<22x22xf32> to vector<22x16xf32>
      %c1 = arith.constant 1 : index
      %90 = memref.load %arg2[%c1] : memref<98xf32, #tpu.memory_space<smem>>
      %91 = vector.extract_strided_slice %88 {offsets = [0, 0], sizes = [16, 16], strides = [1, 1]} : vector<22x16xf32> to vector<16x16xf32>
      %92 = vector.broadcast %90 : f32 to vector<16x16xf32>
      %93 = arith.mulf %92, %91 : vector<16x16xf32>
      %94 = arith.addf %87, %93 : vector<16x16xf32>
      %c50 = arith.constant 50 : index
      %95 = memref.load %arg2[%c50] : memref<98xf32, #tpu.memory_space<smem>>
      %96 = vector.extract_strided_slice %89 {offsets = [0, 0], sizes = [16, 16], strides = [1, 1]} : vector<22x16xf32> to vector<16x16xf32>
      %97 = vector.broadcast %95 : f32 to vector<16x16xf32>
      %98 = arith.mulf %97, %96 : vector<16x16xf32>
      %99 = arith.addf %94, %98 : vector<16x16xf32>
      %c8 = arith.constant 8 : index
      %100 = memref.load %arg2[%c8] : memref<98xf32, #tpu.memory_space<smem>>
      %101 = vector.extract_strided_slice %88 {offsets = [1, 0], sizes = [16, 16], strides = [1, 1]} : vector<22x16xf32> to vector<16x16xf32>
      %102 = vector.broadcast %100 : f32 to vector<16x16xf32>
      %103 = arith.mulf %102, %101 : vector<16x16xf32>
      %104 = arith.addf %99, %103 : vector<16x16xf32>
      %c57 = arith.constant 57 : index
      %105 = memref.load %arg2[%c57] : memref<98xf32, #tpu.memory_space<smem>>
      %106 = vector.extract_strided_slice %89 {offsets = [1, 0], sizes = [16, 16], strides = [1, 1]} : vector<22x16xf32> to vector<16x16xf32>
      %107 = vector.broadcast %105 : f32 to vector<16x16xf32>
      %108 = arith.mulf %107, %106 : vector<16x16xf32>
      %109 = arith.addf %104, %108 : vector<16x16xf32>
      %c15 = arith.constant 15 : index
      %110 = memref.load %arg2[%c15] : memref<98xf32, #tpu.memory_space<smem>>
      %111 = vector.extract_strided_slice %88 {offsets = [2, 0], sizes = [16, 16], strides = [1, 1]} : vector<22x16xf32> to vector<16x16xf32>
      %112 = vector.broadcast %110 : f32 to vector<16x16xf32>
      %113 = arith.mulf %112, %111 : vector<16x16xf32>
      %114 = arith.addf %109, %113 : vector<16x16xf32>
      %c64 = arith.constant 64 : index
      %115 = memref.load %arg2[%c64] : memref<98xf32, #tpu.memory_space<smem>>
      %116 = vector.extract_strided_slice %89 {offsets = [2, 0], sizes = [16, 16], strides = [1, 1]} : vector<22x16xf32> to vector<16x16xf32>
      %117 = vector.broadcast %115 : f32 to vector<16x16xf32>
      %118 = arith.mulf %117, %116 : vector<16x16xf32>
      %119 = arith.addf %114, %118 : vector<16x16xf32>
      %c22 = arith.constant 22 : index
      %120 = memref.load %arg2[%c22] : memref<98xf32, #tpu.memory_space<smem>>
      %121 = vector.extract_strided_slice %88 {offsets = [3, 0], sizes = [16, 16], strides = [1, 1]} : vector<22x16xf32> to vector<16x16xf32>
      %122 = vector.broadcast %120 : f32 to vector<16x16xf32>
      %123 = arith.mulf %122, %121 : vector<16x16xf32>
      %124 = arith.addf %119, %123 : vector<16x16xf32>
      %c71 = arith.constant 71 : index
      %125 = memref.load %arg2[%c71] : memref<98xf32, #tpu.memory_space<smem>>
      %126 = vector.extract_strided_slice %89 {offsets = [3, 0], sizes = [16, 16], strides = [1, 1]} : vector<22x16xf32> to vector<16x16xf32>
      %127 = vector.broadcast %125 : f32 to vector<16x16xf32>
      %128 = arith.mulf %127, %126 : vector<16x16xf32>
      %129 = arith.addf %124, %128 : vector<16x16xf32>
      %c29 = arith.constant 29 : index
      %130 = memref.load %arg2[%c29] : memref<98xf32, #tpu.memory_space<smem>>
      %131 = vector.extract_strided_slice %88 {offsets = [4, 0], sizes = [16, 16], strides = [1, 1]} : vector<22x16xf32> to vector<16x16xf32>
      %132 = vector.broadcast %130 : f32 to vector<16x16xf32>
      %133 = arith.mulf %132, %131 : vector<16x16xf32>
      %134 = arith.addf %129, %133 : vector<16x16xf32>
      %c78 = arith.constant 78 : index
      %135 = memref.load %arg2[%c78] : memref<98xf32, #tpu.memory_space<smem>>
      %136 = vector.extract_strided_slice %89 {offsets = [4, 0], sizes = [16, 16], strides = [1, 1]} : vector<22x16xf32> to vector<16x16xf32>
      %137 = vector.broadcast %135 : f32 to vector<16x16xf32>
      %138 = arith.mulf %137, %136 : vector<16x16xf32>
      %139 = arith.addf %134, %138 : vector<16x16xf32>
      %c36 = arith.constant 36 : index
      %140 = memref.load %arg2[%c36] : memref<98xf32, #tpu.memory_space<smem>>
      %141 = vector.extract_strided_slice %88 {offsets = [5, 0], sizes = [16, 16], strides = [1, 1]} : vector<22x16xf32> to vector<16x16xf32>
      %142 = vector.broadcast %140 : f32 to vector<16x16xf32>
      %143 = arith.mulf %142, %141 : vector<16x16xf32>
      %144 = arith.addf %139, %143 : vector<16x16xf32>
      %c85 = arith.constant 85 : index
      %145 = memref.load %arg2[%c85] : memref<98xf32, #tpu.memory_space<smem>>
      %146 = vector.extract_strided_slice %89 {offsets = [5, 0], sizes = [16, 16], strides = [1, 1]} : vector<22x16xf32> to vector<16x16xf32>
      %147 = vector.broadcast %145 : f32 to vector<16x16xf32>
      %148 = arith.mulf %147, %146 : vector<16x16xf32>
      %149 = arith.addf %144, %148 : vector<16x16xf32>
      %c43 = arith.constant 43 : index
      %150 = memref.load %arg2[%c43] : memref<98xf32, #tpu.memory_space<smem>>
      %151 = vector.extract_strided_slice %88 {offsets = [6, 0], sizes = [16, 16], strides = [1, 1]} : vector<22x16xf32> to vector<16x16xf32>
      %152 = vector.broadcast %150 : f32 to vector<16x16xf32>
      %153 = arith.mulf %152, %151 : vector<16x16xf32>
      %154 = arith.addf %149, %153 : vector<16x16xf32>
      %c92 = arith.constant 92 : index
      %155 = memref.load %arg2[%c92] : memref<98xf32, #tpu.memory_space<smem>>
      %156 = vector.extract_strided_slice %89 {offsets = [6, 0], sizes = [16, 16], strides = [1, 1]} : vector<22x16xf32> to vector<16x16xf32>
      %157 = vector.broadcast %155 : f32 to vector<16x16xf32>
      %158 = arith.mulf %157, %156 : vector<16x16xf32>
      %159 = arith.addf %154, %158 : vector<16x16xf32>
      %160 = vector.extract_strided_slice %13 {offsets = [0, 2], sizes = [22, 16], strides = [1, 1]} : vector<22x22xf32> to vector<22x16xf32>
      %161 = vector.extract_strided_slice %14 {offsets = [0, 2], sizes = [22, 16], strides = [1, 1]} : vector<22x22xf32> to vector<22x16xf32>
      %c2 = arith.constant 2 : index
      %162 = memref.load %arg2[%c2] : memref<98xf32, #tpu.memory_space<smem>>
      %163 = vector.extract_strided_slice %160 {offsets = [0, 0], sizes = [16, 16], strides = [1, 1]} : vector<22x16xf32> to vector<16x16xf32>
      %164 = vector.broadcast %162 : f32 to vector<16x16xf32>
      %165 = arith.mulf %164, %163 : vector<16x16xf32>
      %166 = arith.addf %159, %165 : vector<16x16xf32>
      %c51 = arith.constant 51 : index
      %167 = memref.load %arg2[%c51] : memref<98xf32, #tpu.memory_space<smem>>
      %168 = vector.extract_strided_slice %161 {offsets = [0, 0], sizes = [16, 16], strides = [1, 1]} : vector<22x16xf32> to vector<16x16xf32>
      %169 = vector.broadcast %167 : f32 to vector<16x16xf32>
      %170 = arith.mulf %169, %168 : vector<16x16xf32>
      %171 = arith.addf %166, %170 : vector<16x16xf32>
      %c9 = arith.constant 9 : index
      %172 = memref.load %arg2[%c9] : memref<98xf32, #tpu.memory_space<smem>>
      %173 = vector.extract_strided_slice %160 {offsets = [1, 0], sizes = [16, 16], strides = [1, 1]} : vector<22x16xf32> to vector<16x16xf32>
      %174 = vector.broadcast %172 : f32 to vector<16x16xf32>
      %175 = arith.mulf %174, %173 : vector<16x16xf32>
      %176 = arith.addf %171, %175 : vector<16x16xf32>
      %c58 = arith.constant 58 : index
      %177 = memref.load %arg2[%c58] : memref<98xf32, #tpu.memory_space<smem>>
      %178 = vector.extract_strided_slice %161 {offsets = [1, 0], sizes = [16, 16], strides = [1, 1]} : vector<22x16xf32> to vector<16x16xf32>
      %179 = vector.broadcast %177 : f32 to vector<16x16xf32>
      %180 = arith.mulf %179, %178 : vector<16x16xf32>
      %181 = arith.addf %176, %180 : vector<16x16xf32>
      %c16 = arith.constant 16 : index
      %182 = memref.load %arg2[%c16] : memref<98xf32, #tpu.memory_space<smem>>
      %183 = vector.extract_strided_slice %160 {offsets = [2, 0], sizes = [16, 16], strides = [1, 1]} : vector<22x16xf32> to vector<16x16xf32>
      %184 = vector.broadcast %182 : f32 to vector<16x16xf32>
      %185 = arith.mulf %184, %183 : vector<16x16xf32>
      %186 = arith.addf %181, %185 : vector<16x16xf32>
      %c65 = arith.constant 65 : index
      %187 = memref.load %arg2[%c65] : memref<98xf32, #tpu.memory_space<smem>>
      %188 = vector.extract_strided_slice %161 {offsets = [2, 0], sizes = [16, 16], strides = [1, 1]} : vector<22x16xf32> to vector<16x16xf32>
      %189 = vector.broadcast %187 : f32 to vector<16x16xf32>
      %190 = arith.mulf %189, %188 : vector<16x16xf32>
      %191 = arith.addf %186, %190 : vector<16x16xf32>
      %c23 = arith.constant 23 : index
      %192 = memref.load %arg2[%c23] : memref<98xf32, #tpu.memory_space<smem>>
      %193 = vector.extract_strided_slice %160 {offsets = [3, 0], sizes = [16, 16], strides = [1, 1]} : vector<22x16xf32> to vector<16x16xf32>
      %194 = vector.broadcast %192 : f32 to vector<16x16xf32>
      %195 = arith.mulf %194, %193 : vector<16x16xf32>
      %196 = arith.addf %191, %195 : vector<16x16xf32>
      %c72 = arith.constant 72 : index
      %197 = memref.load %arg2[%c72] : memref<98xf32, #tpu.memory_space<smem>>
      %198 = vector.extract_strided_slice %161 {offsets = [3, 0], sizes = [16, 16], strides = [1, 1]} : vector<22x16xf32> to vector<16x16xf32>
      %199 = vector.broadcast %197 : f32 to vector<16x16xf32>
      %200 = arith.mulf %199, %198 : vector<16x16xf32>
      %201 = arith.addf %196, %200 : vector<16x16xf32>
      %c30 = arith.constant 30 : index
      %202 = memref.load %arg2[%c30] : memref<98xf32, #tpu.memory_space<smem>>
      %203 = vector.extract_strided_slice %160 {offsets = [4, 0], sizes = [16, 16], strides = [1, 1]} : vector<22x16xf32> to vector<16x16xf32>
      %204 = vector.broadcast %202 : f32 to vector<16x16xf32>
      %205 = arith.mulf %204, %203 : vector<16x16xf32>
      %206 = arith.addf %201, %205 : vector<16x16xf32>
      %c79 = arith.constant 79 : index
      %207 = memref.load %arg2[%c79] : memref<98xf32, #tpu.memory_space<smem>>
      %208 = vector.extract_strided_slice %161 {offsets = [4, 0], sizes = [16, 16], strides = [1, 1]} : vector<22x16xf32> to vector<16x16xf32>
      %209 = vector.broadcast %207 : f32 to vector<16x16xf32>
      %210 = arith.mulf %209, %208 : vector<16x16xf32>
      %211 = arith.addf %206, %210 : vector<16x16xf32>
      %c37 = arith.constant 37 : index
      %212 = memref.load %arg2[%c37] : memref<98xf32, #tpu.memory_space<smem>>
      %213 = vector.extract_strided_slice %160 {offsets = [5, 0], sizes = [16, 16], strides = [1, 1]} : vector<22x16xf32> to vector<16x16xf32>
      %214 = vector.broadcast %212 : f32 to vector<16x16xf32>
      %215 = arith.mulf %214, %213 : vector<16x16xf32>
      %216 = arith.addf %211, %215 : vector<16x16xf32>
      %c86 = arith.constant 86 : index
      %217 = memref.load %arg2[%c86] : memref<98xf32, #tpu.memory_space<smem>>
      %218 = vector.extract_strided_slice %161 {offsets = [5, 0], sizes = [16, 16], strides = [1, 1]} : vector<22x16xf32> to vector<16x16xf32>
      %219 = vector.broadcast %217 : f32 to vector<16x16xf32>
      %220 = arith.mulf %219, %218 : vector<16x16xf32>
      %221 = arith.addf %216, %220 : vector<16x16xf32>
      %c44 = arith.constant 44 : index
      %222 = memref.load %arg2[%c44] : memref<98xf32, #tpu.memory_space<smem>>
      %223 = vector.extract_strided_slice %160 {offsets = [6, 0], sizes = [16, 16], strides = [1, 1]} : vector<22x16xf32> to vector<16x16xf32>
      %224 = vector.broadcast %222 : f32 to vector<16x16xf32>
      %225 = arith.mulf %224, %223 : vector<16x16xf32>
      %226 = arith.addf %221, %225 : vector<16x16xf32>
      %c93 = arith.constant 93 : index
      %227 = memref.load %arg2[%c93] : memref<98xf32, #tpu.memory_space<smem>>
      %228 = vector.extract_strided_slice %161 {offsets = [6, 0], sizes = [16, 16], strides = [1, 1]} : vector<22x16xf32> to vector<16x16xf32>
      %229 = vector.broadcast %227 : f32 to vector<16x16xf32>
      %230 = arith.mulf %229, %228 : vector<16x16xf32>
      %231 = arith.addf %226, %230 : vector<16x16xf32>
      %232 = vector.extract_strided_slice %13 {offsets = [0, 3], sizes = [22, 16], strides = [1, 1]} : vector<22x22xf32> to vector<22x16xf32>
      %233 = vector.extract_strided_slice %14 {offsets = [0, 3], sizes = [22, 16], strides = [1, 1]} : vector<22x22xf32> to vector<22x16xf32>
      %c3 = arith.constant 3 : index
      %234 = memref.load %arg2[%c3] : memref<98xf32, #tpu.memory_space<smem>>
      %235 = vector.extract_strided_slice %232 {offsets = [0, 0], sizes = [16, 16], strides = [1, 1]} : vector<22x16xf32> to vector<16x16xf32>
      %236 = vector.broadcast %234 : f32 to vector<16x16xf32>
      %237 = arith.mulf %236, %235 : vector<16x16xf32>
      %238 = arith.addf %231, %237 : vector<16x16xf32>
      %c52 = arith.constant 52 : index
      %239 = memref.load %arg2[%c52] : memref<98xf32, #tpu.memory_space<smem>>
      %240 = vector.extract_strided_slice %233 {offsets = [0, 0], sizes = [16, 16], strides = [1, 1]} : vector<22x16xf32> to vector<16x16xf32>
      %241 = vector.broadcast %239 : f32 to vector<16x16xf32>
      %242 = arith.mulf %241, %240 : vector<16x16xf32>
      %243 = arith.addf %238, %242 : vector<16x16xf32>
      %c10 = arith.constant 10 : index
      %244 = memref.load %arg2[%c10] : memref<98xf32, #tpu.memory_space<smem>>
      %245 = vector.extract_strided_slice %232 {offsets = [1, 0], sizes = [16, 16], strides = [1, 1]} : vector<22x16xf32> to vector<16x16xf32>
      %246 = vector.broadcast %244 : f32 to vector<16x16xf32>
      %247 = arith.mulf %246, %245 : vector<16x16xf32>
      %248 = arith.addf %243, %247 : vector<16x16xf32>
      %c59 = arith.constant 59 : index
      %249 = memref.load %arg2[%c59] : memref<98xf32, #tpu.memory_space<smem>>
      %250 = vector.extract_strided_slice %233 {offsets = [1, 0], sizes = [16, 16], strides = [1, 1]} : vector<22x16xf32> to vector<16x16xf32>
      %251 = vector.broadcast %249 : f32 to vector<16x16xf32>
      %252 = arith.mulf %251, %250 : vector<16x16xf32>
      %253 = arith.addf %248, %252 : vector<16x16xf32>
      %c17 = arith.constant 17 : index
      %254 = memref.load %arg2[%c17] : memref<98xf32, #tpu.memory_space<smem>>
      %255 = vector.extract_strided_slice %232 {offsets = [2, 0], sizes = [16, 16], strides = [1, 1]} : vector<22x16xf32> to vector<16x16xf32>
      %256 = vector.broadcast %254 : f32 to vector<16x16xf32>
      %257 = arith.mulf %256, %255 : vector<16x16xf32>
      %258 = arith.addf %253, %257 : vector<16x16xf32>
      %c66 = arith.constant 66 : index
      %259 = memref.load %arg2[%c66] : memref<98xf32, #tpu.memory_space<smem>>
      %260 = vector.extract_strided_slice %233 {offsets = [2, 0], sizes = [16, 16], strides = [1, 1]} : vector<22x16xf32> to vector<16x16xf32>
      %261 = vector.broadcast %259 : f32 to vector<16x16xf32>
      %262 = arith.mulf %261, %260 : vector<16x16xf32>
      %263 = arith.addf %258, %262 : vector<16x16xf32>
      %c24 = arith.constant 24 : index
      %264 = memref.load %arg2[%c24] : memref<98xf32, #tpu.memory_space<smem>>
      %265 = vector.extract_strided_slice %232 {offsets = [3, 0], sizes = [16, 16], strides = [1, 1]} : vector<22x16xf32> to vector<16x16xf32>
      %266 = vector.broadcast %264 : f32 to vector<16x16xf32>
      %267 = arith.mulf %266, %265 : vector<16x16xf32>
      %268 = arith.addf %263, %267 : vector<16x16xf32>
      %c73 = arith.constant 73 : index
      %269 = memref.load %arg2[%c73] : memref<98xf32, #tpu.memory_space<smem>>
      %270 = vector.extract_strided_slice %233 {offsets = [3, 0], sizes = [16, 16], strides = [1, 1]} : vector<22x16xf32> to vector<16x16xf32>
      %271 = vector.broadcast %269 : f32 to vector<16x16xf32>
      %272 = arith.mulf %271, %270 : vector<16x16xf32>
      %273 = arith.addf %268, %272 : vector<16x16xf32>
      %c31 = arith.constant 31 : index
      %274 = memref.load %arg2[%c31] : memref<98xf32, #tpu.memory_space<smem>>
      %275 = vector.extract_strided_slice %232 {offsets = [4, 0], sizes = [16, 16], strides = [1, 1]} : vector<22x16xf32> to vector<16x16xf32>
      %276 = vector.broadcast %274 : f32 to vector<16x16xf32>
      %277 = arith.mulf %276, %275 : vector<16x16xf32>
      %278 = arith.addf %273, %277 : vector<16x16xf32>
      %c80 = arith.constant 80 : index
      %279 = memref.load %arg2[%c80] : memref<98xf32, #tpu.memory_space<smem>>
      %280 = vector.extract_strided_slice %233 {offsets = [4, 0], sizes = [16, 16], strides = [1, 1]} : vector<22x16xf32> to vector<16x16xf32>
      %281 = vector.broadcast %279 : f32 to vector<16x16xf32>
      %282 = arith.mulf %281, %280 : vector<16x16xf32>
      %283 = arith.addf %278, %282 : vector<16x16xf32>
      %c38 = arith.constant 38 : index
      %284 = memref.load %arg2[%c38] : memref<98xf32, #tpu.memory_space<smem>>
      %285 = vector.extract_strided_slice %232 {offsets = [5, 0], sizes = [16, 16], strides = [1, 1]} : vector<22x16xf32> to vector<16x16xf32>
      %286 = vector.broadcast %284 : f32 to vector<16x16xf32>
      %287 = arith.mulf %286, %285 : vector<16x16xf32>
      %288 = arith.addf %283, %287 : vector<16x16xf32>
      %c87 = arith.constant 87 : index
      %289 = memref.load %arg2[%c87] : memref<98xf32, #tpu.memory_space<smem>>
      %290 = vector.extract_strided_slice %233 {offsets = [5, 0], sizes = [16, 16], strides = [1, 1]} : vector<22x16xf32> to vector<16x16xf32>
      %291 = vector.broadcast %289 : f32 to vector<16x16xf32>
      %292 = arith.mulf %291, %290 : vector<16x16xf32>
      %293 = arith.addf %288, %292 : vector<16x16xf32>
      %c45 = arith.constant 45 : index
      %294 = memref.load %arg2[%c45] : memref<98xf32, #tpu.memory_space<smem>>
      %295 = vector.extract_strided_slice %232 {offsets = [6, 0], sizes = [16, 16], strides = [1, 1]} : vector<22x16xf32> to vector<16x16xf32>
      %296 = vector.broadcast %294 : f32 to vector<16x16xf32>
      %297 = arith.mulf %296, %295 : vector<16x16xf32>
      %298 = arith.addf %293, %297 : vector<16x16xf32>
      %c94 = arith.constant 94 : index
      %299 = memref.load %arg2[%c94] : memref<98xf32, #tpu.memory_space<smem>>
      %300 = vector.extract_strided_slice %233 {offsets = [6, 0], sizes = [16, 16], strides = [1, 1]} : vector<22x16xf32> to vector<16x16xf32>
      %301 = vector.broadcast %299 : f32 to vector<16x16xf32>
      %302 = arith.mulf %301, %300 : vector<16x16xf32>
      %303 = arith.addf %298, %302 : vector<16x16xf32>
      %304 = vector.extract_strided_slice %13 {offsets = [0, 4], sizes = [22, 16], strides = [1, 1]} : vector<22x22xf32> to vector<22x16xf32>
      %305 = vector.extract_strided_slice %14 {offsets = [0, 4], sizes = [22, 16], strides = [1, 1]} : vector<22x22xf32> to vector<22x16xf32>
      %c4 = arith.constant 4 : index
      %306 = memref.load %arg2[%c4] : memref<98xf32, #tpu.memory_space<smem>>
      %307 = vector.extract_strided_slice %304 {offsets = [0, 0], sizes = [16, 16], strides = [1, 1]} : vector<22x16xf32> to vector<16x16xf32>
      %308 = vector.broadcast %306 : f32 to vector<16x16xf32>
      %309 = arith.mulf %308, %307 : vector<16x16xf32>
      %310 = arith.addf %303, %309 : vector<16x16xf32>
      %c53 = arith.constant 53 : index
      %311 = memref.load %arg2[%c53] : memref<98xf32, #tpu.memory_space<smem>>
      %312 = vector.extract_strided_slice %305 {offsets = [0, 0], sizes = [16, 16], strides = [1, 1]} : vector<22x16xf32> to vector<16x16xf32>
      %313 = vector.broadcast %311 : f32 to vector<16x16xf32>
      %314 = arith.mulf %313, %312 : vector<16x16xf32>
      %315 = arith.addf %310, %314 : vector<16x16xf32>
      %c11 = arith.constant 11 : index
      %316 = memref.load %arg2[%c11] : memref<98xf32, #tpu.memory_space<smem>>
      %317 = vector.extract_strided_slice %304 {offsets = [1, 0], sizes = [16, 16], strides = [1, 1]} : vector<22x16xf32> to vector<16x16xf32>
      %318 = vector.broadcast %316 : f32 to vector<16x16xf32>
      %319 = arith.mulf %318, %317 : vector<16x16xf32>
      %320 = arith.addf %315, %319 : vector<16x16xf32>
      %c60 = arith.constant 60 : index
      %321 = memref.load %arg2[%c60] : memref<98xf32, #tpu.memory_space<smem>>
      %322 = vector.extract_strided_slice %305 {offsets = [1, 0], sizes = [16, 16], strides = [1, 1]} : vector<22x16xf32> to vector<16x16xf32>
      %323 = vector.broadcast %321 : f32 to vector<16x16xf32>
      %324 = arith.mulf %323, %322 : vector<16x16xf32>
      %325 = arith.addf %320, %324 : vector<16x16xf32>
      %c18 = arith.constant 18 : index
      %326 = memref.load %arg2[%c18] : memref<98xf32, #tpu.memory_space<smem>>
      %327 = vector.extract_strided_slice %304 {offsets = [2, 0], sizes = [16, 16], strides = [1, 1]} : vector<22x16xf32> to vector<16x16xf32>
      %328 = vector.broadcast %326 : f32 to vector<16x16xf32>
      %329 = arith.mulf %328, %327 : vector<16x16xf32>
      %330 = arith.addf %325, %329 : vector<16x16xf32>
      %c67 = arith.constant 67 : index
      %331 = memref.load %arg2[%c67] : memref<98xf32, #tpu.memory_space<smem>>
      %332 = vector.extract_strided_slice %305 {offsets = [2, 0], sizes = [16, 16], strides = [1, 1]} : vector<22x16xf32> to vector<16x16xf32>
      %333 = vector.broadcast %331 : f32 to vector<16x16xf32>
      %334 = arith.mulf %333, %332 : vector<16x16xf32>
      %335 = arith.addf %330, %334 : vector<16x16xf32>
      %c25 = arith.constant 25 : index
      %336 = memref.load %arg2[%c25] : memref<98xf32, #tpu.memory_space<smem>>
      %337 = vector.extract_strided_slice %304 {offsets = [3, 0], sizes = [16, 16], strides = [1, 1]} : vector<22x16xf32> to vector<16x16xf32>
      %338 = vector.broadcast %336 : f32 to vector<16x16xf32>
      %339 = arith.mulf %338, %337 : vector<16x16xf32>
      %340 = arith.addf %335, %339 : vector<16x16xf32>
      %c74 = arith.constant 74 : index
      %341 = memref.load %arg2[%c74] : memref<98xf32, #tpu.memory_space<smem>>
      %342 = vector.extract_strided_slice %305 {offsets = [3, 0], sizes = [16, 16], strides = [1, 1]} : vector<22x16xf32> to vector<16x16xf32>
      %343 = vector.broadcast %341 : f32 to vector<16x16xf32>
      %344 = arith.mulf %343, %342 : vector<16x16xf32>
      %345 = arith.addf %340, %344 : vector<16x16xf32>
      %c32 = arith.constant 32 : index
      %346 = memref.load %arg2[%c32] : memref<98xf32, #tpu.memory_space<smem>>
      %347 = vector.extract_strided_slice %304 {offsets = [4, 0], sizes = [16, 16], strides = [1, 1]} : vector<22x16xf32> to vector<16x16xf32>
      %348 = vector.broadcast %346 : f32 to vector<16x16xf32>
      %349 = arith.mulf %348, %347 : vector<16x16xf32>
      %350 = arith.addf %345, %349 : vector<16x16xf32>
      %c81 = arith.constant 81 : index
      %351 = memref.load %arg2[%c81] : memref<98xf32, #tpu.memory_space<smem>>
      %352 = vector.extract_strided_slice %305 {offsets = [4, 0], sizes = [16, 16], strides = [1, 1]} : vector<22x16xf32> to vector<16x16xf32>
      %353 = vector.broadcast %351 : f32 to vector<16x16xf32>
      %354 = arith.mulf %353, %352 : vector<16x16xf32>
      %355 = arith.addf %350, %354 : vector<16x16xf32>
      %c39 = arith.constant 39 : index
      %356 = memref.load %arg2[%c39] : memref<98xf32, #tpu.memory_space<smem>>
      %357 = vector.extract_strided_slice %304 {offsets = [5, 0], sizes = [16, 16], strides = [1, 1]} : vector<22x16xf32> to vector<16x16xf32>
      %358 = vector.broadcast %356 : f32 to vector<16x16xf32>
      %359 = arith.mulf %358, %357 : vector<16x16xf32>
      %360 = arith.addf %355, %359 : vector<16x16xf32>
      %c88 = arith.constant 88 : index
      %361 = memref.load %arg2[%c88] : memref<98xf32, #tpu.memory_space<smem>>
      %362 = vector.extract_strided_slice %305 {offsets = [5, 0], sizes = [16, 16], strides = [1, 1]} : vector<22x16xf32> to vector<16x16xf32>
      %363 = vector.broadcast %361 : f32 to vector<16x16xf32>
      %364 = arith.mulf %363, %362 : vector<16x16xf32>
      %365 = arith.addf %360, %364 : vector<16x16xf32>
      %c46 = arith.constant 46 : index
      %366 = memref.load %arg2[%c46] : memref<98xf32, #tpu.memory_space<smem>>
      %367 = vector.extract_strided_slice %304 {offsets = [6, 0], sizes = [16, 16], strides = [1, 1]} : vector<22x16xf32> to vector<16x16xf32>
      %368 = vector.broadcast %366 : f32 to vector<16x16xf32>
      %369 = arith.mulf %368, %367 : vector<16x16xf32>
      %370 = arith.addf %365, %369 : vector<16x16xf32>
      %c95 = arith.constant 95 : index
      %371 = memref.load %arg2[%c95] : memref<98xf32, #tpu.memory_space<smem>>
      %372 = vector.extract_strided_slice %305 {offsets = [6, 0], sizes = [16, 16], strides = [1, 1]} : vector<22x16xf32> to vector<16x16xf32>
      %373 = vector.broadcast %371 : f32 to vector<16x16xf32>
      %374 = arith.mulf %373, %372 : vector<16x16xf32>
      %375 = arith.addf %370, %374 : vector<16x16xf32>
      %376 = vector.extract_strided_slice %13 {offsets = [0, 5], sizes = [22, 16], strides = [1, 1]} : vector<22x22xf32> to vector<22x16xf32>
      %377 = vector.extract_strided_slice %14 {offsets = [0, 5], sizes = [22, 16], strides = [1, 1]} : vector<22x22xf32> to vector<22x16xf32>
      %c5 = arith.constant 5 : index
      %378 = memref.load %arg2[%c5] : memref<98xf32, #tpu.memory_space<smem>>
      %379 = vector.extract_strided_slice %376 {offsets = [0, 0], sizes = [16, 16], strides = [1, 1]} : vector<22x16xf32> to vector<16x16xf32>
      %380 = vector.broadcast %378 : f32 to vector<16x16xf32>
      %381 = arith.mulf %380, %379 : vector<16x16xf32>
      %382 = arith.addf %375, %381 : vector<16x16xf32>
      %c54 = arith.constant 54 : index
      %383 = memref.load %arg2[%c54] : memref<98xf32, #tpu.memory_space<smem>>
      %384 = vector.extract_strided_slice %377 {offsets = [0, 0], sizes = [16, 16], strides = [1, 1]} : vector<22x16xf32> to vector<16x16xf32>
      %385 = vector.broadcast %383 : f32 to vector<16x16xf32>
      %386 = arith.mulf %385, %384 : vector<16x16xf32>
      %387 = arith.addf %382, %386 : vector<16x16xf32>
      %c12 = arith.constant 12 : index
      %388 = memref.load %arg2[%c12] : memref<98xf32, #tpu.memory_space<smem>>
      %389 = vector.extract_strided_slice %376 {offsets = [1, 0], sizes = [16, 16], strides = [1, 1]} : vector<22x16xf32> to vector<16x16xf32>
      %390 = vector.broadcast %388 : f32 to vector<16x16xf32>
      %391 = arith.mulf %390, %389 : vector<16x16xf32>
      %392 = arith.addf %387, %391 : vector<16x16xf32>
      %c61 = arith.constant 61 : index
      %393 = memref.load %arg2[%c61] : memref<98xf32, #tpu.memory_space<smem>>
      %394 = vector.extract_strided_slice %377 {offsets = [1, 0], sizes = [16, 16], strides = [1, 1]} : vector<22x16xf32> to vector<16x16xf32>
      %395 = vector.broadcast %393 : f32 to vector<16x16xf32>
      %396 = arith.mulf %395, %394 : vector<16x16xf32>
      %397 = arith.addf %392, %396 : vector<16x16xf32>
      %c19 = arith.constant 19 : index
      %398 = memref.load %arg2[%c19] : memref<98xf32, #tpu.memory_space<smem>>
      %399 = vector.extract_strided_slice %376 {offsets = [2, 0], sizes = [16, 16], strides = [1, 1]} : vector<22x16xf32> to vector<16x16xf32>
      %400 = vector.broadcast %398 : f32 to vector<16x16xf32>
      %401 = arith.mulf %400, %399 : vector<16x16xf32>
      %402 = arith.addf %397, %401 : vector<16x16xf32>
      %c68 = arith.constant 68 : index
      %403 = memref.load %arg2[%c68] : memref<98xf32, #tpu.memory_space<smem>>
      %404 = vector.extract_strided_slice %377 {offsets = [2, 0], sizes = [16, 16], strides = [1, 1]} : vector<22x16xf32> to vector<16x16xf32>
      %405 = vector.broadcast %403 : f32 to vector<16x16xf32>
      %406 = arith.mulf %405, %404 : vector<16x16xf32>
      %407 = arith.addf %402, %406 : vector<16x16xf32>
      %c26 = arith.constant 26 : index
      %408 = memref.load %arg2[%c26] : memref<98xf32, #tpu.memory_space<smem>>
      %409 = vector.extract_strided_slice %376 {offsets = [3, 0], sizes = [16, 16], strides = [1, 1]} : vector<22x16xf32> to vector<16x16xf32>
      %410 = vector.broadcast %408 : f32 to vector<16x16xf32>
      %411 = arith.mulf %410, %409 : vector<16x16xf32>
      %412 = arith.addf %407, %411 : vector<16x16xf32>
      %c75 = arith.constant 75 : index
      %413 = memref.load %arg2[%c75] : memref<98xf32, #tpu.memory_space<smem>>
      %414 = vector.extract_strided_slice %377 {offsets = [3, 0], sizes = [16, 16], strides = [1, 1]} : vector<22x16xf32> to vector<16x16xf32>
      %415 = vector.broadcast %413 : f32 to vector<16x16xf32>
      %416 = arith.mulf %415, %414 : vector<16x16xf32>
      %417 = arith.addf %412, %416 : vector<16x16xf32>
      %c33 = arith.constant 33 : index
      %418 = memref.load %arg2[%c33] : memref<98xf32, #tpu.memory_space<smem>>
      %419 = vector.extract_strided_slice %376 {offsets = [4, 0], sizes = [16, 16], strides = [1, 1]} : vector<22x16xf32> to vector<16x16xf32>
      %420 = vector.broadcast %418 : f32 to vector<16x16xf32>
      %421 = arith.mulf %420, %419 : vector<16x16xf32>
      %422 = arith.addf %417, %421 : vector<16x16xf32>
      %c82 = arith.constant 82 : index
      %423 = memref.load %arg2[%c82] : memref<98xf32, #tpu.memory_space<smem>>
      %424 = vector.extract_strided_slice %377 {offsets = [4, 0], sizes = [16, 16], strides = [1, 1]} : vector<22x16xf32> to vector<16x16xf32>
      %425 = vector.broadcast %423 : f32 to vector<16x16xf32>
      %426 = arith.mulf %425, %424 : vector<16x16xf32>
      %427 = arith.addf %422, %426 : vector<16x16xf32>
      %c40 = arith.constant 40 : index
      %428 = memref.load %arg2[%c40] : memref<98xf32, #tpu.memory_space<smem>>
      %429 = vector.extract_strided_slice %376 {offsets = [5, 0], sizes = [16, 16], strides = [1, 1]} : vector<22x16xf32> to vector<16x16xf32>
      %430 = vector.broadcast %428 : f32 to vector<16x16xf32>
      %431 = arith.mulf %430, %429 : vector<16x16xf32>
      %432 = arith.addf %427, %431 : vector<16x16xf32>
      %c89 = arith.constant 89 : index
      %433 = memref.load %arg2[%c89] : memref<98xf32, #tpu.memory_space<smem>>
      %434 = vector.extract_strided_slice %377 {offsets = [5, 0], sizes = [16, 16], strides = [1, 1]} : vector<22x16xf32> to vector<16x16xf32>
      %435 = vector.broadcast %433 : f32 to vector<16x16xf32>
      %436 = arith.mulf %435, %434 : vector<16x16xf32>
      %437 = arith.addf %432, %436 : vector<16x16xf32>
      %c47 = arith.constant 47 : index
      %438 = memref.load %arg2[%c47] : memref<98xf32, #tpu.memory_space<smem>>
      %439 = vector.extract_strided_slice %376 {offsets = [6, 0], sizes = [16, 16], strides = [1, 1]} : vector<22x16xf32> to vector<16x16xf32>
      %440 = vector.broadcast %438 : f32 to vector<16x16xf32>
      %441 = arith.mulf %440, %439 : vector<16x16xf32>
      %442 = arith.addf %437, %441 : vector<16x16xf32>
      %c96 = arith.constant 96 : index
      %443 = memref.load %arg2[%c96] : memref<98xf32, #tpu.memory_space<smem>>
      %444 = vector.extract_strided_slice %377 {offsets = [6, 0], sizes = [16, 16], strides = [1, 1]} : vector<22x16xf32> to vector<16x16xf32>
      %445 = vector.broadcast %443 : f32 to vector<16x16xf32>
      %446 = arith.mulf %445, %444 : vector<16x16xf32>
      %447 = arith.addf %442, %446 : vector<16x16xf32>
      %448 = vector.extract_strided_slice %13 {offsets = [0, 6], sizes = [22, 16], strides = [1, 1]} : vector<22x22xf32> to vector<22x16xf32>
      %449 = vector.extract_strided_slice %14 {offsets = [0, 6], sizes = [22, 16], strides = [1, 1]} : vector<22x22xf32> to vector<22x16xf32>
      %c6 = arith.constant 6 : index
      %450 = memref.load %arg2[%c6] : memref<98xf32, #tpu.memory_space<smem>>
      %451 = vector.extract_strided_slice %448 {offsets = [0, 0], sizes = [16, 16], strides = [1, 1]} : vector<22x16xf32> to vector<16x16xf32>
      %452 = vector.broadcast %450 : f32 to vector<16x16xf32>
      %453 = arith.mulf %452, %451 : vector<16x16xf32>
      %454 = arith.addf %447, %453 : vector<16x16xf32>
      %c55 = arith.constant 55 : index
      %455 = memref.load %arg2[%c55] : memref<98xf32, #tpu.memory_space<smem>>
      %456 = vector.extract_strided_slice %449 {offsets = [0, 0], sizes = [16, 16], strides = [1, 1]} : vector<22x16xf32> to vector<16x16xf32>
      %457 = vector.broadcast %455 : f32 to vector<16x16xf32>
      %458 = arith.mulf %457, %456 : vector<16x16xf32>
      %459 = arith.addf %454, %458 : vector<16x16xf32>
      %c13 = arith.constant 13 : index
      %460 = memref.load %arg2[%c13] : memref<98xf32, #tpu.memory_space<smem>>
      %461 = vector.extract_strided_slice %448 {offsets = [1, 0], sizes = [16, 16], strides = [1, 1]} : vector<22x16xf32> to vector<16x16xf32>
      %462 = vector.broadcast %460 : f32 to vector<16x16xf32>
      %463 = arith.mulf %462, %461 : vector<16x16xf32>
      %464 = arith.addf %459, %463 : vector<16x16xf32>
      %c62 = arith.constant 62 : index
      %465 = memref.load %arg2[%c62] : memref<98xf32, #tpu.memory_space<smem>>
      %466 = vector.extract_strided_slice %449 {offsets = [1, 0], sizes = [16, 16], strides = [1, 1]} : vector<22x16xf32> to vector<16x16xf32>
      %467 = vector.broadcast %465 : f32 to vector<16x16xf32>
      %468 = arith.mulf %467, %466 : vector<16x16xf32>
      %469 = arith.addf %464, %468 : vector<16x16xf32>
      %c20 = arith.constant 20 : index
      %470 = memref.load %arg2[%c20] : memref<98xf32, #tpu.memory_space<smem>>
      %471 = vector.extract_strided_slice %448 {offsets = [2, 0], sizes = [16, 16], strides = [1, 1]} : vector<22x16xf32> to vector<16x16xf32>
      %472 = vector.broadcast %470 : f32 to vector<16x16xf32>
      %473 = arith.mulf %472, %471 : vector<16x16xf32>
      %474 = arith.addf %469, %473 : vector<16x16xf32>
      %c69 = arith.constant 69 : index
      %475 = memref.load %arg2[%c69] : memref<98xf32, #tpu.memory_space<smem>>
      %476 = vector.extract_strided_slice %449 {offsets = [2, 0], sizes = [16, 16], strides = [1, 1]} : vector<22x16xf32> to vector<16x16xf32>
      %477 = vector.broadcast %475 : f32 to vector<16x16xf32>
      %478 = arith.mulf %477, %476 : vector<16x16xf32>
      %479 = arith.addf %474, %478 : vector<16x16xf32>
      %c27 = arith.constant 27 : index
      %480 = memref.load %arg2[%c27] : memref<98xf32, #tpu.memory_space<smem>>
      %481 = vector.extract_strided_slice %448 {offsets = [3, 0], sizes = [16, 16], strides = [1, 1]} : vector<22x16xf32> to vector<16x16xf32>
      %482 = vector.broadcast %480 : f32 to vector<16x16xf32>
      %483 = arith.mulf %482, %481 : vector<16x16xf32>
      %484 = arith.addf %479, %483 : vector<16x16xf32>
      %c76 = arith.constant 76 : index
      %485 = memref.load %arg2[%c76] : memref<98xf32, #tpu.memory_space<smem>>
      %486 = vector.extract_strided_slice %449 {offsets = [3, 0], sizes = [16, 16], strides = [1, 1]} : vector<22x16xf32> to vector<16x16xf32>
      %487 = vector.broadcast %485 : f32 to vector<16x16xf32>
      %488 = arith.mulf %487, %486 : vector<16x16xf32>
      %489 = arith.addf %484, %488 : vector<16x16xf32>
      %c34 = arith.constant 34 : index
      %490 = memref.load %arg2[%c34] : memref<98xf32, #tpu.memory_space<smem>>
      %491 = vector.extract_strided_slice %448 {offsets = [4, 0], sizes = [16, 16], strides = [1, 1]} : vector<22x16xf32> to vector<16x16xf32>
      %492 = vector.broadcast %490 : f32 to vector<16x16xf32>
      %493 = arith.mulf %492, %491 : vector<16x16xf32>
      %494 = arith.addf %489, %493 : vector<16x16xf32>
      %c83 = arith.constant 83 : index
      %495 = memref.load %arg2[%c83] : memref<98xf32, #tpu.memory_space<smem>>
      %496 = vector.extract_strided_slice %449 {offsets = [4, 0], sizes = [16, 16], strides = [1, 1]} : vector<22x16xf32> to vector<16x16xf32>
      %497 = vector.broadcast %495 : f32 to vector<16x16xf32>
      %498 = arith.mulf %497, %496 : vector<16x16xf32>
      %499 = arith.addf %494, %498 : vector<16x16xf32>
      %c41 = arith.constant 41 : index
      %500 = memref.load %arg2[%c41] : memref<98xf32, #tpu.memory_space<smem>>
      %501 = vector.extract_strided_slice %448 {offsets = [5, 0], sizes = [16, 16], strides = [1, 1]} : vector<22x16xf32> to vector<16x16xf32>
      %502 = vector.broadcast %500 : f32 to vector<16x16xf32>
      %503 = arith.mulf %502, %501 : vector<16x16xf32>
      %504 = arith.addf %499, %503 : vector<16x16xf32>
      %c90 = arith.constant 90 : index
      %505 = memref.load %arg2[%c90] : memref<98xf32, #tpu.memory_space<smem>>
      %506 = vector.extract_strided_slice %449 {offsets = [5, 0], sizes = [16, 16], strides = [1, 1]} : vector<22x16xf32> to vector<16x16xf32>
      %507 = vector.broadcast %505 : f32 to vector<16x16xf32>
      %508 = arith.mulf %507, %506 : vector<16x16xf32>
      %509 = arith.addf %504, %508 : vector<16x16xf32>
      %c48 = arith.constant 48 : index
      %510 = memref.load %arg2[%c48] : memref<98xf32, #tpu.memory_space<smem>>
      %511 = vector.extract_strided_slice %448 {offsets = [6, 0], sizes = [16, 16], strides = [1, 1]} : vector<22x16xf32> to vector<16x16xf32>
      %512 = vector.broadcast %510 : f32 to vector<16x16xf32>
      %513 = arith.mulf %512, %511 : vector<16x16xf32>
      %514 = arith.addf %509, %513 : vector<16x16xf32>
      %c97 = arith.constant 97 : index
      %515 = memref.load %arg2[%c97] : memref<98xf32, #tpu.memory_space<smem>>
      %516 = vector.extract_strided_slice %449 {offsets = [6, 0], sizes = [16, 16], strides = [1, 1]} : vector<22x16xf32> to vector<16x16xf32>
      %517 = vector.broadcast %515 : f32 to vector<16x16xf32>
      %518 = arith.mulf %517, %516 : vector<16x16xf32>
      %519 = arith.addf %514, %518 : vector<16x16xf32>
      %c0_15 = arith.constant 0 : index
      %520 = memref.load %arg3[%c0_15] : memref<1xf32, #tpu.memory_space<smem>>
      %521 = vector.broadcast %520 : f32 to vector<16x16xf32>
      %522 = arith.addf %519, %521 : vector<16x16xf32>
      %523 = arith.negf %522 : vector<16x16xf32>
      %524 = math.exp %523 : vector<16x16xf32>
      %cst_16 = arith.constant 1.000000e+00 : f32
      %525 = vector.broadcast %cst_16 : f32 to vector<16x16xf32>
      %526 = arith.addf %525, %524 : vector<16x16xf32>
      %527 = arith.divf %525, %526 : vector<16x16xf32>
      %c0_17 = arith.constant 0 : index
      %c0_18 = arith.constant 0 : index
      %c0_19 = arith.constant 0 : index
      %528 = vector.load %arg5[%c0_17, %c0_18, %c0_19] : memref<1x16x16xf32, #tpu.memory_space<vmem>>, vector<1x16x16xf32>
      %529 = vector.shape_cast %528 : vector<1x16x16xf32> to vector<16x16xf32>
      %530 = vector.shape_cast %527 : vector<16x16xf32> to vector<1x16x16xf32>
      tpu.vector_store %arg5[%c0_17, %c0_18, %c0_19], %530 {strides = array<i32>} : memref<1x16x16xf32, #tpu.memory_space<vmem>>, vector<1x16x16xf32>,
    } else {
    }
    return
  }
  func.func @transform_0(%arg0: i32, %arg1: i32, %arg2: memref<98xf32, #tpu.memory_space<smem>>, %arg3: memref<1xf32, #tpu.memory_space<smem>>) -> (i32, i32, i32, i32) {
    %c0_i32 = arith.constant 0 : i32
    %c0_i32_0 = arith.constant 0 : i32
    %c0_i32_1 = arith.constant 0 : i32
    return %arg0, %arg1, %c0_i32, %c0_i32_0 : i32, i32, i32, i32
  }
  func.func @transform_1(%arg0: i32, %arg1: i32, %arg2: memref<98xf32, #tpu.memory_space<smem>>, %arg3: memref<1xf32, #tpu.memory_space<smem>>) -> (i32, i32, i32) {
    %c0_i32 = arith.constant 0 : i32
    %c0_i32_0 = arith.constant 0 : i32
    %c0_i32_1 = arith.constant 0 : i32
    return %arg0, %c0_i32, %c0_i32_0 : i32, i32, i32
  }
}

</mosaic_0001>

<bundles_post_ra>
// kernel: tpu_custom_call.1
= control target key start
LH: loop header
LB: loop body
LE: loop exit
PB: predicated region body
PF: predicated region fallthrough
CT: control target
= control target key end

     0   :  { %s4075_s0 = inlined_call_operand.vmem [shape: f32[98], index: 0, kind: input, shape index: {}]   ;;  %s4076_s1 = inlined_call_operand.<no memory space> [shape: f32[1], index: 1, kind: input, shape index: {}]   ;;  %s4077_s2 = inlined_call_operand.hbm [shape: f32[2,4,16,16], index: 2, kind: input, shape index: {}]   ;;  %s4078_s3 = inlined_call_operand.hbm [shape: f32[2,16,16], index: 3, kind: output, shape index: {}]  }
   0x1   :  { %4087 = sst [smem:[#allocation22_spill]] %s4077_s2  ;;  %s8_s14 = sshll.u32 %s4075_s0, 4  ;;  %s9_s14 = int_to_ptr.vmem [resolvable:$true] %s8_s14 }
   0x2   :  { %12 = sst [smem:[#allocation6]] %s4076_s1  ;;  %s2503_s17 = scalar_lea.vmem %s9_s14, 16 }
   0x3   :  { %p2504_p0 = scmp.ne.s32.totalorder %s9_s14, %s2503_s17  ;;  %p2508_p1 = scmp.lt.s32.totalorder %s9_s14, %s9_s14 }
   0x4   :  { %p2509_p2 = scmp.lt.s32.totalorder %s2503_s17, %s2503_s17 }
   0x6   :  { %p2510_p3 = por %p2509_p2, %p2508_p1 }
   0x8   :  { %p2511_p4 = pnand %p2510_p3, %p2504_p0 }
   0xa   :  { %2514 = shalt.err (!%p2511_p4)  }
   0xb   :  { %s2631_s18 = smov [#allocation5]  }
   0xc   :  { %11 = dma.vmem_to_smem %s9_s14, 16, %s2631_s18, [#allocation4] }
   0xd   :  { %2597 = dma.done.wait [#allocation4], 16 }
   0xe   :  { %2598 = vsyncadd [#allocation4], 4294967280 }
   0xf   :  { %14 = sfence }
  0x10   :  { %15 = vsyncpa [#allocation8], 0 }
  0x11   :  { %17 = vsyncpa [#allocation8 + $0x1], 0 }
  0x12   :  { %18 = vsyncpa [#allocation9], 0 }
  0x13   :  { %20 = vsyncpa [#allocation9 + $0x1], 0  ;;  %s2672_s0 = smov 0   ;;  %s2674_s1 = smov 0  }
  0x14   :  { %s2676_s19 = smov 0   ;;  %s2678_s20 = smov 0  }
  0x15   :  { %s2680_s21 = smov 0   ;;  %s2682_s22 = smov 0  }
  0x16 LB: > { %s2292_s23 = sadd.s32 4294967295, %s2629_s22   ;;  %s2293_s24 = sadd.s32 4294967294, %s2629_s22   ;;  %s2629_s22 = sphi %s2682_s22, %s26_s22   ;;  %s2625_s21 = sphi %s2680_s21, %s4125_s21   ;;  %s2621_s20 = sphi %s2678_s20, %s4124_s20   ;;  %s2617_s19 = sphi %s2676_s19, %s4123_s19   ;;  %s2613_s1 = sphi %s2674_s1, %s4122_s1   ;;  %s2609_s0 = sphi %s2672_s0, %s4121_s0  }
  0x17   : > { %s38_s25 = sadd.s32 1, %s2625_s21  ;;  %s47_s26 = sadd.s32 1, %s2617_s19 }
  0x18   : > { %p40_p5 = scmp.ge.s32.totalorder %s38_s25, 2  ;;  %p54_p6 = scmp.ne.s32.totalorder %s2617_s19, %s2613_s1 }
  0x19   : > { %p55_p7 = scmp.eq.s32.totalorder %s2629_s22, 0  ;;  %p60_p8 = scmp.ne.s32.totalorder %s2613_s1, %s2609_s0 }
  0x1a   : > { %s4127_s25 = smov (%p40_p5, %s38_s25), 0  ;;  %p61_p10 = scmp.eq.s32.totalorder %s2292_s23, 0 }
  0x1b   : > { %4088 = sst [smem:[#allocation14_spill]] %s4127_s25  ;;  %p2713_p9 = por %p55_p7, %p54_p6 }
  0x1c   : > { %s42_s28 = ssub.s32 %s2625_s21, %s4127_s25  ;;  %p84_p11 = scmp.eq.s32.totalorder %s2292_s23, 1 }
  0x1d   : > { %p45_p12 = scmp.eq.s32.totalorder %s42_s28, 0  ;;  %p2719_p13 = por %p61_p10, %p60_p8 }
  0x1e   : > { %p2723_p0 = por %p84_p11, %p54_p6  ;;  %p90_p1 = scmp.eq.s32.totalorder %s2293_s24, 1 }
  0x1f   : > { %s2728_s4 = scalar_select %p45_p12, %s2617_s19, %s47_s26  }
  0x20   : > { %s4091_s30 = scalar_select %p2723_p0, 1, 0 }
  0x21   : > { %p2730_p2 = por %p90_p1, %p60_p8  ;;  %p2420_p4 = scmp.lt.s32.totalorder %s2629_s22, 2 }
  0x22   : > { %s110_s6 = sand.u32 1, %s2617_s19   ;;  %s2406_s8 = sshll.u32 %s2625_s21, 10 }
  0x23   : > { %s4092_s5 = scalar_select %p2730_p2, 1, 0 }
  0x24   : > { %s2296_s7 = sshll.u32 %s110_s6, 6  ;;  %s4093_s2 = sld [smem:[#allocation22_spill]] }
  0x25   : > { %s114_s12 = scalar_lea.vmem [#allocation7], %s2296_s7  ;;  %p2747_p5 = pnand %p2420_p4, %p2713_p9 }
  0x26   : > { %s124_s13 = sshll.u32 %s114_s12, 4  ;;  %s2752_s15 = scalar_lea.sflag [#allocation8], %s110_s6  ;;  %s2743_s13 = int_to_ptr.vmem [resolvable:$true] %s124_s13 }
  0x27   : > { %p2517_p8 = pneg %p2747_p5 }
  0x2a   : > { %s2741_s11 = scalar_lea.hbm %s4093_s2, %s2406_s8  ;;  %s2520_s23 = scalar_lea.hbm %s4093_s2, 2048 }
  0x2b   : > { %s2515_s16 = scalar_lea.hbm %s2741_s11, 1024  ;;  %p2521_p9 = scmp.lt.u32.totalorder %s2741_s11, %s4093_s2 }
  0x2c   : > { %p2516_p7 = scmp.ne.s32.totalorder %s2741_s11, %s2515_s16  ;;  %p2522_p12 = scmp.lt.u32.totalorder %s2520_s23, %s2515_s16 }
  0x2d   : > { %p2524_p4 = scmp.lt.u32.totalorder %s2515_s16, %s2741_s11 }
  0x2e   : > { %p2518_p10 = pnand %p2517_p8, %p2516_p7  ;;  %p2523_p1 = por %p2522_p12, %p2521_p9 }
  0x30   : > { %p2519_p11 = pneg %p2518_p10  ;;  %p2525_p3 = por %p2524_p4, %p2523_p1 }
  0x32   : > { %p2526_p6 = pnand %p2525_p3, %p2519_p11 }
  0x34   : > { %2529 = shalt.err (!%p2526_p6)
}
  0x35   : > { %s2530_s27 = scalar_lea.vmem %s2743_s13, 1024  ;;  %s2632_s28 = smov [#allocation7]  }
  0x36   : > { %p2531_p7 = scmp.ne.s32.totalorder %s2743_s13, %s2530_s27  ;;  %s2535_s6 = sshll.u32 %s2632_s28, 4  ;;  %s2536_s6 = int_to_ptr.vmem [resolvable:$false] %s2535_s6 }
  0x37   : > { %s2537_s7 = scalar_lea.vmem %s2536_s6, 2048  ;;  %p2538_p0 = scmp.lt.s32.totalorder %s2743_s13, %s2536_s6 }
  0x38   : > { %p2533_p10 = pnand %p2531_p7, %p2517_p8  ;;  %p2539_p9 = scmp.lt.s32.totalorder %s2537_s7, %s2530_s27 }
  0x3a   : > { %p2534_p2 = pneg %p2533_p10  ;;  %p2540_p12 = por %p2539_p9, %p2538_p0 }
  0x3c   : > { %p2541_p1 = pnand %p2540_p12, %p2534_p2 }
  0x3e   : > { %2544 = shalt.err (!%p2541_p1)
}
  0x3f   : > { %s2633_s8 = smov 128   ;;  %s2634_s9 = smov 8  }
  0x40   : > { %2415 = dma.hbm_to_vmem [thread:$0]  (!%p2747_p5), %s2741_s11, 1024, %s2743_s13, %s2752_s15, %s2633_s8, %s2633_s8, %s2634_s9  }
  0x41   : > { %p132_p3 = scmp.lt.s32.totalorder %s2629_s22, 3  ;;  %p4095_p6 = scmp.ge.s32.totalorder %s2629_s22, 1 }
  0x43   : > { %p133_p8 = pnand %p4095_p6, %p132_p3 }
  0x45   : > { %136 = sbr.rel (%p133_p8) target bundleno = 709 (0x2c5), region = 24 }
  0x4c   : > { %s2784_s10 = sand.u32 1, %s2613_s1  }
  0x4d   : > { %s2300_s12 = sshll.u32 %s2784_s10, 6  ;;  %s139_s16 = scalar_lea.sflag [#allocation8], %s2784_s10 }
  0x4e   : > { %s142_s17 = scalar_lea.vmem [#allocation7], %s2300_s12 }
  0x4f   : > { %2600 = dma.done.wait (%p2719_p13), %s139_s16, 1024  }
  0x50   : > { %2602 = vsyncadd (%p2719_p13), %s139_s16, 4294966272  ;;  %vm203_vm0 = vcmask 179200   ;;  %v2635_v0 = vmov 0.0   ;;  %vm206_vm1 = vcmask 177152   ;;  %vm170_vm2 = vcmask 130048   ;;  %v162_v1 = vld [vmem:[%s142_s17] sm:$0xff] }
  0x51   : > { %204 = vst.msk [vmem:[#allocation2] sm:$0xff] %vm203_vm0, %v2635_v0  ;;  %205 = vst.msk [vmem:[#allocation2 + $0x8] sm:$0xff] %vm203_vm0, %v2635_v0  ;;  %v164_v2 = vld [vmem:[%s142_s17 + $0x10] sm:$0xff]  ;;  %v166_v3 = vld [vmem:[%s142_s17 + $0x20] sm:$0xff]  ;;  %v171_v5 = vsel %vm170_vm2, %v162_v1, -inf  ;;  %v185_v8 = vsel %vm170_vm2, %v162_v1, 0.0 }
  0x52   : > { %208 = vst.msk [vmem:[#allocation3] sm:$0xff] %vm203_vm0, %v2635_v0  ;;  %209 = vst.msk [vmem:[#allocation3 + $0x8] sm:$0xff] %vm203_vm0, %v2635_v0  ;;  %v168_v4 = vld [vmem:[%s142_s17 + $0x30] sm:$0xff]  ;;  %v172_v6 = vsel %vm170_vm2, %v164_v2, -inf  ;;  %v173_v7 = vsel %vm170_vm2, %v166_v3, -inf  ;;  %v163_v9 = vld [vmem:[%s142_s17 + $0x8] sm:$0xff] }
  0x53   : > { %207 = vst.msk [vmem:[#allocation2 + $0x10] sm:$0x3f] %vm206_vm1, %v2635_v0  ;;  %210 = vst.msk [vmem:[#allocation3 + $0x10] sm:$0x3f] %vm206_vm1, %v2635_v0  ;;  %v174_v10 = vmax.f32 %v171_v5, %v173_v7  ;;  %v175_v11 = vsel %vm170_vm2, %v168_v4, -inf  ;;  %v186_v12 = vsel %vm170_vm2, %v164_v2, 0.0 }
  0x54   : > { %v188_v13 = vsel %vm170_vm2, %v166_v3, 0.0  ;;  %v165_v14 = vld [vmem:[%s142_s17 + $0x18] sm:$0xff]  ;;  %v167_v15 = vld [vmem:[%s142_s17 + $0x28] sm:$0xff]  ;;  %v176_v17 = vmax.f32 %v172_v6, %v175_v11  ;;  %v187_v18 = vadd.f32 %v186_v12, %v185_v8  ;;  %v190_v19 = vsel %vm170_vm2, %v168_v4, 0.0  ;;  %s2636_s29 = smov 3   ;;  %s2315_s11 = sld [smem:[#allocation5 + $0x1]] }
  0x55   : > { %v169_v16 = vld [vmem:[%s142_s17 + $0x38] sm:$0xff]  ;;  %v178_v20 = vsel %vm170_vm2, %v163_v9, -inf  ;;  %v179_v21 = vsel %vm170_vm2, %v165_v14, -inf  ;;  %v180_v22 = vsel %vm170_vm2, %v167_v15, -inf  ;;  %v192_v24 = vsel %vm170_vm2, %v163_v9, 0.0  ;;  %s2329_s13 = sld [smem:[#allocation5 + $0x2]] }
  0x56   : > { %v182_v23 = vsel %vm170_vm2, %v169_v16, -inf  ;;  %v177_v25 = vmax.f32 %v174_v10, %v176_v17  ;;  %v189_v26 = vadd.f32 %v188_v13, %v187_v18  ;;  %v181_v27 = vmax.f32 %v178_v20, %v180_v22  ;;  %s2343_s14 = sld [smem:[#allocation5 + $0x3]]  ;;  %s2810_s15 = sld [smem:[#allocation5 + $0x32]] }
  0x57   : > { %v183_v28 = vmax.f32 %v179_v21, %v182_v23  ;;  %v193_v29 = vsel %vm170_vm2, %v165_v14, 0.0  ;;  %v195_v30 = vsel %vm170_vm2, %v167_v15, 0.0  ;;  %v197_v34 = vsel %vm170_vm2, %v169_v16, 0.0  ;;  %s2637_s18 = smov 127   ;;  %s2818_s23 = sld [smem:[#allocation5 + $0x33]] }
  0x58   : > { %213 = vrot.lane.b32.xlu0 %v177_v25, %s2636_s29  ;;  %v191_v31 = vadd.f32 %v190_v19, %v189_v26  ;;  %v194_v33 = vadd.f32 %v193_v29, %v192_v24  ;;  %vm219_vm3 = vcmask 154648   ;;  %s2638_s24 = smov 126   ;;  %s2317_s26 = sld [smem:[#allocation5 + $0x8]]  ;;  %vm294_vm4 = vcmask 1046528  }
  0x59   : > { %v184_v32 = vmax.f32 %v181_v27, %v183_v28  ;;  %s2827_s27 = sld [smem:[#allocation5 + $0x34]]  ;;  %s4080_s28 = smov 125   ;;  %vm329_vm5 = vcmask 1045504   ;;  %vm364_vm6 = vcmask 1044480   ;;  %vm399_vm7 = vcmask 1043456  }
  0x5a   : > { %224 = vrot.lane.b32.xlu1 %v191_v31, %s2636_s29  ;;  %v196_v35 = vadd.f32 %v195_v30, %v194_v33  ;;  %v497_v41 = vstv %s2315_s11  ;;  %s2319_s6 = sld [smem:[#allocation5 + $0xf]]  ;;  %s2321_s7 = sld [smem:[#allocation5 + $0x16]]  ;;  %vm434_vm8 = vcmask 1042432   ;;  %vm469_vm9 = vcmask 1041408  }
  0x5b   : > { %v777_v44 = vstv %s2329_s13  ;;  %s2323_s8 = sld [smem:[#allocation5 + $0x1d]]  ;;  %s2325_s9 = sld [smem:[#allocation5 + $0x24]] }
  0x5c   : > { %215 = vrot.lane.b32.xlu0 %v184_v32, %s2636_s29  ;;  %v198_v36 = vadd.f32 %v197_v34, %v196_v35  ;;  %v1057_v48 = vstv %s2343_s14  ;;  %v511_v49 = vstv %s2810_s15  ;;  %s2327_s12 = sld [smem:[#allocation5 + $0x2b]]  ;;  %s2331_s16 = sld [smem:[#allocation5 + $0x9]] }
  0x5d   : > { %v791_v55 = vstv %s2818_s23  ;;  %s2333_s17 = sld [smem:[#allocation5 + $0x10]]  ;;  %s2337_s11 = sld [smem:[#allocation5 + $0x1e]] }
  0x5e   : > { %226 = vrot.lane.b32.xlu1 %v198_v36, %s2636_s29  ;;  %v525_v59 = vstv %s2317_s26  ;;  %s2335_s29 = sld [smem:[#allocation5 + $0x17]]  ;;  %s2339_s13 = sld [smem:[#allocation5 + $0x25]] }
  0x5f   : > { %v1071_v60 = vstv %s2827_s27  ;;  %s2341_s14 = sld [smem:[#allocation5 + $0x2c]]  ;;  %s2345_s15 = sld [smem:[#allocation5 + $0xa]] }
  0x60   : > { %v567_v2 = vstv %s2319_s6  ;;  %v609_v8 = vstv %s2321_s7  ;;  %s2347_s23 = sld [smem:[#allocation5 + $0x11]]  ;;  %s2320_s27 = sld [smem:[#allocation5 + $0x40]] }
  0x61   : > { %v651_v19 = vstv %s2323_s8  ;;  %v693_v26 = vstv %s2325_s9  ;;  %s2318_s26 = sld [smem:[#allocation5 + $0x39]]  ;;  %s2322_s6 = sld [smem:[#allocation5 + $0x47]] }
  0x62   : > { %v735_v35 = vstv %s2327_s12  ;;  %s2324_s7 = sld [smem:[#allocation5 + $0x4e]]  ;;  %s2326_s8 = sld [smem:[#allocation5 + $0x55]] }
  0x63   : > { %s2328_s9 = sld [smem:[#allocation5 + $0x5c]]  ;;  %s2332_s12 = sld [smem:[#allocation5 + $0x3a]] }
  0x64   : > { %s3082_s2 = sld [smem:[#allocation5 + $0x26]]  ;;  %s3084_s25 = sld [smem:[#allocation5 + $0x2d]] }
  0x65   : > { %p4117_p0 = scmp.ne.s32.totalorder %s4091_s30, 0 }
  0xca   : > { %v214_v37 = vpop.permute.xlu0 %213 }
  0xcb   : > { %220 = vst.msk [vmem:[#allocation2 + $0x3] sm:$0xff] %vm219_vm3, %v214_v37 }
  0xcc   : > { %v225_v38 = vpop.permute.xlu1 %224 }
  0xcd   : > { %230 = vst.msk [vmem:[#allocation3 + $0x3] sm:$0xff] %vm219_vm3, %v225_v38 }
  0xce   : > { %v216_v39 = vpop.permute.xlu0 %215 }
  0xcf   : > { %221 = vst.msk [vmem:[#allocation2 + $0xb] sm:$0xff] %vm219_vm3, %v216_v39 }
  0xd0   : > { %v227_v40 = vpop.permute.xlu1 %226 }
  0xd1   : > { %231 = vst.msk [vmem:[#allocation3 + $0xb] sm:$0xff] %vm219_vm3, %v227_v40 }
  0xd2   : > { %v2808_v42 = vld [vmem:[#allocation2] sm:$0xff] }
  0xd3   : > { %v498_v43 = vmul.f32 %v497_v41, %v2808_v42  ;;  %v778_v46 = vmul.f32 %v777_v44, %v2808_v42  ;;  %v1058_v50 = vmul.f32 %v1057_v48, %v2808_v42  ;;  %v526_v63 = vmul.f32 %v525_v59, %v2808_v42 }
  0xd4   : > { %v2825_v52 = vld [vmem:[#allocation3] sm:$0xff]  ;;  %v568_v7 = vmul.f32 %v567_v2, %v2808_v42  ;;  %v610_v15 = vmul.f32 %v609_v8, %v2808_v42  ;;  %v652_v25 = vmul.f32 %v651_v19, %v2808_v42  ;;  %v694_v33 = vmul.f32 %v693_v26, %v2808_v42 }
  0xd5   : > { %502 = vrot.lane.b32.xlu0 %v498_v43, %s2637_s18  ;;  %v512_v53 = vmul.f32 %v511_v49, %v2825_v52  ;;  %v792_v57 = vmul.f32 %v791_v55, %v2825_v52  ;;  %v1072_v0 = vmul.f32 %v1071_v60, %v2825_v52  ;;  %v532_v6 = vrot.slane %v526_v63, 1 }
  0xd6   : > { %v2814_v45 = vld [vmem:[#allocation2 + $0x8] sm:$0xff]  ;;  %v2842_v62 = vld [vmem:[#allocation2 + $0x10] sm:$0x3f]  ;;  %v574_v16 = vrot.slane %v568_v7, 2  ;;  %v616_v24 = vrot.slane %v610_v15, 3  ;;  %v658_v34 = vrot.slane %v652_v25, 4 }
  0xd7   : > { %v499_v47 = vmul.f32 %v497_v41, %v2814_v45  ;;  %v779_v51 = vmul.f32 %v777_v44, %v2814_v45  ;;  %v1059_v54 = vmul.f32 %v1057_v48, %v2814_v45  ;;  %v527_v61 = vmul.f32 %v525_v59, %v2814_v45 }
  0xd8   : > { %v2836_v56 = vld [vmem:[#allocation3 + $0x8] sm:$0xff]  ;;  %v569_v4 = vmul.f32 %v567_v2, %v2814_v45  ;;  %v528_v5 = vmul.f32 %v525_v59, %v2842_v62  ;;  %v611_v10 = vmul.f32 %v609_v8, %v2814_v45  ;;  %v570_v11 = vmul.f32 %v567_v2, %v2842_v62 }
  0xd9   : > { %782 = vrot.lane.b32.xlu0 %v778_v46, %s2638_s24  ;;  %504 = vrot.lane.b32.xlu1 %v499_v47, %s2637_s18  ;;  %v513_v58 = vmul.f32 %v511_v49, %v2836_v56  ;;  %v793_v1 = vmul.f32 %v791_v55, %v2836_v56  ;;  %v533_v3 = vrot.slane %v527_v61, 1  ;;  %v1073_v9 = vmul.f32 %v1071_v60, %v2836_v56 }
  0xda   : > { %v575_v13 = vrot.slane %v569_v4, 2  ;;  %v535_v14 = vrot.slane %v528_v5, 1  ;;  %v617_v17 = vrot.slane %v611_v10, 3  ;;  %v577_v18 = vrot.slane %v570_v11, 2 }
  0xdb   : > { %v534_v12 = vsel %vm294_vm4, %v532_v6, %v533_v3  ;;  %v653_v22 = vmul.f32 %v651_v19, %v2814_v45  ;;  %v612_v23 = vmul.f32 %v609_v8, %v2842_v62  ;;  %v695_v28 = vmul.f32 %v693_v26, %v2814_v45 }
  0xdc   : > { %v576_v20 = vsel %vm329_vm5, %v574_v16, %v575_v13  ;;  %v536_v21 = vsel %vm294_vm4, %v533_v3, %v535_v14  ;;  %v618_v27 = vsel %vm364_vm6, %v616_v24, %v617_v17  ;;  %v578_v29 = vsel %vm329_vm5, %v575_v13, %v577_v18 }
  0xdd   : > { %1062 = vrot.lane.b32.xlu0 %v1058_v50, %s4080_s28  ;;  %784 = vrot.lane.b32.xlu1 %v779_v51, %s2638_s24  ;;  %v659_v30 = vrot.slane %v653_v22, 4  ;;  %v619_v31 = vrot.slane %v612_v23, 3  ;;  %v654_v32 = vmul.f32 %v651_v19, %v2842_v62  ;;  %v701_v36 = vrot.slane %v695_v28, 5 }
  0xde   : > { %v737_v37 = vmul.f32 %v735_v35, %v2814_v45  ;;  %v696_v41 = vmul.f32 %v693_v26, %v2842_v62  ;;  %v700_v43 = vrot.slane %v694_v33, 5  ;;  %v736_v44 = vmul.f32 %v735_v35, %v2808_v42 }
  0xdf   : > { %v660_v38 = vsel %vm399_vm7, %v658_v34, %v659_v30  ;;  %v620_v39 = vsel %vm364_vm6, %v617_v17, %v619_v31  ;;  %v661_v40 = vrot.slane %v654_v32, 4  ;;  %v805_v48 = vstv %s2331_s16  ;;  %s2334_s16 = sld [smem:[#allocation5 + $0x41]] }
  0xe0   : > { %v702_v46 = vsel %vm434_vm8, %v700_v43, %v701_v36  ;;  %v743_v47 = vrot.slane %v737_v37, 6  ;;  %v703_v50 = vrot.slane %v696_v41, 5  ;;  %v807_v51 = vmul.f32 %v805_v48, %v2814_v45 }
  0xe1   : > { %516 = vrot.lane.b32.xlu0 %v512_v53, %s2637_s18  ;;  %1064 = vrot.lane.b32.xlu1 %v1059_v54, %s4080_s28  ;;  %v662_v49 = vsel %vm399_vm7, %v659_v30, %v661_v40  ;;  %v738_v53 = vmul.f32 %v735_v35, %v2842_v62  ;;  %v742_v54 = vrot.slane %v736_v44, 6  ;;  %v806_v55 = vmul.f32 %v805_v48, %v2808_v42 }
  0xe2   : > { %v704_v60 = vsel %vm434_vm8, %v701_v36, %v703_v50  ;;  %v813_v61 = vrot.slane %v807_v51, 1  ;;  %v889_v3 = vstv %s2335_s29  ;;  %v931_v14 = vstv %s2337_s11  ;;  %s2338_s29 = sld [smem:[#allocation5 + $0x4f]]  ;;  %s2996_s11 = sld [smem:[#allocation5]] }
  0xe3   : > { %v745_v63 = vrot.slane %v738_v53, 6  ;;  %v812_v2 = vrot.slane %v806_v55, 1  ;;  %v891_v5 = vmul.f32 %v889_v3, %v2814_v45  ;;  %v890_v11 = vmul.f32 %v889_v3, %v2808_v42 }
  0xe4   : > { %v933_v17 = vmul.f32 %v931_v14, %v2814_v45  ;;  %v892_v18 = vmul.f32 %v889_v3, %v2842_v62  ;;  %v1015_v30 = vstv %s2341_s14  ;;  %v1085_v41 = vstv %s2345_s15  ;;  %s3001_s14 = sld [smem:[#allocation5 + $0x7]]  ;;  %s3003_s15 = sld [smem:[#allocation5 + $0x5d]] }
  0xe5   : > { %796 = vrot.lane.b32.xlu0 %v792_v57, %s2638_s24  ;;  %518 = vrot.lane.b32.xlu1 %v513_v58, %s2637_s18  ;;  %v847_v57 = vstv %s2333_s17  ;;  %v744_v58 = vsel %vm469_vm9, %v742_v54, %v743_v47  ;;  %v814_v6 = vsel %vm294_vm4, %v812_v2, %v813_v61  ;;  %v746_v7 = vsel %vm469_vm9, %v743_v47, %v745_v63  ;;  %s2336_s17 = sld [smem:[#allocation5 + $0x48]] }
  0xe6   : > { %v849_v59 = vmul.f32 %v847_v57, %v2814_v45  ;;  %v897_v13 = vrot.slane %v891_v5, 3  ;;  %v896_v19 = vrot.slane %v890_v11, 3  ;;  %v939_v25 = vrot.slane %v933_v17, 4 }
  0xe7   : > { %v899_v26 = vrot.slane %v892_v18, 3  ;;  %v1017_v32 = vmul.f32 %v1015_v30, %v2814_v45  ;;  %v1018_v47 = vmul.f32 %v1015_v30, %v2842_v62  ;;  %v1127_v50 = vstv %s2347_s23  ;;  %s3009_s23 = sld [smem:[#allocation5 + $0x31]] }
  0xe8   : > { %v855_v4 = vrot.slane %v849_v59, 2  ;;  %v898_v22 = vsel %vm364_vm6, %v896_v19, %v897_v13  ;;  %v1129_v53 = vmul.f32 %v1127_v50, %v2814_v45  ;;  %v546_v54 = vstv %s2318_s26  ;;  %s3011_s26 = sld [smem:[#allocation5 + $0xe]] }
  0xe9   : > { %1076 = vrot.lane.b32.xlu0 %v1072_v0, %s4080_s28  ;;  %798 = vrot.lane.b32.xlu1 %v793_v1, %s2638_s24  ;;  %v808_v0 = vmul.f32 %v805_v48, %v2842_v62  ;;  %v848_v1 = vmul.f32 %v847_v57, %v2808_v42  ;;  %v900_v34 = vsel %vm364_vm6, %v897_v13, %v899_v26  ;;  %v1023_v40 = vrot.slane %v1017_v32, 6 }
  0xea   : > { %v1088_v59 = vmul.f32 %v1085_v41, %v2842_v62  ;;  %v1135_v63 = vrot.slane %v1129_v53, 2  ;;  %v588_v2 = vstv %s2320_s27  ;;  %v672_v18 = vstv %s2324_s7  ;;  %s3015_s27 = sld [smem:[#allocation5 + $0x15]]  ;;  %s3019_s7 = sld [smem:[#allocation5 + $0x38]] }
  0xeb   : > { %v815_v8 = vrot.slane %v808_v0, 1  ;;  %v854_v10 = vrot.slane %v848_v1, 2  ;;  %v547_v0 = vmul.f32 %v546_v54, %v2825_v52  ;;  %v548_v1 = vmul.f32 %v546_v54, %v2836_v56 }
  0xec   : > { %v1095_v5 = vrot.slane %v1088_v59, 1  ;;  %v589_v13 = vmul.f32 %v588_v2, %v2825_v52 }
  0xed   : > { %537 = vrot.lane.b32.xlu0 %v534_v12, %s2637_s18  ;;  %1078 = vrot.lane.b32.xlu1 %v1073_v9, %s4080_s28  ;;  %v850_v9 = vmul.f32 %v847_v57, %v2842_v62  ;;  %v856_v12 = vsel %vm329_vm5, %v854_v10, %v855_v4  ;;  %v816_v15 = vsel %vm294_vm4, %v813_v61, %v815_v8  ;;  %v630_v8 = vstv %s2322_s6  ;;  %s3017_s6 = sld [smem:[#allocation5 + $0x1c]] }
  0xee   : > { %v553_v11 = vrot.slane %v547_v0, 1 }
  0xef   : > { %v857_v16 = vrot.slane %v850_v9, 2  ;;  %v2945_v9 = vld [vmem:[#allocation3 + $0x10] sm:$0x3f] }
  0xf0   : > { %v549_v17 = vmul.f32 %v546_v54, %v2945_v9  ;;  %v591_v26 = vmul.f32 %v588_v2, %v2945_v9 }
  0xf1   : > { %579 = vrot.lane.b32.xlu0 %v576_v20, %s2637_s18  ;;  %539 = vrot.lane.b32.xlu1 %v536_v21, %s2637_s18  ;;  %v932_v20 = vmul.f32 %v931_v14, %v2808_v42  ;;  %v973_v21 = vstv %s2339_s13  ;;  %v858_v24 = vsel %vm329_vm5, %v855_v4, %v857_v16  ;;  %v590_v16 = vmul.f32 %v588_v2, %v2836_v56  ;;  %s2998_s13 = sld [smem:[#allocation5 + $0x56]] }
  0xf2   : > { %v975_v23 = vmul.f32 %v973_v21, %v2814_v45  ;;  %v974_v28 = vmul.f32 %v973_v21, %v2808_v42  ;;  %v976_v36 = vmul.f32 %v973_v21, %v2842_v62  ;;  %v631_v21 = vmul.f32 %v630_v8, %v2825_v52 }
  0xf4   : > { %v981_v31 = vrot.slane %v975_v23, 5  ;;  %v980_v37 = vrot.slane %v974_v28, 5  ;;  %v983_v44 = vrot.slane %v976_v36, 5  ;;  %v637_v28 = vrot.slane %v631_v21, 3 }
  0xf5   : > { %621 = vrot.lane.b32.xlu0 %v618_v27, %s2637_s18  ;;  %581 = vrot.lane.b32.xlu1 %v578_v29, %s2637_s18  ;;  %v934_v27 = vmul.f32 %v931_v14, %v2842_v62  ;;  %v938_v29 = vrot.slane %v932_v20, 4  ;;  %v595_v20 = vrot.slane %v589_v13, 2  ;;  %v756_v36 = vstv %s2328_s9  ;;  %s3032_s9 = sld [smem:[#allocation5 + $0x2a]] }
  0xf6   : > { %v984_v55 = vsel %vm434_vm8, %v981_v31, %v983_v44 }
  0xf7   : > { %v940_v33 = vsel %vm399_vm7, %v938_v29, %v939_v25  ;;  %v941_v35 = vrot.slane %v934_v27, 4  ;;  %v714_v27 = vstv %s2326_s8  ;;  %s3021_s8 = sld [smem:[#allocation5 + $0x3b]] }
  0xf8   : > { %v716_v44 = vmul.f32 %v714_v27, %v2836_v56 }
  0xf9   : > { %663 = vrot.lane.b32.xlu0 %v660_v38, %s2637_s18  ;;  %623 = vrot.lane.b32.xlu1 %v620_v39, %s2637_s18  ;;  %v1016_v38 = vmul.f32 %v1015_v30, %v2808_v42  ;;  %v982_v39 = vsel %vm434_vm8, %v980_v37, %v981_v31  ;;  %v942_v43 = vsel %vm399_vm7, %v939_v25, %v941_v35  ;;  %v556_v25 = vrot.slane %v549_v17, 1 }
  0xfa   : > { %v673_v30 = vmul.f32 %v672_v18, %v2825_v52  ;;  %v674_v31 = vmul.f32 %v672_v18, %v2836_v56  ;;  %v633_v35 = vmul.f32 %v630_v8, %v2945_v9  ;;  %v722_v54 = vrot.slane %v716_v44, 5 }
  0xfb   : > { %v1022_v48 = vrot.slane %v1016_v38, 6  ;;  %v281_v44 = vstv %s3009_s23  ;;  %s3449_s23 = sld [smem:[#allocation5 + $0x4a]] }
  0xfc   : > { %v679_v38 = vrot.slane %v673_v30, 4 }
  0xfd   : > { %705 = vrot.lane.b32.xlu0 %v702_v46, %s2637_s18  ;;  %665 = vrot.lane.b32.xlu1 %v662_v49, %s2637_s18  ;;  %v1087_v46 = vmul.f32 %v1085_v41, %v2814_v45  ;;  %v1086_v49 = vmul.f32 %v1085_v41, %v2808_v42  ;;  %v1024_v51 = vsel %vm469_vm9, %v1022_v48, %v1023_v40 }
  0xff   : > { %v1093_v57 = vrot.slane %v1087_v46, 1  ;;  %v1092_v61 = vrot.slane %v1086_v49, 1  ;;  %v675_v46 = vmul.f32 %v672_v18, %v2945_v9  ;;  %v952_v18 = vstv %s2338_s29  ;;  %s3048_s29 = sld [smem:[#allocation5 + $0x42]] }
 0x101   : > { %747 = vrot.lane.b32.xlu0 %v744_v58, %s2637_s18  ;;  %707 = vrot.lane.b32.xlu1 %v704_v60, %s2637_s18  ;;  %v1025_v58 = vrot.slane %v1018_v47, 6  ;;  %v1128_v60 = vmul.f32 %v1127_v50, %v2808_v42  ;;  %v1094_v3 = vsel %vm294_vm4, %v1092_v61, %v1093_v57  ;;  %v1096_v14 = vsel %vm294_vm4, %v1093_v57, %v1095_v5 }
 0x102   : > { %v826_v47 = vstv %s2332_s12  ;;  %v717_v57 = vmul.f32 %v714_v27, %v2945_v9  ;;  %s3036_s12 = sld [smem:[#allocation5 + $0x3f]] }
 0x103   : > { %v1026_v4 = vsel %vm469_vm9, %v1023_v40, %v1025_v58  ;;  %v715_v40 = vmul.f32 %v714_v27, %v2825_v52  ;;  %v868_v58 = vstv %s2334_s16  ;;  %v827_v61 = vmul.f32 %v826_v47, %v2825_v52  ;;  %s3038_s16 = sld [smem:[#allocation5 + $0x46]] }
 0x104   : > { %v724_v2 = vrot.slane %v717_v57, 5  ;;  %v829_v13 = vmul.f32 %v826_v47, %v2945_v9 }
 0x105   : > { %817 = vrot.lane.b32.xlu0 %v814_v6, %s2638_s24  ;;  %749 = vrot.lane.b32.xlu1 %v746_v7, %s2637_s18  ;;  %v1130_v6 = vmul.f32 %v1127_v50, %v2842_v62  ;;  %v1134_v7 = vrot.slane %v1128_v60, 2  ;;  %v721_v49 = vrot.slane %v715_v40, 5  ;;  %v757_v50 = vmul.f32 %v756_v36, %v2825_v52 }
 0x106   : > { %v836_v21 = vrot.slane %v829_v13, 1 }
 0x107   : > { %v1136_v10 = vsel %vm329_vm5, %v1134_v7, %v1135_v63  ;;  %v763_v59 = vrot.slane %v757_v50, 6  ;;  %v723_v0 = vsel %vm434_vm8, %v721_v49, %v722_v54  ;;  %v3079_v49 = vstv %s3017_s6  ;;  %s3118_s6 = sld [smem:[#allocation5 + $0x50]] }
 0x108   : > { %v1106_v50 = vstv %s3021_s8  ;;  %s3142_s8 = sld [smem:[#allocation5 + $0x57]] }
 0x109   : > { %859 = vrot.lane.b32.xlu0 %v856_v12, %s2638_s24  ;;  %819 = vrot.lane.b32.xlu1 %v816_v15, %s2638_s24  ;;  %v554_v12 = vrot.slane %v548_v1, 1  ;;  %v1137_v15 = vrot.slane %v1130_v6, 2  ;;  %v833_v6 = vrot.slane %v827_v61, 1 }
 0x10b   : > { %v555_v19 = vsel %vm294_vm4, %v553_v11, %v554_v12  ;;  %v1138_v23 = vsel %vm329_vm5, %v1135_v63, %v1137_v15  ;;  %v828_v63 = vmul.f32 %v826_v47, %v2836_v56  ;;  %v3073_v47 = vstv %s3019_s7  ;;  %s3120_s7 = sld [smem:[#allocation5 + $0xb]] }
 0x10d   : > { %901 = vrot.lane.b32.xlu0 %v898_v22, %s2638_s24  ;;  %861 = vrot.lane.b32.xlu1 %v858_v24, %s2638_s24  ;;  %v632_v22 = vmul.f32 %v630_v8, %v2836_v56  ;;  %v596_v24 = vrot.slane %v590_v16, 2  ;;  %v834_v7 = vrot.slane %v828_v63, 1  ;;  %v869_v8 = vmul.f32 %v868_v58, %v2825_v52 }
 0x10f   : > { %v638_v29 = vrot.slane %v632_v22, 3  ;;  %v597_v32 = vsel %vm329_vm5, %v595_v20, %v596_v24  ;;  %v835_v15 = vsel %vm294_vm4, %v833_v6, %v834_v7  ;;  %v875_v16 = vrot.slane %v869_v8, 2 }
 0x110   : > { %v871_v22 = vmul.f32 %v868_v58, %v2945_v9 }
 0x111   : > { %943 = vrot.lane.b32.xlu0 %v940_v33, %s2638_s24  ;;  %903 = vrot.lane.b32.xlu1 %v900_v34, %s2638_s24  ;;  %v557_v33 = vsel %vm294_vm4, %v554_v12, %v556_v25  ;;  %v598_v34 = vrot.slane %v591_v26, 2  ;;  %v639_v37 = vsel %vm364_vm6, %v637_v28, %v638_v29  ;;  %v870_v12 = vmul.f32 %v868_v58, %v2836_v56 }
 0x112   : > { %v953_v25 = vmul.f32 %v952_v18, %v2825_v52  ;;  %v3025_v26 = vmul.f32 %v952_v18, %v2836_v56  ;;  %v878_v30 = vrot.slane %v871_v22, 2 }
 0x113   : > { %v599_v41 = vsel %vm329_vm5, %v596_v24, %v598_v34  ;;  %v876_v20 = vrot.slane %v870_v12, 2  ;;  %v1036_v34 = vstv %s3003_s15  ;;  %s3068_s15 = sld [smem:[#allocation5 + $0x18]] }
 0x114   : > { %v3092_v57 = vmul.f32 %v1036_v34, %v2836_v56 }
 0x115   : > { %985 = vrot.lane.b32.xlu0 %v982_v39, %s2638_s24  ;;  %945 = vrot.lane.b32.xlu1 %v942_v43, %s2638_s24  ;;  %v680_v39 = vrot.slane %v674_v31, 4  ;;  %v640_v43 = vrot.slane %v633_v35, 3  ;;  %v877_v28 = vsel %vm329_vm5, %v875_v16, %v876_v20  ;;  %v994_v31 = vstv %s2998_s13  ;;  %s3053_s13 = sld [smem:[#allocation5 + $0x54]] }
 0x116   : > { %v995_v40 = vmul.f32 %v994_v31, %v2825_v52  ;;  %v997_v61 = vmul.f32 %v994_v31, %v2945_v9  ;;  %v1044_v8 = vrot.slane %v3092_v57, 6 }
 0x117   : > { %v681_v48 = vsel %vm399_vm7, %v679_v38, %v680_v39  ;;  %v641_v53 = vsel %vm364_vm6, %v638_v29, %v640_v43  ;;  %v837_v29 = vsel %vm294_vm4, %v834_v7, %v836_v21  ;;  %v955_v43 = vmul.f32 %v952_v18, %v2945_v9 }
 0x118   : > { %v1001_v58 = vrot.slane %v995_v40, 5  ;;  %v3152_v21 = vstv %s3084_s25  ;;  %s3391_s25 = sld [smem:[#allocation5 + $0x19]] }
 0x119   : > { %1027 = vrot.lane.b32.xlu0 %v1024_v51, %s2638_s24  ;;  %987 = vrot.lane.b32.xlu1 %v984_v55, %s2638_s24  ;;  %v758_v51 = vmul.f32 %v756_v36, %v2836_v56  ;;  %v682_v55 = vrot.slane %v675_v46, 4  ;;  %v3066_v46 = vstv %s3011_s26  ;;  %s3104_s26 = sld [smem:[#allocation5 + $0x49]]  ;;  %v1169_v18 = vstv %s3068_s15  ;;  %s3683_s15 = sld [smem:[#allocation5 + $0x5f]] }
 0x11b   : > { %v764_v60 = vrot.slane %v758_v51, 6  ;;  %v683_v1 = vsel %vm399_vm7, %v680_v39, %v682_v55  ;;  %v879_v39 = vsel %vm329_vm5, %v876_v20, %v878_v30  ;;  %v1037_v55 = vmul.f32 %v1036_v34, %v2825_v52 }
 0x11c   : > { %v3135_v16 = vstv %s3053_s13  ;;  %v3149_v20 = vstv %s3082_s2  ;;  %s4098_s2 = smov 125   ;;  %s3646_s13 = sld [smem:[#allocation5 + $0x58]] }
 0x11d   : > { %1097 = vrot.lane.b32.xlu0 %v1094_v3, %s4080_s28  ;;  %1029 = vrot.lane.b32.xlu1 %v1026_v4, %s2638_s24  ;;  %v759_v3 = vmul.f32 %v756_v36, %v2945_v9  ;;  %v910_v4 = vstv %s2336_s17  ;;  %v765_v5 = vsel %vm469_vm9, %v763_v59, %v764_v60  ;;  %s3045_s17 = sld [smem:[#allocation5 + $0x4d]]  ;;  %v959_v36 = vrot.slane %v953_v25, 4 }
 0x11e   : > { %v912_v17 = vmul.f32 %v910_v4, %v2836_v56  ;;  %v913_v27 = vmul.f32 %v910_v4, %v2945_v9  ;;  %v1043_v7 = vrot.slane %v1037_v55, 6 }
 0x11f   : > { %v766_v11 = vrot.slane %v759_v3, 6 }
 0x120   : > { %v918_v24 = vrot.slane %v912_v17, 3  ;;  %v920_v38 = vrot.slane %v913_v27, 3 }
 0x121   : > { %1139 = vrot.lane.b32.xlu0 %v1136_v10, %s4080_s28  ;;  %1099 = vrot.lane.b32.xlu1 %v1096_v14, %s4080_s28  ;;  %v725_v10 = vsel %vm434_vm8, %v722_v54, %v724_v2  ;;  %v911_v14 = vmul.f32 %v910_v4, %v2825_v52  ;;  %v3112_v2 = vstv %s3038_s16  ;;  %v1148_v4 = vstv %s3048_s29  ;;  %s3594_s16 = sld [smem:[#allocation5 + $0x20]]  ;;  %s3638_s29 = sld [smem:[#allocation5 + $0x27]] }
 0x122   : > { %v921_v54 = vsel %vm364_vm6, %v918_v24, %v920_v38  ;;  %v1149_v27 = vmul.f32 %v1148_v4, %v2825_v52  ;;  %v1150_v30 = vmul.f32 %v1148_v4, %v2836_v56  ;;  %v3179_v38 = vstv %s3118_s6  ;;  %s3724_s6 = sld [smem:[#allocation5 + $0x36]] }
 0x123   : > { %v3115_v3 = vstv %s3045_s17  ;;  %s3600_s17 = sld [smem:[#allocation5 + $0x51]] }
 0x124   : > { %v1156_v57 = vrot.slane %v1150_v30, 2 }
 0x125   : > { %558 = vrot.lane.b32.xlu0 %v555_v19, %s2637_s18  ;;  %1141 = vrot.lane.b32.xlu1 %v1138_v23, %s4080_s28  ;;  %v767_v19 = vsel %vm469_vm9, %v764_v60, %v766_v11  ;;  %v917_v23 = vrot.slane %v911_v14, 3  ;;  %s3070_s28 = sld [smem:[#allocation5 + $0x1f]]  ;;  %v962_v60 = vrot.slane %v955_v43, 4  ;;  %v3129_v11 = vmul.f32 %v1106_v50, %v2836_v56 }
 0x126   : > { %v1004_v14 = vrot.slane %v997_v61, 5  ;;  %v306_v61 = vmul.f32 %v3073_v47, %v2825_v52 }
 0x127   : > { %v919_v35 = vsel %vm364_vm6, %v917_v23, %v918_v24  ;;  %v1045_v24 = vsel %vm469_vm9, %v1043_v7, %v1044_v8  ;;  %v3204_v7 = vmul.f32 %v3073_v47, %v2836_v56 }
 0x129   : > { %600 = vrot.lane.b32.xlu0 %v597_v32, %s2637_s18  ;;  %560 = vrot.lane.b32.xlu1 %v557_v33, %s2637_s18  ;;  %v4083_v32 = vstv %s2996_s11  ;;  %v3043_v33 = vstv %s3001_s14  ;;  %s3055_s14 = sld [smem:[#allocation5 + $0x5b]] }
 0x12a   : > { %v3186_v40 = vmul.f32 %v3043_v33, %v2814_v45 }
 0x12d   : > { %642 = vrot.lane.b32.xlu0 %v639_v37, %s2637_s18  ;;  %602 = vrot.lane.b32.xlu1 %v599_v41, %s2637_s18  ;;  %v960_v37 = vrot.slane %v3025_v26, 4  ;;  %v3059_v41 = vmul.f32 %v994_v31, %v2836_v56  ;;  %v1114_v26 = vrot.slane %v3129_v11, 1  ;;  %v1109_v31 = vmul.f32 %v1106_v50, %v2945_v9 }
 0x12e   : > { %v1170_v11 = vmul.f32 %v1169_v18, %v2808_v42 }
 0x12f   : > { %v1002_v59 = vrot.slane %v3059_v41, 5  ;;  %v963_v13 = vsel %vm399_vm7, %v960_v37, %v962_v60  ;;  %v3138_v17 = vstv %s3055_s14  ;;  %v288_v60 = vmul.f32 %v3043_v33, %v2808_v42  ;;  %s3672_s14 = sld [smem:[#allocation5 + $0x2e]] }
 0x131   : > { %684 = vrot.lane.b32.xlu0 %v681_v48, %s2637_s18  ;;  %644 = vrot.lane.b32.xlu1 %v641_v53, %s2637_s18  ;;  %v3076_v48 = vstv %s3015_s27  ;;  %v961_v53 = vsel %vm399_vm7, %v959_v36, %v960_v37  ;;  %s3106_s27 = sld [smem:[#allocation5 + $0x4]]  ;;  %v1003_v12 = vsel %vm434_vm8, %v1001_v58, %v1002_v59  ;;  %v276_v36 = vmul.f32 %v4083_v32, %v2808_v42 }
 0x132   : > { %v282_v37 = vmul.f32 %v281_v44, %v2825_v52  ;;  %v1116_v58 = vrot.slane %v1109_v31, 1  ;;  %v1172_v31 = vmul.f32 %v1169_v18, %v2842_v62 }
 0x135   : > { %726 = vrot.lane.b32.xlu0 %v723_v0, %s2637_s18  ;;  %686 = vrot.lane.b32.xlu1 %v683_v1, %s2637_s18  ;;  %v3100_v0 = vstv %s3032_s9  ;;  %v3109_v1 = vstv %s3036_s12  ;;  %s3156_s9 = sld [smem:[#allocation5 + $0x12]]  ;;  %s2640_s12 = smov 124  }
 0x136   : > { %v3264_v32 = vmul.f32 %v3109_v1, %v2836_v56 }
 0x139   : > { %768 = vrot.lane.b32.xlu0 %v765_v5, %s2637_s18  ;;  %728 = vrot.lane.b32.xlu1 %v725_v10, %s2637_s18  ;;  %v1107_v10 = vmul.f32 %v1106_v50, %v2825_v52 }
 0x13b   : > { %v1113_v25 = vrot.slane %v1107_v10, 1  ;;  %v3209_v10 = vstv %s3142_s8  ;;  %s3738_s8 = sld [smem:[#allocation5 + $0x13]] }
 0x13d   : > { %838 = vrot.lane.b32.xlu0 %v835_v15, %s2638_s24  ;;  %770 = vrot.lane.b32.xlu1 %v767_v19, %s2637_s18  ;;  %s3030_s18 = sld [smem:[#allocation5 + $0x23]]  ;;  %v1039_v15 = vmul.f32 %v1036_v34, %v2945_v9  ;;  %v3146_v19 = vstv %s3070_s28  ;;  %v1190_v34 = vstv %s3104_s26  ;;  %v1115_v50 = vsel %vm294_vm4, %v1113_v25, %v1114_v26  ;;  %s3431_s28 = sld [smem:[#allocation5 + $0x3c]] }
 0x13e   : > { %v1191_v25 = vmul.f32 %v1190_v34, %v2825_v52  ;;  %s3711_s26 = sld [smem:[#allocation5 + $0x5]] }
 0x141   : > { %880 = vrot.lane.b32.xlu0 %v877_v28, %s2638_s24  ;;  %840 = vrot.lane.b32.xlu1 %v837_v29, %s2638_s24  ;;  %v1005_v28 = vsel %vm434_vm8, %v1002_v59, %v1004_v14  ;;  %v1046_v29 = vrot.slane %v1039_v15, 6  ;;  %v1151_v59 = vmul.f32 %v1148_v4, %v2945_v9 }
 0x143   : > { %v3097_v63 = vstv %s3030_s18  ;;  %s3154_s18 = sld [smem:[#allocation5 + $0x5e]]  ;;  %v1047_v55 = vsel %vm469_vm9, %v1044_v8, %v1046_v29  ;;  %v284_v8 = vadd.f32 %v282_v37, %v276_v36  ;;  %v1117_v29 = vsel %vm294_vm4, %v1114_v26, %v1116_v58 }
 0x144   : > { %v1158_v30 = vrot.slane %v1151_v59, 2  ;;  %v295_v36 = vrot.slane %v288_v60, 1  ;;  %v312_v37 = vrot.slane %v306_v61, 1  ;;  %v3244_v26 = vmul.f32 %v3109_v1, %v2825_v52 }
 0x145   : > { %922 = vrot.lane.b32.xlu0 %v919_v35, %s2638_s24  ;;  %882 = vrot.lane.b32.xlu1 %v879_v39, %s2638_s24  ;;  %v3182_v39 = vstv %s3120_s7  ;;  %v1197_v60 = vrot.slane %v1191_v25, 3  ;;  %v3268_v25 = vmul.f32 %v3076_v48, %v2808_v42  ;;  %s2374_s7 = sld [smem:[#allocation5 + $0x3d]] }
 0x146   : > { %v1159_v35 = vsel %vm329_vm5, %v1156_v57, %v1158_v30 }
 0x147   : > { %v3086_v51 = vpop.permute.xlu0 %502 }
 0x149   : > { %964 = vrot.lane.b32.xlu0 %v961_v53, %s2638_s24  ;;  %924 = vrot.lane.b32.xlu1 %v921_v54, %s2638_s24  ;;  %v1155_v53 = vrot.slane %v1149_v27, 2  ;;  %v3194_v54 = vmul.f32 %v1169_v18, %v2814_v45  ;;  %v3213_v4 = vstv %s3154_s18  ;;  %v3226_v27 = vmul.f32 %v1190_v34, %v2836_v56  ;;  %s3746_s18 = sld [smem:[#allocation5 + $0x44]] }
 0x14a   : > { %v290_v18 = vmul.f32 %v3043_v33, %v2842_v62  ;;  %v1179_v33 = vrot.slane %v1172_v31, 3  ;;  %v308_v31 = vmul.f32 %v3073_v47, %v2945_v9  ;;  %v1234_v47 = vmul.f32 %v3179_v38, %v2836_v56 }
 0x14b   : > { %v3122_v5 = vpop.permute.xlu1 %504  ;;  %v3124_v6 = vpop.permute.xlu0 %782  ;;  %v1198_v61 = vrot.slane %v3226_v27, 3 }
 0x14c   : > { %v298_v30 = vrot.slane %v290_v18, 1 }
 0x14d   : > { %1006 = vrot.lane.b32.xlu0 %v1003_v12, %s2638_s24  ;;  %966 = vrot.lane.b32.xlu1 %v963_v13, %s2638_s24  ;;  %v3216_v12 = vstv %s3156_s9  ;;  %v296_v13 = vrot.slane %v3186_v40, 1  ;;  %v4084_v40 = vrot.slane %v3204_v7, 1  ;;  %s2641_s9 = smov 123  }
 0x14f   : > { %v3158_v22 = vpop.permute.xlu1 %784  ;;  %v3160_v23 = vpop.permute.xlu0 %1062 }
 0x150   : > { %4096 = vst [vmem:[#allocation15_spill] sm:$0xff] %v3160_v23 }
 0x151   : > { %1048 = vrot.lane.b32.xlu0 %v1045_v24, %s2638_s24  ;;  %1008 = vrot.lane.b32.xlu1 %v1005_v28, %s2638_s24  ;;  %v1177_v24 = vrot.slane %v3194_v54, 3  ;;  %v1157_v28 = vsel %vm329_vm5, %v1155_v53, %v1156_v57  ;;  %v3240_v53 = vmul.f32 %v3066_v46, %v2814_v45  ;;  %v1176_v54 = vrot.slane %v1170_v11, 3 }
 0x152   : > { %v1193_v11 = vmul.f32 %v1190_v34, %v2945_v9  ;;  %v1212_v57 = vmul.f32 %v3146_v19, %v2808_v42  ;;  %v3276_v34 = vmul.f32 %v3076_v48, %v2814_v45 }
 0x153   : > { %v3188_v41 = vpop.permute.xlu1 %1064  ;;  %v3190_v43 = vpop.permute.xlu0 %516 }
 0x154   : > { %4097 = vst [vmem:[#allocation16_spill] sm:$0xff] %v3188_v41  ;;  %v1200_v18 = vrot.slane %v1193_v11, 3  ;;  %v348_v11 = vrot.slane %v3264_v32, 2 }
 0x155   : > { %1118 = vrot.lane.b32.xlu0 %v1115_v50, %s4098_s2  ;;  %1050 = vrot.lane.b32.xlu1 %v1047_v55, %s2638_s24  ;;  %v3234_v50 = vmul.f32 %v3066_v46, %v2808_v42  ;;  %v297_v55 = vsel %vm294_vm4, %v295_v36, %v296_v13  ;;  %s3405_s24 = sld [smem:[#allocation5 + $0x35]] }
 0x156   : > { %v302_v27 = vadd.f32 %v297_v55, %v284_v8  ;;  %v1233_v8 = vmul.f32 %v3179_v38, %v2825_v52  ;;  %v1180_v55 = vsel %vm364_vm6, %v1177_v24, %v1179_v33  ;;  %v347_v33 = vrot.slane %v3244_v26, 2 }
 0x157   : > { %v3219_v14 = vpop.permute.xlu1 %518  ;;  %v3221_v15 = vpop.permute.xlu0 %796  ;;  %v330_v36 = vrot.slane %v3234_v50, 2  ;;  %v283_v50 = vmul.f32 %v281_v44, %v2836_v56  ;;  %v1214_v44 = vmul.f32 %v3146_v19, %v2842_v62  ;;  %v1240_v26 = vrot.slane %v1234_v47, 4 }
 0x159   : > { %1160 = vrot.lane.b32.xlu0 %v1157_v28, %s4098_s2  ;;  %1120 = vrot.lane.b32.xlu1 %v1117_v29, %s4098_s2  ;;  %v3256_v28 = vmul.f32 %v3146_v19, %v2814_v45  ;;  %v1178_v29 = vsel %vm364_vm6, %v1176_v54, %v1177_v24  ;;  %v1218_v24 = vrot.slane %v1212_v57, 4  ;;  %v299_v19 = vsel %vm294_vm4, %v296_v13, %v298_v30 }
 0x15a   : > { %v1201_v57 = vsel %vm364_vm6, %v1198_v61, %v1200_v18  ;;  %v366_v30 = vrot.slane %v3276_v34, 3 }
 0x15b   : > { %v3249_v58 = vpop.permute.xlu1 %798  ;;  %v3251_v59 = vpop.permute.xlu0 %1076  ;;  %v1219_v42 = vrot.slane %v3256_v28, 4  ;;  %v4102_v28 = vstv %s2996_s11  ;;  %s3439_s11 = sld [smem:[#allocation5 + $0x43]] }
 0x15c   : > { %4099 = vst [vmem:[#allocation17_spill] sm:$0xff] %v3249_v58  ;;  %4100 = vst [vmem:[#allocation18_spill] sm:$0xff] %v3251_v59  ;;  %v277_v41 = vmul.f32 %v4102_v28, %v2814_v45  ;;  %v315_v59 = vrot.slane %v308_v31, 1  ;;  %v1239_v28 = vrot.slane %v1233_v8, 4  ;;  %v1235_v31 = vmul.f32 %v3179_v38, %v2945_v9 }
 0x15d   : > { %1181 = vrot.lane.b32.xlu0 %v1178_v29, %s4098_s2  ;;  %1162 = vrot.lane.b32.xlu1 %v1159_v35, %s4098_s2  ;;  %v1199_v35 = vsel %vm364_vm6, %v1197_v60, %v1198_v61  ;;  %v331_v60 = vrot.slane %v3240_v53, 2  ;;  %v4103_v38 = vrot.slane %v3204_v7, 1  ;;  %v3347_v7 = vmul.f32 %v3209_v10, %v2836_v56 }
 0x15e   : > { %v285_v23 = vadd.f32 %v283_v50, %v277_v41  ;;  %v365_v41 = vrot.slane %v3268_v25, 3  ;;  %v3324_v50 = vld [vmem:[#allocation2] sm:$0xff]  ;;  %v325_v25 = vmul.f32 %v3066_v46, %v2842_v62 }
 0x15f   : > { %v3283_v54 = vpop.permute.xlu1 %1078  ;;  %v3285_v29 = vpop.permute.xlu0 %537  ;;  %v332_v61 = vsel %vm329_vm5, %v330_v36, %v331_v60  ;;  %v1275_v36 = vmul.f32 %v3209_v10, %v2825_v52  ;;  %v3359_v52 = vmul.f32 %v3112_v2, %v2836_v56 }
 0x160   : > { %4101 = vst [vmem:[#allocation19_spill] sm:$0xff] %v3283_v54  ;;  %v314_v54 = vsel %vm294_vm4, %v312_v37, %v4084_v40  ;;  %v1220_v40 = vsel %vm399_vm7, %v1218_v24, %v1219_v42  ;;  %v3353_v24 = vld [vmem:[#allocation3] sm:$0xff] }
 0x161   : > { %1202 = vrot.lane.b32.xlu0 %v1199_v35, %s4098_s2  ;;  %1183 = vrot.lane.b32.xlu1 %v1180_v55, %s4098_s2  ;;  %v3315_v35 = vmul.f32 %v3149_v20, %v2814_v45  ;;  %v1221_v55 = vrot.slane %v1214_v44, 4  ;;  %v319_v13 = vadd.f32 %v314_v54, %v302_v27  ;;  %v1254_v45 = vmul.f32 %v3324_v50, %v3149_v20 }
 0x162   : > { %v316_v27 = vsel %vm294_vm4, %v4103_v38, %v315_v59  ;;  %v303_v54 = vadd.f32 %v299_v19, %v285_v23  ;;  %v1241_v59 = vsel %vm399_vm7, %v1239_v28, %v1240_v26  ;;  %v1242_v44 = vrot.slane %v1235_v31, 4 }
 0x163   : > { %v3308_v58 = vpop.permute.xlu1 %539  ;;  %v3310_v37 = vpop.permute.xlu0 %579  ;;  %v1261_v47 = vrot.slane %v3315_v35, 5  ;;  %v1222_v46 = vsel %vm399_vm7, %v1219_v42, %v1221_v55  ;;  %v337_v23 = vadd.f32 %v332_v61, %v319_v13  ;;  %v376_v19 = vmul.f32 %v3353_v24, %v3112_v2 }
 0x164   : > { %v1260_v28 = vrot.slane %v1254_v45, 5  ;;  %v349_v42 = vsel %vm329_vm5, %v347_v33, %v348_v11  ;;  %v1281_v13 = vrot.slane %v1275_v36, 5  ;;  %v1282_v45 = vrot.slane %v3347_v7, 5  ;;  %v3376_v33 = vld [vmem:[#allocation2 + $0x8] sm:$0xff]  ;;  %v3396_v7 = vld [vmem:[#allocation2 + $0x10] sm:$0x3f] }
 0x165   : > { %1223 = vrot.lane.b32.xlu0 %v1220_v40, %s4098_s2  ;;  %1204 = vrot.lane.b32.xlu1 %v1201_v57, %s4098_s2  ;;  %v343_v40 = vmul.f32 %v3109_v1, %v2945_v9  ;;  %v1256_v1 = vmul.f32 %v3149_v20, %v2842_v62  ;;  %v367_v62 = vsel %vm364_vm6, %v365_v41, %v366_v30  ;;  %v333_v20 = vrot.slane %v325_v25, 2 }
 0x166   : > { %v320_v57 = vadd.f32 %v316_v27, %v303_v54  ;;  %v1262_v31 = vsel %vm434_vm8, %v1260_v28, %v1261_v47  ;;  %v1243_v61 = vsel %vm399_vm7, %v1240_v26, %v1242_v44  ;;  %v3380_v41 = vmul.f32 %v3376_v33, %v3152_v21 }
 0x167   : > { %v3338_v8 = vpop.permute.xlu1 %581  ;;  %v3340_v18 = vpop.permute.xlu0 %621  ;;  %v350_v35 = vrot.slane %v343_v40, 2  ;;  %v1263_v38 = vrot.slane %v1256_v1, 5  ;;  %v1277_v27 = vmul.f32 %v3209_v10, %v2945_v9  ;;  %v354_v25 = vadd.f32 %v349_v42, %v337_v23 }
 0x168   : > { %v382_v40 = vrot.slane %v376_v19, 3  ;;  %v383_v54 = vrot.slane %v3359_v52, 3  ;;  %v3387_v36 = vmul.f32 %v3376_v33, %v3079_v49  ;;  %v360_v10 = vmul.f32 %v3396_v7, %v3076_v48  ;;  %v3414_v48 = vld [vmem:[#allocation3 + $0x8] sm:$0xff] }
 0x169   : > { %1244 = vrot.lane.b32.xlu0 %v1241_v59, %s4098_s2  ;;  %1225 = vrot.lane.b32.xlu1 %v1222_v46, %s4098_s2  ;;  %v351_v26 = vsel %vm329_vm5, %v348_v11, %v350_v35  ;;  %v334_v59 = vsel %vm329_vm5, %v331_v60, %v333_v20  ;;  %v1296_v46 = vmul.f32 %v3324_v50, %v3152_v21  ;;  %v1303_v19 = vrot.slane %v3380_v41, 6 }
 0x16a   : > { %v338_v44 = vadd.f32 %v334_v59, %v320_v57  ;;  %v1283_v11 = vsel %vm434_vm8, %v1281_v13, %v1282_v45  ;;  %v1317_v23 = vmul.f32 %v3353_v24, %v3213_v4  ;;  %v3418_v53 = vmul.f32 %v3414_v48, %v3213_v4 }
 0x16b   : > { %v3369_v55 = vpop.permute.xlu1 %623  ;;  %v3371_v56 = vpop.permute.xlu0 %663  ;;  %v1264_v60 = vsel %vm434_vm8, %v1261_v47, %v1263_v38  ;;  %v1284_v28 = vrot.slane %v1277_v27, 5  ;;  %v1298_v42 = vmul.f32 %v3396_v7, %v3152_v21  ;;  %v372_v20 = vadd.f32 %v367_v62, %v354_v25 }
 0x16c   : > { %v393_v35 = vmul.f32 %v3324_v50, %v3079_v49  ;;  %v401_v57 = vrot.slane %v3387_v36, 4  ;;  %v3435_v47 = vmul.f32 %v3414_v48, %v3115_v3  ;;  %v368_v21 = vrot.slane %v360_v10, 3 }
 0x16d   : > { %1265 = vrot.lane.b32.xlu0 %v1262_v31, %s4098_s2  ;;  %1246 = vrot.lane.b32.xlu1 %v1243_v61, %s4098_s2  ;;  %v411_v31 = vmul.f32 %v3353_v24, %v3115_v3  ;;  %v378_v62 = vmul.f32 %v3112_v2, %v2945_v9  ;;  %v1302_v13 = vrot.slane %v1296_v46, 6  ;;  %v384_v61 = vsel %vm364_vm6, %v382_v40, %v383_v54 }
 0x16e   : > { %v355_v38 = vadd.f32 %v351_v26, %v338_v44  ;;  %v1323_v25 = vrot.slane %v1317_v23, 6  ;;  %v1324_v10 = vrot.slane %v3418_v53, 6  ;;  %v1285_v59 = vsel %vm434_vm8, %v1282_v45, %v1284_v28 }
 0x16f   : > { %v3407_v1 = vpop.permute.xlu1 %665  ;;  %v3409_v32 = vpop.permute.xlu0 %705  ;;  %v1304_v2 = vsel %vm469_vm9, %v1302_v13, %v1303_v19  ;;  %v1305_v46 = vrot.slane %v1298_v42, 6  ;;  %v1319_v40 = vmul.f32 %v3213_v4, %v2945_v9  ;;  %v400_v26 = vrot.slane %v393_v35, 4 }
 0x170   : > { %v3457_v44 = vmul.f32 %v3376_v33, %v3097_v63  ;;  %v3462_v23 = vstv %s3391_s25  ;;  %v385_v53 = vrot.slane %v378_v62, 3  ;;  %v395_v45 = vmul.f32 %v3396_v7, %v3079_v49  ;;  %s3768_s25 = sld [smem:[#allocation5 + $0x4b]] }
 0x171   : > { %1286 = vrot.lane.b32.xlu0 %v1283_v11, %s4098_s2  ;;  %1267 = vrot.lane.b32.xlu1 %v1264_v60, %s4098_s2  ;;  %v389_v11 = vadd.f32 %v384_v61, %v372_v20  ;;  %v369_v4 = vsel %vm364_vm6, %v366_v30, %v368_v21  ;;  %v4086_v60 = vstv %s3405_s24  ;;  %v402_v28 = vsel %vm399_vm7, %v400_v26, %v401_v57 }
 0x172   : > { %v417_v42 = vrot.slane %v411_v31, 4  ;;  %v428_v20 = vmul.f32 %v3324_v50, %v3097_v63  ;;  %v373_v35 = vadd.f32 %v369_v4, %v355_v38  ;;  %v418_v49 = vrot.slane %v3435_v47, 4 }
 0x173   : > { %v3444_v41 = vpop.permute.xlu1 %707  ;;  %v3446_v27 = vpop.permute.xlu0 %747  ;;  %v1325_v34 = vsel %vm469_vm9, %v1323_v25, %v1324_v10  ;;  %v1306_v30 = vsel %vm469_vm9, %v1303_v19, %v1305_v46  ;;  %v1326_v21 = vrot.slane %v1319_v40, 6  ;;  %v407_v61 = vadd.f32 %v402_v28, %v389_v11 }
 0x174   : > { %v4085_v31 = vrot.slane %v3457_v44, 5  ;;  %v446_v38 = vmul.f32 %v3353_v24, %v3135_v16  ;;  %v386_v47 = vsel %vm364_vm6, %v383_v54, %v385_v53  ;;  %v403_v25 = vrot.slane %v395_v45, 4 }
 0x175   : > { %1307 = vrot.lane.b32.xlu0 %v1304_v2, %s4098_s2  ;;  %1288 = vrot.lane.b32.xlu1 %v1285_v59, %s4098_s2  ;;  %v1386_v2 = vstv %s3431_s28  ;;  %v413_v19 = vmul.f32 %v3115_v3, %v2945_v9  ;;  %v3494_v59 = vstv %s3439_s11  ;;  %v435_v46 = vrot.slane %v428_v20, 5  ;;  %s3794_s28 = sld [smem:[#allocation5 + $0x52]]  ;;  %s3813_s11 = sld [smem:[#allocation5 + $0x28]] }
 0x176   : > { %v390_v40 = vadd.f32 %v386_v47, %v373_v35  ;;  %v4104_v4 = vstv %s3106_s27  ;;  %v419_v52 = vsel %vm399_vm7, %v417_v42, %v418_v49  ;;  %v3509_v54 = vmul.f32 %v3414_v48, %v3135_v16 }
 0x177   : > { %v3475_v62 = vpop.permute.xlu1 %749  ;;  %v3477_v13 = vpop.permute.xlu0 %817  ;;  %v1338_v28 = vmul.f32 %v3324_v50, %v4104_v4  ;;  %v1327_v3 = vsel %vm469_vm9, %v1324_v10, %v1326_v21  ;;  %v1367_v53 = vmul.f32 %v3376_v33, %v3182_v39  ;;  %v424_v45 = vadd.f32 %v419_v52, %v407_v61 }
 0x178   : > { %v437_v20 = vsel %vm434_vm8, %v435_v46, %v4085_v31  ;;  %v452_v35 = vrot.slane %v446_v38, 5  ;;  %v463_v42 = vmul.f32 %v3324_v50, %v3100_v0  ;;  %v420_v10 = vrot.slane %v413_v19, 4 }
 0x179   : > { %1328 = vrot.lane.b32.xlu0 %v1325_v34, %s4098_s2  ;;  %1309 = vrot.lane.b32.xlu1 %v1306_v30, %s4098_s2  ;;  %v3504_v34 = vstv %s3449_s23  ;;  %v430_v30 = vmul.f32 %v3396_v7, %v3097_v63  ;;  %v404_v21 = vsel %vm399_vm7, %v401_v57, %v403_v25  ;;  %v1366_v61 = vmul.f32 %v3324_v50, %v3182_v39  ;;  %s3819_s23 = sld [smem:[#allocation5 + $0x59]] }
 0x17a   : > { %v408_v38 = vadd.f32 %v404_v21, %v390_v40  ;;  %v1352_v4 = vmul.f32 %v3353_v24, %v4086_v60  ;;  %v1387_v63 = vmul.f32 %v3353_v24, %v1386_v2  ;;  %v3541_v36 = vmul.f32 %v3376_v33, %v3100_v0 }
 0x17b   : > { %v3496_v11 = vpop.permute.xlu1 %819  ;;  %v3498_v26 = vpop.permute.xlu0 %859  ;;  %v1373_v57 = vrot.slane %v1367_v53, 1  ;;  %v1388_v25 = vmul.f32 %v3414_v48, %v1386_v2  ;;  %v1368_v40 = vmul.f32 %v3396_v7, %v3182_v39  ;;  %v442_v52 = vadd.f32 %v437_v20, %v424_v45 }
 0x17c   : > { %v470_v21 = vrot.slane %v463_v42, 6  ;;  %v421_v31 = vsel %vm399_vm7, %v418_v49, %v420_v10  ;;  %v438_v53 = vrot.slane %v430_v30, 5  ;;  %v448_v60 = vmul.f32 %v3135_v16, %v2945_v9 }
 0x17d   : > { %1342 = vrot.lane.b32.xlu0 %v1338_v28, %s2640_s12  ;;  %1330 = vrot.lane.b32.xlu1 %v1327_v3, %s4098_s2  ;;  %v4107_v28 = vstv %s3106_s27  ;;  %v453_v3 = vrot.slane %v3509_v54, 5  ;;  %v4108_v54 = vstv %s3405_s24  ;;  %v1393_v42 = vrot.slane %v1387_v63, 1  ;;  %s3719_s27 = sld [smem:[#allocation5 + $0xc]]  ;;  %s3765_s2 = sld [smem:[#allocation5 + $0x1a]] }
 0x17e   : > { %v1339_v19 = vmul.f32 %v3376_v33, %v4107_v28  ;;  %v481_v28 = vmul.f32 %v3353_v24, %v3138_v17  ;;  %v1353_v20 = vmul.f32 %v3414_v48, %v4108_v54  ;;  %v1394_v49 = vrot.slane %v1388_v25, 1  ;;  %s3789_s24 = sld [smem:[#allocation5 + $0x21]] }
 0x17f   : > { %v3528_v47 = vpop.permute.xlu1 %861  ;;  %v3530_v46 = vpop.permute.xlu0 %901  ;;  %v1375_v10 = vrot.slane %v1368_v40, 1  ;;  %v1389_v30 = vmul.f32 %v1386_v2, %v2945_v9  ;;  %v454_v16 = vsel %vm434_vm8, %v452_v35, %v453_v3  ;;  %v455_v63 = vrot.slane %v448_v60, 5 }
 0x180   : > { %4105 = vst [vmem:[#allocation20_spill] sm:$0xff] %v3528_v47  ;;  %4106 = vst [vmem:[#allocation21_spill] sm:$0xff] %v3530_v46  ;;  %v1372_v46 = vrot.slane %v1366_v61, 1  ;;  %v425_v47 = vadd.f32 %v421_v31, %v408_v38  ;;  %v471_v31 = vrot.slane %v3541_v36, 6  ;;  %v3569_v61 = vmul.f32 %v3414_v48, %v3138_v17 }
 0x181   : > { %1356 = vrot.lane.b32.xlu0 %v1352_v4, %s2640_s12  ;;  %1344 = vrot.lane.b32.xlu1 %v1339_v19, %s2640_s12  ;;  %v1409_v4 = vmul.f32 %v3376_v33, %v3216_v12  ;;  %v1408_v38 = vmul.f32 %v3324_v50, %v3216_v12  ;;  %v465_v2 = vmul.f32 %v3396_v7, %v3100_v0  ;;  %v4109_v35 = vrot.slane %v3457_v44, 5 }
 0x182   : > { %v1374_v19 = vsel %vm294_vm4, %v1372_v46, %v1373_v57  ;;  %v459_v46 = vadd.f32 %v454_v16, %v442_v52  ;;  %v3588_v52 = vmul.f32 %v3414_v48, %v3494_v59  ;;  %v1395_v60 = vsel %vm294_vm4, %v1393_v42, %v1394_v49 }
 0x183   : > { %v3554_v39 = vpop.permute.xlu1 %903  ;;  %v3556_v45 = vpop.permute.xlu0 %943  ;;  %v439_v36 = vsel %vm434_vm8, %v4109_v35, %v438_v53  ;;  %v1376_v0 = vsel %vm294_vm4, %v1373_v57, %v1375_v10  ;;  %v1396_v44 = vrot.slane %v1389_v30, 1  ;;  %v472_v53 = vsel %vm469_vm9, %v470_v21, %v471_v31 }
 0x184   : > { %v443_v25 = vadd.f32 %v439_v36, %v425_v47  ;;  %v1410_v47 = vmul.f32 %v3396_v7, %v3216_v12  ;;  %v488_v16 = vrot.slane %v3569_v61, 6  ;;  %v1414_v35 = vrot.slane %v1408_v38, 2 }
 0x185   : > { %1377 = vrot.lane.b32.xlu0 %v1374_v19, %s2640_s12  ;;  %1358 = vrot.lane.b32.xlu1 %v1353_v20, %s2640_s12  ;;  %v1415_v19 = vrot.slane %v1409_v4, 2  ;;  %v1429_v20 = vmul.f32 %v3353_v24, %v3494_v59  ;;  %v487_v4 = vrot.slane %v481_v28, 6  ;;  %v477_v42 = vadd.f32 %v472_v53, %v459_v46 }
 0x186   : > { %v456_v57 = vsel %vm434_vm8, %v453_v3, %v455_v63  ;;  %v473_v10 = vrot.slane %v465_v2, 6  ;;  %v483_v12 = vmul.f32 %v3138_v17, %v2945_v9  ;;  %v1397_v38 = vsel %vm294_vm4, %v1394_v49, %v1396_v44 }
 0x187   : > { %v3580_v40 = vpop.permute.xlu1 %945  ;;  %v3582_v54 = vpop.permute.xlu0 %985  ;;  %v460_v30 = vadd.f32 %v456_v57, %v443_v25  ;;  %v1416_v28 = vsel %vm329_vm5, %v1414_v35, %v1415_v19  ;;  %v1435_v61 = vrot.slane %v1429_v20, 2  ;;  %v1451_v3 = vmul.f32 %v3376_v33, %v3462_v23 }
 0x188   : > { %v1431_v46 = vmul.f32 %v3494_v59, %v2945_v9  ;;  %v489_v17 = vsel %vm469_vm9, %v487_v4, %v488_v16  ;;  %v490_v2 = vrot.slane %v483_v12, 6  ;;  %v474_v25 = vsel %vm469_vm9, %v471_v31, %v473_v10 }
 0x189   : > { %1398 = vrot.lane.b32.xlu0 %v1395_v60, %s2640_s12  ;;  %1379 = vrot.lane.b32.xlu1 %v1376_v0, %s2640_s12  ;;  %v1436_v60 = vrot.slane %v3588_v52, 2  ;;  %v1417_v0 = vrot.slane %v1410_v47, 2  ;;  %v494_v63 = vadd.f32 %v489_v17, %v477_v42  ;;  %v1450_v49 = vmul.f32 %v3324_v50, %v3462_v23 }
 0x18a   : > { %v478_v20 = vadd.f32 %v474_v25, %v460_v30  ;;  %v1452_v59 = vmul.f32 %v3396_v7, %v3462_v23  ;;  %v1471_v47 = vmul.f32 %v3353_v24, %v3504_v34  ;;  %v1457_v4 = vrot.slane %v1451_v3, 3  ;;  %v3642_v30 = vld [vmem:[#allocation3 + $0x10] sm:$0x3f] }
 0x18b   : > { %v3605_v36 = vpop.permute.xlu1 %987  ;;  %v3607_v21 = vpop.permute.xlu0 %1027  ;;  %v1437_v9 = vsel %vm329_vm5, %v1435_v61, %v1436_v60  ;;  %v1418_v53 = vsel %vm329_vm5, %v1415_v19, %v1417_v0  ;;  %v1438_v31 = vrot.slane %v1431_v46, 2  ;;  %v1472_v35 = vmul.f32 %v3414_v48, %v3504_v34 }
 0x18c   : > { %v1491_v42 = vstv %s3594_s16  ;;  %v1512_v57 = vstv %s3600_s17  ;;  %v508_v23 = vadd.f32 %v3086_v51, %v494_v63  ;;  %v491_v10 = vsel %vm469_vm9, %v488_v16, %v490_v2  ;;  %s3842_s16 = sld [smem:[#allocation5 + $0x60]]  ;;  %s3878_s17 = sld [smem:[#allocation5 + $0x6]] }
 0x18d   : > { %1419 = vrot.lane.b32.xlu0 %v1416_v28, %s2640_s12  ;;  %1400 = vrot.lane.b32.xlu1 %v1397_v38, %s2640_s12  ;;  %v1456_v12 = vrot.slane %v1450_v49, 3  ;;  %v1473_v19 = vmul.f32 %v3642_v30, %v3504_v34  ;;  %v495_v28 = vadd.f32 %v491_v10, %v478_v20  ;;  %v1459_v0 = vrot.slane %v1452_v59, 3 }
 0x18e   : > { %v1477_v3 = vrot.slane %v1471_v47, 3  ;;  %v1493_v46 = vmul.f32 %v3376_v33, %v1491_v42  ;;  %v522_v51 = vadd.f32 %v3190_v43, %v508_v23  ;;  %v1439_v17 = vsel %vm329_vm5, %v1436_v60, %v1438_v31 }
 0x18f   : > { %v3622_v52 = vpop.permute.xlu1 %1029  ;;  %v3624_v44 = vpop.permute.xlu0 %1097  ;;  %v1458_v16 = vsel %vm364_vm6, %v1456_v12, %v1457_v4  ;;  %v1478_v63 = vrot.slane %v1472_v35, 3  ;;  %v1492_v34 = vmul.f32 %v3324_v50, %v1491_v42  ;;  %v509_v2 = vadd.f32 %v3122_v5, %v495_v28 }
 0x190   : > { %v543_v25 = vadd.f32 %v3285_v29, %v522_v51  ;;  %v1480_v49 = vrot.slane %v1473_v19, 3  ;;  %v1499_v60 = vrot.slane %v1493_v46, 4  ;;  %v1494_v59 = vmul.f32 %v3396_v7, %v1491_v42 }
 0x191   : > { %1440 = vrot.lane.b32.xlu0 %v1437_v9, %s2640_s12  ;;  %1421 = vrot.lane.b32.xlu1 %v1418_v53, %s2640_s12  ;;  %v1460_v9 = vsel %vm364_vm6, %v1457_v4, %v1459_v0  ;;  %v1513_v47 = vmul.f32 %v3353_v24, %v1512_v57  ;;  %v523_v53 = vadd.f32 %v3219_v14, %v509_v2  ;;  %v1498_v29 = vrot.slane %v1492_v34, 4 }
 0x192   : > { %v1479_v5 = vsel %vm364_vm6, %v1477_v3, %v1478_v63  ;;  %v1514_v35 = vmul.f32 %v3414_v48, %v1512_v57  ;;  %v1533_v23 = vstv %s3638_s29  ;;  %v1481_v10 = vsel %vm364_vm6, %v1478_v63, %v1480_v49  ;;  %s3885_s29 = sld [smem:[#allocation5 + $0xd]] }
 0x193   : > { %v3648_v61 = vpop.permute.xlu1 %1099  ;;  %v3650_v38 = vpop.permute.xlu0 %1139  ;;  %v544_v4 = vadd.f32 %v3308_v58, %v523_v53  ;;  %v1554_v14 = vstv %s3646_s13  ;;  %v1500_v28 = vsel %vm399_vm7, %v1498_v29, %v1499_v60  ;;  %v1501_v0 = vrot.slane %v1494_v59, 4  ;;  %s3889_s13 = sld [smem:[#allocation5 + $0x37]] }
 0x194   : > { %v1519_v3 = vrot.slane %v1513_v47, 4  ;;  %v1515_v46 = vmul.f32 %v3642_v30, %v1512_v57  ;;  %v1535_v34 = vmul.f32 %v3376_v33, %v1533_v23  ;;  %v1534_v63 = vmul.f32 %v3324_v50, %v1533_v23 }
 0x195   : > { %1461 = vrot.lane.b32.xlu0 %v1458_v16, %s2640_s12  ;;  %1442 = vrot.lane.b32.xlu1 %v1439_v17, %s2640_s12  ;;  %v1520_v17 = vrot.slane %v1514_v35, 4  ;;  %v1536_v57 = vmul.f32 %v3396_v7, %v1533_v23  ;;  %v1502_v49 = vsel %vm399_vm7, %v1499_v60, %v1501_v0  ;;  %v1556_v59 = vmul.f32 %v3414_v48, %v1554_v14 }
 0x196   : > { %v1540_v60 = vrot.slane %v1534_v63, 5 }
 0x197   : > { %v3661_v20 = vpop.permute.xlu1 %1141  ;;  %v559_v43 = vpop.permute.xlu0 %558  ;;  %v1543_v29 = vrot.slane %v1536_v57, 5 }
 0x198   : > { %v564_v31 = vadd.f32 %v559_v43, %v543_v25  ;;  %v1522_v43 = vrot.slane %v1515_v46, 4 }
 0x199   : > { %1463 = vrot.lane.b32.xlu1 %v1460_v9, %s2640_s12  ;;  %1482 = vrot.lane.b32.xlu0 %v1479_v5, %s2640_s12  ;;  %v1555_v9 = vmul.f32 %v3353_v24, %v1554_v14 }
 0x19a   : > { %v585_v42 = vadd.f32 %v3310_v37, %v564_v31  ;;  %v1541_v31 = vrot.slane %v1535_v34, 5 }
 0x19b   : > { %v561_v12 = vpop.permute.xlu1 %560  ;;  %v601_v19 = vpop.permute.xlu0 %600 }
 0x19c   : > { %v565_v51 = vadd.f32 %v561_v12, %v544_v4  ;;  %v606_v16 = vadd.f32 %v601_v19, %v585_v42  ;;  %v1561_v42 = vrot.slane %v1555_v9, 5  ;;  %v1557_v12 = vmul.f32 %v3642_v30, %v1554_v14 }
 0x19d   : > { %1484 = vrot.lane.b32.xlu1 %v1481_v10, %s2640_s12  ;;  %1503 = vrot.lane.b32.xlu0 %v1500_v28, %s2640_s12  ;;  %v1562_v10 = vrot.slane %v1556_v59, 5  ;;  %v1542_v46 = vsel %vm434_vm8, %v1540_v60, %v1541_v31  ;;  %v1544_v14 = vsel %vm434_vm8, %v1541_v31, %v1543_v29 }
 0x19e   : > { %v586_v58 = vadd.f32 %v3338_v8, %v565_v51  ;;  %v627_v37 = vadd.f32 %v3340_v18, %v606_v16  ;;  %v1521_v8 = vsel %vm399_vm7, %v1519_v3, %v1520_v17  ;;  %v1575_v18 = vstv %s3672_s14  ;;  %s2388_s14 = sld [smem:[#allocation5 + $0x3e]] }
 0x19f   : > { %v603_v2 = vpop.permute.xlu1 %602  ;;  %v643_v25 = vpop.permute.xlu0 %642  ;;  %v1577_v19 = vmul.f32 %v3376_v33, %v1575_v18  ;;  %v1523_v3 = vsel %vm399_vm7, %v1520_v17, %v1522_v43  ;;  %v1564_v17 = vrot.slane %v1557_v12, 5  ;;  %v1578_v57 = vmul.f32 %v3396_v7, %v1575_v18 }
 0x1a0   : > { %v607_v47 = vadd.f32 %v603_v2, %v586_v58  ;;  %v648_v53 = vadd.f32 %v643_v25, %v627_v37  ;;  %v1563_v37 = vsel %vm434_vm8, %v1561_v42, %v1562_v10 }
 0x1a1   : > { %1505 = vrot.lane.b32.xlu1 %v1502_v49, %s2640_s12  ;;  %1524 = vrot.lane.b32.xlu0 %v1521_v8, %s2640_s12  ;;  %v1583_v63 = vrot.slane %v1577_v19, 6  ;;  %v1585_v31 = vrot.slane %v1578_v57, 6 }
 0x1a2   : > { %v628_v5 = vadd.f32 %v3369_v55, %v607_v47  ;;  %v669_v35 = vadd.f32 %v3371_v56, %v648_v53  ;;  %v1576_v55 = vmul.f32 %v3324_v50, %v1575_v18  ;;  %v1596_v56 = vstv %s3683_s15  ;;  %s3899_s15 = sld [smem:[#allocation5 + $0x14]] }
 0x1a3   : > { %v645_v23 = vpop.permute.xlu1 %644  ;;  %v685_v4 = vpop.permute.xlu0 %684  ;;  %v1597_v49 = vmul.f32 %v3353_v24, %v1596_v56  ;;  %v1565_v53 = vsel %vm434_vm8, %v1562_v10, %v1564_v17  ;;  %v1599_v18 = vmul.f32 %v3642_v30, %v1596_v56  ;;  %v1586_v42 = vsel %vm469_vm9, %v1583_v63, %v1585_v31 }
 0x1a4   : > { %v649_v28 = vadd.f32 %v645_v23, %v628_v5  ;;  %v690_v0 = vadd.f32 %v685_v4, %v669_v35  ;;  %v1617_v10 = vstv %s3711_s26  ;;  %s3906_s26 = sld [smem:[#allocation5 + $0x45]] }
 0x1a5   : > { %1526 = vrot.lane.b32.xlu1 %v1523_v3, %s2640_s12  ;;  %1545 = vrot.lane.b32.xlu0 %v1542_v46, %s2640_s12  ;;  %v1619_v17 = vmul.f32 %v3376_v33, %v1617_v10 }
 0x1a6   : > { %v670_v51 = vadd.f32 %v3407_v1, %v649_v28  ;;  %v711_v16 = vadd.f32 %v3409_v32, %v690_v0  ;;  %v1598_v1 = vmul.f32 %v3414_v48, %v1596_v56  ;;  %v1582_v32 = vrot.slane %v1576_v55, 6 }
 0x1a7   : > { %v687_v34 = vpop.permute.xlu1 %686  ;;  %v727_v58 = vpop.permute.xlu0 %726  ;;  %v1606_v0 = vrot.slane %v1599_v18, 6  ;;  %v1618_v55 = vmul.f32 %v3324_v50, %v1617_v10  ;;  %v1631_v56 = vstv %s3724_s6  ;;  %s3922_s6 = sld [smem:[#allocation5 + $0x1b]] }
 0x1a8   : > { %v691_v2 = vadd.f32 %v687_v34, %v670_v51  ;;  %v732_v25 = vadd.f32 %v727_v58, %v711_v16  ;;  %v1584_v8 = vsel %vm469_vm9, %v1582_v32, %v1583_v63  ;;  %v1604_v60 = vrot.slane %v1598_v1, 6  ;;  %v4110_v16 = vld [vmem:[#allocation17_spill] sm:$0xff] }
 0x1a9   : > { %1547 = vrot.lane.b32.xlu1 %v1544_v14, %s2640_s12  ;;  %1566 = vrot.lane.b32.xlu0 %v1563_v37, %s2640_s12  ;;  %v1666_v51 = vstv %s2374_s7  ;;  %s3926_s7 = sld [smem:[#allocation5 + $0x4c]] }
 0x1aa   : > { %v712_v43 = vadd.f32 %v3444_v41, %v691_v2  ;;  %v753_v9 = vadd.f32 %v3446_v27, %v732_v25  ;;  %v1603_v41 = vrot.slane %v1597_v49, 6  ;;  %v1607_v58 = vsel %vm469_vm9, %v1604_v60, %v1606_v0 }
 0x1ab   : > { %v729_v59 = vpop.permute.xlu1 %728  ;;  %v769_v47 = vpop.permute.xlu0 %768  ;;  %v1632_v25 = vmul.f32 %v3353_v24, %v1631_v56  ;;  %v1667_v1 = vmul.f32 %v3353_v24, %v1666_v51  ;;  %v1668_v32 = vmul.f32 %v3414_v48, %v1666_v51 }
 0x1ac   : > { %v733_v5 = vadd.f32 %v729_v59, %v712_v43  ;;  %v774_v35 = vadd.f32 %v769_v47, %v753_v9  ;;  %v1605_v28 = vsel %vm469_vm9, %v1603_v41, %v1604_v60  ;;  %v1669_v59 = vmul.f32 %v3642_v30, %v1666_v51  ;;  %v4111_v47 = vld [vmem:[#allocation20_spill] sm:$0xff] }
 0x1ad   : > { %1568 = vrot.lane.b32.xlu1 %v1565_v53, %s2640_s12  ;;  %1587 = vrot.lane.b32.xlu0 %v1584_v8, %s2640_s12  ;;  %v4112_v8 = vld [vmem:[#allocation21_spill] sm:$0xff] }
 0x1ae   : > { %v754_v27 = vadd.f32 %v3475_v62, %v733_v5  ;;  %v788_v29 = vadd.f32 %v3124_v6, %v774_v35  ;;  %v1687_v5 = vstv %s3738_s8  ;;  %s2393_s8 = sld [smem:[#allocation5 + $0x22]] }
 0x1af   : > { %v771_v23 = vpop.permute.xlu1 %770  ;;  %v839_v4 = vpop.permute.xlu0 %838 }
 0x1b0   : > { %v802_v12 = vadd.f32 %v3221_v15, %v788_v29  ;;  %v775_v19 = vadd.f32 %v771_v23, %v754_v27  ;;  %v1645_v15 = vstv %s3719_s27  ;;  %v1673_v27 = vrot.slane %v1667_v1, 1  ;;  %s2642_s27 = smov 122  }
 0x1b1   : > { %1589 = vrot.lane.b32.xlu1 %v1586_v42, %s2640_s12  ;;  %1608 = vrot.lane.b32.xlu0 %v1605_v28, %s2640_s12  ;;  %v1647_v37 = vmul.f32 %v3376_v33, %v1645_v15  ;;  %v1646_v63 = vmul.f32 %v3324_v50, %v1645_v15  ;;  %v1648_v49 = vmul.f32 %v3396_v7, %v1645_v15  ;;  %v1674_v29 = vrot.slane %v1668_v32, 1 }
 0x1b2   : > { %v823_v62 = vadd.f32 %v3477_v13, %v802_v12  ;;  %v789_v6 = vadd.f32 %v3158_v22, %v775_v19  ;;  %v1689_v23 = vmul.f32 %v3376_v33, %v1687_v5  ;;  %v1708_v12 = vstv %s3746_s18  ;;  %s2394_s18 = sld [smem:[#allocation5 + $0x53]] }
 0x1b3   : > { %v841_v3 = vpop.permute.xlu1 %840  ;;  %v881_v46 = vpop.permute.xlu0 %880  ;;  %v1652_v18 = vrot.slane %v1646_v63, 1  ;;  %v1655_v60 = vrot.slane %v1648_v49, 1  ;;  %v1688_v19 = vmul.f32 %v3324_v50, %v1687_v5  ;;  %v1709_v15 = vmul.f32 %v3353_v24, %v1708_v12 }
 0x1b4   : > { %v803_v14 = vadd.f32 %v4110_v16, %v789_v6  ;;  %v844_v34 = vadd.f32 %v839_v4, %v823_v62  ;;  %v1676_v62 = vrot.slane %v1669_v59, 1  ;;  %v1750_v49 = vstv %s3768_s25  ;;  %s2397_s25 = sld [smem:[#allocation5 + $0x30]] }
 0x1b5   : > { %1610 = vrot.lane.b32.xlu1 %v1607_v58, %s2640_s12  ;;  %1622 = vrot.lane.b32.xlu0 %v1618_v55, %s2641_s9  ;;  %v1695_v55 = vrot.slane %v1689_v23, 2  ;;  %s3839_s12 = sld [smem:[#allocation5 + $0x2f]] }
 0x1b6   : > { %v824_v22 = vadd.f32 %v3496_v11, %v803_v14  ;;  %v865_v13 = vadd.f32 %v3498_v26, %v844_v34  ;;  %v1653_v11 = vrot.slane %v1647_v37, 1  ;;  %v1633_v26 = vmul.f32 %v3414_v48, %v1631_v56 }
 0x1b7   : > { %v883_v57 = vpop.permute.xlu1 %882  ;;  %v923_v2 = vpop.permute.xlu0 %922  ;;  %v1690_v56 = vmul.f32 %v3396_v7, %v1687_v5  ;;  %v1675_v14 = vsel %vm294_vm4, %v1673_v27, %v1674_v29  ;;  %v1711_v34 = vmul.f32 %v3642_v30, %v1708_v12 }
 0x1b8   : > { %v845_v43 = vadd.f32 %v841_v3, %v824_v22  ;;  %v886_v9 = vadd.f32 %v881_v46, %v865_v13  ;;  %v1654_v10 = vsel %vm294_vm4, %v1652_v18, %v1653_v11  ;;  %v1656_v46 = vsel %vm294_vm4, %v1653_v11, %v1655_v60 }
 0x1b9   : > { %1624 = vrot.lane.b32.xlu1 %v1619_v17, %s2641_s9  ;;  %1636 = vrot.lane.b32.xlu0 %v1632_v25, %s2641_s9  ;;  %v1677_v22 = vsel %vm294_vm4, %v1674_v29, %v1676_v62  ;;  %v1729_v13 = vstv %s3765_s2  ;;  %v1715_v25 = vrot.slane %v1709_v15, 2  ;;  %v1752_v18 = vmul.f32 %v3414_v48, %v1750_v49  ;;  %v4113_v29 = vld [vmem:[#allocation15_spill] sm:$0xff]  ;;  %s3959_s2 = sld [smem:[#allocation5 + $0x5a]] }
 0x1ba   : > { %v866_v53 = vadd.f32 %v4111_v47, %v845_v43  ;;  %v907_v31 = vadd.f32 %v4112_v8, %v886_v9  ;;  %v1731_v9 = vmul.f32 %v3376_v33, %v1729_v13  ;;  %v1732_v8 = vmul.f32 %v3396_v7, %v1729_v13 }
 0x1bb   : > { %v925_v35 = vpop.permute.xlu1 %924  ;;  %v965_v41 = vpop.permute.xlu0 %964 }
 0x1bc   : > { %v887_v4 = vadd.f32 %v883_v57, %v866_v53  ;;  %v928_v42 = vadd.f32 %v923_v2, %v907_v31  ;;  %v1697_v2 = vrot.slane %v1690_v56, 2  ;;  %v1751_v31 = vmul.f32 %v3353_v24, %v1750_v49 }
 0x1bd   : > { %1638 = vrot.lane.b32.xlu1 %v1633_v26, %s2641_s9  ;;  %1657 = vrot.lane.b32.xlu0 %v1654_v10, %s2641_s9  ;;  %v1737_v60 = vrot.slane %v1731_v9, 3 }
 0x1be   : > { %v908_v28 = vadd.f32 %v3554_v39, %v887_v4  ;;  %v949_v0 = vadd.f32 %v3556_v45, %v928_v42  ;;  %v1710_v39 = vmul.f32 %v3414_v48, %v1708_v12  ;;  %v1694_v45 = vrot.slane %v1688_v19, 2 }
 0x1bf   : > { %v967_v6 = vpop.permute.xlu1 %966  ;;  %v1007_v3 = vpop.permute.xlu0 %1006  ;;  %v1698_v53 = vsel %vm329_vm5, %v1695_v55, %v1697_v2  ;;  %v1753_v4 = vmul.f32 %v3642_v30, %v1750_v49  ;;  %v1771_v42 = vstv %s3789_s24  ;;  %v1739_v19 = vrot.slane %v1732_v8, 3  ;;  %v3848_v8 = vld [vmem:[#allocation2] sm:$0xff]  ;;  %s3980_s24 = sld [smem:[#allocation5 + $0x61]] }
 0x1c0   : > { %v929_v51 = vadd.f32 %v925_v35, %v908_v28  ;;  %v970_v16 = vadd.f32 %v965_v41, %v949_v0  ;;  %v1696_v57 = vsel %vm329_vm5, %v1694_v45, %v1695_v55  ;;  %v1716_v43 = vrot.slane %v1710_v39, 2 }
 0x1c1   : > { %1659 = vrot.lane.b32.xlu1 %v1656_v46, %s2641_s9  ;;  %1678 = vrot.lane.b32.xlu0 %v1675_v14, %s2641_s9  ;;  %v1757_v28 = vrot.slane %v1751_v31, 3  ;;  %v1758_v0 = vrot.slane %v1752_v18, 3  ;;  %v1773_v62 = vmul.f32 %v3376_v33, %v1771_v42  ;;  %v1772_v56 = vmul.f32 %v3324_v50, %v1771_v42 }
 0x1c2   : > { %v950_v58 = vadd.f32 %v3580_v40, %v929_v51  ;;  %v991_v37 = vadd.f32 %v3582_v54, %v970_v16  ;;  %v1718_v40 = vrot.slane %v1711_v34, 2  ;;  %v1730_v54 = vmul.f32 %v3324_v50, %v1729_v13  ;;  %v4115_v51 = vld [vmem:[#allocation16_spill] sm:$0xff]  ;;  %v4116_v13 = vld [vmem:[#allocation19_spill] sm:$0xff] }
 0x1c3   : > { %v1009_v17 = vpop.permute.xlu1 %1008  ;;  %v1049_v63 = vpop.permute.xlu0 %1048  ;;  %v1717_v41 = vsel %vm329_vm5, %v1715_v25, %v1716_v43  ;;  %v1760_v14 = vrot.slane %v1753_v4, 3  ;;  %v1779_v34 = vrot.slane %v1773_v62, 4  ;;  %v1740_v50 = vsel %vm364_vm6, %v1737_v60, %v1739_v19 }
 0x1c4   : > { %v971_v1 = vadd.f32 %v967_v6, %v950_v58  ;;  %v1012_v32 = vadd.f32 %v1007_v3, %v991_v37  ;;  %v4114_v6 = vld [vmem:[#allocation18_spill] sm:$0xff]  ;;  %v1774_v58 = vmul.f32 %v3396_v7, %v1771_v42  ;;  %v1855_v62 = vstv %s3839_s12 }
 0x1c5   : > { %1680 = vrot.lane.b32.xlu1 %v1677_v22, %s2641_s9  ;;  %1699 = vrot.lane.b32.xlu0 %v1696_v57, %s2641_s9  ;;  %v1778_v57 = vrot.slane %v1772_v56, 4 }
 0x1c6   : > { %v992_v11 = vadd.f32 %v3605_v36, %v971_v1  ;;  %v1033_v26 = vadd.f32 %v3607_v21, %v1012_v32  ;;  %v1719_v36 = vsel %vm329_vm5, %v1716_v43, %v1718_v40  ;;  %v1736_v21 = vrot.slane %v1730_v54, 3 }
 0x1c7   : > { %v1051_v59 = vpop.permute.xlu1 %1050  ;;  %v1119_v47 = vpop.permute.xlu0 %1118  ;;  %v1761_v1 = vsel %vm364_vm6, %v1758_v0, %v1760_v14  ;;  %v1813_v32 = vstv %s3813_s11  ;;  %v1780_v40 = vsel %vm399_vm7, %v1778_v57, %v1779_v34  ;;  %v1781_v54 = vrot.slane %v1774_v58, 4  ;;  %v3872_v58 = vld [vmem:[#allocation2 + $0x10] sm:$0x3f]  ;;  %s2301_s11 = sshll.u32 %s2784_s10, 4 }
 0x1c8   : > { %v1013_v5 = vadd.f32 %v1009_v17, %v992_v11  ;;  %v1054_v35 = vadd.f32 %v1049_v63, %v1033_v26  ;;  %v1738_v55 = vsel %vm364_vm6, %v1736_v21, %v1737_v60  ;;  %v1814_v31 = vmul.f32 %v3848_v8, %v1813_v32  ;;  %s160_s12 = scalar_lea.vmem [#allocation10], %s2301_s11 }
 0x1c9   : > { %1701 = vrot.lane.b32.xlu1 %v1698_v53, %s2641_s9  ;;  %1720 = vrot.lane.b32.xlu0 %v1717_v41, %s2641_s9  ;;  %v1834_v53 = vstv %s3819_s23  ;;  %s2407_s23 = sshll.u32 %s2621_s20, 8 }
 0x1ca   : > { %v1034_v27 = vadd.f32 %v3622_v52, %v1013_v5  ;;  %v1068_v23 = vadd.f32 %v4113_v29, %v1054_v35  ;;  %v1792_v52 = vstv %s3794_s28  ;;  %v1816_v35 = vmul.f32 %v3396_v7, %v1813_v32  ;;  %s2176_s28 = sld [smem:[#allocation6]] }
 0x1cb   : > { %v1121_v10 = vpop.permute.xlu1 %1120  ;;  %v1161_v12 = vpop.permute.xlu0 %1160  ;;  %v1793_v37 = vmul.f32 %v3353_v24, %v1792_v52  ;;  %v1794_v22 = vmul.f32 %v3414_v48, %v1792_v52  ;;  %v1795_v2 = vmul.f32 %v3642_v30, %v1792_v52  ;;  %v1836_v21 = vmul.f32 %v3414_v48, %v1834_v53  ;;  %v3864_v52 = vld [vmem:[#allocation2 + $0x8] sm:$0xff] }
 0x1cc   : > { %v1082_v3 = vadd.f32 %v4114_v6, %v1068_v23  ;;  %v1055_v46 = vadd.f32 %v1051_v59, %v1034_v27  ;;  %v1876_v6 = vstv %s3842_s16  ;;  %v1857_v56 = vmul.f32 %v3864_v52, %v1855_v62  ;;  %s2208_s16 = sshll.u32 %s160_s12, 4  ;;  %s4025_s16 = int_to_ptr.vmem [resolvable:$true] %s2208_s16 }
 0x1cd   : > { %1722 = vrot.lane.b32.xlu1 %v1719_v36, %s2641_s9  ;;  %1741 = vrot.lane.b32.xlu0 %v1738_v55, %s2641_s9  ;;  %v1799_v11 = vrot.slane %v1793_v37, 4  ;;  %v1800_v26 = vrot.slane %v1794_v22, 4  ;;  %v1782_v36 = vsel %vm399_vm7, %v1779_v34, %v1781_v54  ;;  %v1858_v37 = vmul.f32 %v3872_v58, %v1855_v62  ;;  %v3875_v22 = vld [vmem:[#allocation3] sm:$0xff]  ;;  %s2545_s20 = scalar_lea.vmem %s4025_s16, 256 }
 0x1ce   : > { %v1103_v15 = vadd.f32 %v3624_v44, %v1082_v3  ;;  %v1069_v16 = vadd.f32 %v4115_v51, %v1055_v46  ;;  %v1759_v44 = vsel %vm364_vm6, %v1757_v28, %v1758_v0  ;;  %v1842_v0 = vrot.slane %v1836_v21, 5  ;;  %p2546_p13 = scmp.ne.s32.totalorder %s4025_s16, %s2545_s20 }
 0x1cf   : > { %v1163_v39 = vpop.permute.xlu1 %1162  ;;  %v1182_v45 = vpop.permute.xlu0 %1181  ;;  %v1801_v23 = vsel %vm399_vm7, %v1799_v11, %v1800_v26  ;;  %v1946_v21 = vstv %s2388_s14  ;;  %s2195_s14 = scalar_lea.sflag [#allocation9], %s2784_s10 }
 0x1d0   : > { %v1083_v17 = vadd.f32 %v4116_v13, %v1069_v16  ;;  %v1124_v63 = vadd.f32 %v1119_v47, %v1103_v15  ;;  %v1856_v16 = vmul.f32 %v3848_v8, %v1855_v62  ;;  %v1877_v13 = vmul.f32 %v3875_v22, %v1876_v6  ;;  %p2547_p2 = pnand %p2546_p13, %p4117_p0 }
 0x1d1   : > { %1743 = vrot.lane.b32.xlu1 %v1740_v50, %s2641_s9  ;;  %1762 = vrot.lane.b32.xlu0 %v1759_v44, %s2641_s9  ;;  %v1863_v50 = vrot.slane %v1857_v56, 6  ;;  %v3880_v44 = vld [vmem:[#allocation3 + $0x8] sm:$0xff] }
 0x1d2   : > { %v1104_v25 = vadd.f32 %v3648_v61, %v1083_v17  ;;  %v1145_v49 = vadd.f32 %v3650_v38, %v1124_v63  ;;  %v1815_v61 = vmul.f32 %v3376_v33, %v1813_v32  ;;  %v1802_v38 = vrot.slane %v1795_v2, 4  ;;  %p2548_p5 = pneg %p2547_p2 }
 0x1d3   : > { %v1184_v43 = vpop.permute.xlu1 %1183  ;;  %v1203_v9 = vpop.permute.xlu0 %1202  ;;  %v1835_v33 = vmul.f32 %v3353_v24, %v1834_v53  ;;  %v1837_v24 = vmul.f32 %v3642_v30, %v1834_v53  ;;  %v1878_v57 = vmul.f32 %v3880_v44, %v1876_v6  ;;  %v1862_v2 = vrot.slane %v1856_v16, 6 }
 0x1d4   : > { %v1125_v59 = vadd.f32 %v1121_v10, %v1104_v25  ;;  %v1166_v47 = vadd.f32 %v1161_v12, %v1145_v49  ;;  %v1821_v4 = vrot.slane %v1815_v61, 5  ;;  %v1803_v7 = vsel %vm399_vm7, %v1800_v26, %v1802_v38 }
 0x1d5   : > { %1764 = vrot.lane.b32.xlu1 %v1761_v1, %s2641_s9  ;;  %1783 = vrot.lane.b32.xlu0 %v1780_v40, %s2641_s9  ;;  %v1823_v12 = vrot.slane %v1816_v35, 5  ;;  %v1841_v28 = vrot.slane %v1835_v33, 5  ;;  %v1844_v34 = vrot.slane %v1837_v24, 5  ;;  %v1865_v32 = vrot.slane %v1858_v37, 6 }
 0x1d6   : > { %v1146_v18 = vadd.f32 %v3661_v20, %v1125_v59  ;;  %v1187_v5 = vadd.f32 %v1182_v45, %v1166_v47  ;;  %v1820_v20 = vrot.slane %v1814_v31, 5  ;;  %v1864_v11 = vsel %vm469_vm9, %v1862_v2, %v1863_v50 }
 0x1d7   : > { %v1205_v41 = vpop.permute.xlu1 %1204  ;;  %v1224_v60 = vpop.permute.xlu0 %1223  ;;  %v1824_v51 = vsel %vm434_vm8, %v1821_v4, %v1823_v12  ;;  %v1843_v45 = vsel %vm434_vm8, %v1841_v28, %v1842_v0  ;;  %v1845_v1 = vsel %vm434_vm8, %v1842_v0, %v1844_v34  ;;  %v1884_v26 = vrot.slane %v1878_v57, 6 }
 0x1d8   : > { %v1167_v27 = vadd.f32 %v1163_v39, %v1146_v18  ;;  %v1208_v29 = vadd.f32 %v1203_v9, %v1187_v5  ;;  %v1822_v55 = vsel %vm434_vm8, %v1820_v20, %v1821_v4  ;;  %v1879_v9 = vmul.f32 %v3642_v30, %v1876_v6 }
 0x1d9   : > { %1785 = vrot.lane.b32.xlu1 %v1782_v36, %s2641_s9  ;;  %1804 = vrot.lane.b32.xlu0 %v1801_v23, %s2641_s9  ;;  %v1866_v61 = vsel %vm469_vm9, %v1863_v50, %v1865_v32  ;;  %v1897_v53 = vstv %s3878_s17  ;;  %v1911_v36 = vstv %s3889_s13  ;;  %s4023_s13 = scalar_lea.hbm %s4078_s3, %s2407_s23 }
 0x1da   : > { %v1188_v42 = vadd.f32 %v1184_v43, %v1167_v27  ;;  %v1229_v10 = vadd.f32 %v1224_v60, %v1208_v29  ;;  %v1883_v43 = vrot.slane %v1877_v13, 6  ;;  %v1886_v5 = vrot.slane %v1879_v9, 6 }
 0x1db   : > { %v1226_v48 = vpop.permute.xlu1 %1225  ;;  %v1245_v19 = vpop.permute.xlu0 %1244  ;;  %v1898_v60 = vmul.f32 %v3848_v8, %v1897_v53  ;;  %v1925_v33 = vstv %s3885_s29  ;;  %v1912_v12 = vmul.f32 %v3875_v22, %v1911_v36  ;;  %v1913_v6 = vmul.f32 %v3880_v44, %v1911_v36 }
 0x1dc   : > { %v1209_v3 = vadd.f32 %v1205_v41, %v1188_v42  ;;  %v1250_v46 = vadd.f32 %v1245_v19, %v1229_v10  ;;  %v1885_v18 = vsel %vm469_vm9, %v1883_v43, %v1884_v26  ;;  %v1887_v23 = vsel %vm469_vm9, %v1884_v26, %v1886_v5 }
 0x1dd   : > { %1806 = vrot.lane.b32.xlu1 %v1803_v7, %s2641_s9  ;;  %1825 = vrot.lane.b32.xlu0 %v1822_v55, %s2641_s9  ;;  %v1927_v4 = vmul.f32 %v3864_v52, %v1925_v33  ;;  %v1899_v7 = vmul.f32 %v3864_v52, %v1897_v53  ;;  %v1926_v20 = vmul.f32 %v3848_v8, %v1925_v33  ;;  %v1967_v55 = vstv %s3899_s15  ;;  %s2643_s15 = smov [#allocation10]  }
 0x1de   : > { %v1230_v15 = vadd.f32 %v1226_v48, %v1209_v3  ;;  %v1928_v24 = vmul.f32 %v3872_v58, %v1925_v33  ;;  %v1947_v48 = vmul.f32 %v3875_v22, %v1946_v21  ;;  %v1948_v19 = vmul.f32 %v3880_v44, %v1946_v21 }
 0x1df   : > { %v1247_v14 = vpop.permute.xlu1 %1246  ;;  %v1266_v39 = vpop.permute.xlu0 %1265  ;;  %v1933_v62 = vrot.slane %v1927_v4, 1  ;;  %v1932_v3 = vrot.slane %v1926_v20, 1  ;;  %v1988_v13 = vstv %s3906_s26  ;;  %v1970_v50 = vmul.f32 %v3872_v58, %v1967_v55  ;;  %s2549_s26 = sshll.u32 %s2643_s15, 4  ;;  %s2550_s26 = int_to_ptr.vmem [resolvable:$false] %s2549_s26 }
 0x1e0   : > { %v1251_v17 = vadd.f32 %v1247_v14, %v1230_v15  ;;  %v1271_v63 = vadd.f32 %v1266_v39, %v1250_v46  ;;  %v1949_v46 = vmul.f32 %v3642_v30, %v1946_v21  ;;  %v1953_v16 = vrot.slane %v1947_v48, 1  ;;  %p2552_p11 = scmp.lt.s32.totalorder %s4025_s16, %s2550_s26 }
 0x1e1   : > { %1827 = vrot.lane.b32.xlu1 %v1824_v51, %s2641_s9  ;;  %1846 = vrot.lane.b32.xlu0 %v1843_v45, %s2641_s9  ;;  %v1935_v51 = vrot.slane %v1928_v24, 1  ;;  %v1954_v14 = vrot.slane %v1948_v19, 1  ;;  %v1969_v39 = vmul.f32 %v3864_v52, %v1967_v55  ;;  %v1934_v37 = vsel %vm294_vm4, %v1932_v3, %v1933_v62 }
 0x1e2   : > { %v1977_v26 = vrot.slane %v1970_v50, 2  ;;  %v2051_v19 = vstv %s2393_s8 }
 0x1e3   : > { %v1268_v25 = vpop.permute.xlu1 %1267  ;;  %v1287_v49 = vpop.permute.xlu0 %1286  ;;  %v1936_v9 = vsel %vm294_vm4, %v1933_v62, %v1935_v51 }
 0x1e4   : > { %v1272_v40 = vadd.f32 %v1268_v25, %v1251_v17  ;;  %v1292_v54 = vadd.f32 %v1287_v49, %v1271_v63  ;;  %v1968_v17 = vmul.f32 %v3848_v8, %v1967_v55  ;;  %v1956_v63 = vrot.slane %v1949_v46, 1 }
 0x1e5   : > { %1848 = vrot.lane.b32.xlu1 %v1845_v1, %s2641_s9  ;;  %1867 = vrot.lane.b32.xlu0 %v1864_v11, %s2641_s9  ;;  %v1975_v25 = vrot.slane %v1969_v39, 2  ;;  %v1989_v49 = vmul.f32 %v3875_v22, %v1988_v13  ;;  %v1990_v1 = vmul.f32 %v3880_v44, %v1988_v13  ;;  %v2053_v55 = vmul.f32 %v3864_v52, %v2051_v19 }
 0x1e6   : > { %v1957_v11 = vsel %vm294_vm4, %v1954_v14, %v1956_v63  ;;  %v2054_v39 = vmul.f32 %v3872_v58, %v2051_v19 }
 0x1e7   : > { %v1289_v59 = vpop.permute.xlu1 %1288  ;;  %v1308_v47 = vpop.permute.xlu0 %1307  ;;  %v2059_v63 = vrot.slane %v2053_v55, 4 }
 0x1e8   : > { %v1293_v38 = vadd.f32 %v1289_v59, %v1272_v40  ;;  %v1313_v31 = vadd.f32 %v1308_v47, %v1292_v54  ;;  %v1955_v40 = vsel %vm294_vm4, %v1953_v16, %v1954_v14  ;;  %v1974_v54 = vrot.slane %v1968_v17, 2 }
 0x1e9   : > { %1869 = vrot.lane.b32.xlu1 %v1866_v61, %s2641_s9  ;;  %1888 = vrot.lane.b32.xlu0 %v1885_v18, %s2641_s9  ;;  %v1991_v59 = vmul.f32 %v3642_v30, %v1988_v13  ;;  %v2009_v18 = vstv %s3922_s6  ;;  %v2052_v14 = vmul.f32 %v3848_v8, %v2051_v19 }
 0x1ea   : > { %v1976_v53 = vsel %vm329_vm5, %v1974_v54, %v1975_v25  ;;  %v2010_v33 = vmul.f32 %v3848_v8, %v2009_v18  ;;  %v2012_v4 = vmul.f32 %v3872_v58, %v2009_v18 }
 0x1eb   : > { %v1310_v35 = vpop.permute.xlu1 %1309  ;;  %v1329_v41 = vpop.permute.xlu0 %1328  ;;  %v1998_v36 = vrot.slane %v1991_v59, 2  ;;  %v2114_v59 = vstv %s3959_s2 }
 0x1ec   : > { %v1314_v27 = vadd.f32 %v1310_v35, %v1293_v38  ;;  %v1334_v29 = vadd.f32 %v1329_v41, %v1313_v31  ;;  %v1995_v38 = vrot.slane %v1989_v49, 2  ;;  %v1996_v31 = vrot.slane %v1990_v1, 2 }
 0x1ed   : > { %1890 = vrot.lane.b32.xlu1 %v1887_v23, %s2641_s9  ;;  %1902 = vrot.lane.b32.xlu0 %v1898_v60, %s2642_s27  ;;  %v2011_v41 = vmul.f32 %v3864_v52, %v2009_v18  ;;  %v2030_v60 = vstv %s3926_s7  ;;  %v2016_v48 = vrot.slane %v2010_v33, 3  ;;  %s3957_s9 = sld [smem:[#allocation5 + $0x29]]  ;;  %v2058_v49 = vrot.slane %v2052_v14, 4 }
 0x1ee   : > { %v1997_v23 = vsel %vm329_vm5, %v1995_v38, %v1996_v31  ;;  %v1999_v24 = vsel %vm329_vm5, %v1996_v31, %v1998_v36  ;;  %v2033_v46 = vmul.f32 %v3642_v30, %v2030_v60  ;;  %v2061_v1 = vrot.slane %v2054_v39, 4 }
 0x1ef   : > { %v1331_v42 = vpop.permute.xlu1 %1330  ;;  %v1343_v10 = vpop.permute.xlu0 %1342  ;;  %v2116_v36 = vmul.f32 %v3880_v44, %v2114_v59 }
 0x1f0   : > { %v1335_v28 = vadd.f32 %v1331_v42, %v1314_v27  ;;  %v1348_v0 = vadd.f32 %v1343_v10, %v1334_v29  ;;  %v1978_v29 = vsel %vm329_vm5, %v1975_v25, %v1977_v26  ;;  %v2017_v10 = vrot.slane %v2011_v41, 3 }
 0x1f1   : > { %1904 = vrot.lane.b32.xlu1 %v1899_v7, %s2642_s27  ;;  %1916 = vrot.lane.b32.xlu0 %v1912_v12, %s2642_s27  ;;  %v2031_v7 = vmul.f32 %v3875_v22, %v2030_v60  ;;  %v2032_v12 = vmul.f32 %v3880_v44, %v2030_v60  ;;  %v2040_v17 = vrot.slane %v2033_v46, 3  ;;  %v2115_v60 = vmul.f32 %v3875_v22, %v2114_v59 }
 0x1f2   : > { %v2018_v51 = vsel %vm364_vm6, %v2016_v48, %v2017_v10  ;;  %v2502_v48 = vld [vmem:[#allocation3 + $0x10] sm:$0x3f] }
 0x1f3   : > { %v1345_v56 = vpop.permute.xlu1 %1344  ;;  %v1357_v15 = vpop.permute.xlu0 %1356  ;;  %v2037_v3 = vrot.slane %v2031_v7, 3  ;;  %v2038_v16 = vrot.slane %v2032_v12, 3  ;;  %v2093_v26 = vstv %s3957_s9  ;;  %v2135_v7 = vstv %s2397_s25 }
 0x1f4   : > { %v1349_v45 = vadd.f32 %v1345_v56, %v1335_v28  ;;  %v1362_v34 = vadd.f32 %v1357_v15, %v1348_v0  ;;  %v2072_v28 = vstv %s2394_s18  ;;  %v2095_v38 = vmul.f32 %v3864_v52, %v2093_v26 }
 0x1f5   : > { %1918 = vrot.lane.b32.xlu1 %v1913_v6, %s2642_s27  ;;  %1937 = vrot.lane.b32.xlu0 %v1934_v37, %s2642_s27  ;;  %v2019_v6 = vrot.slane %v2012_v4, 3  ;;  %v2074_v25 = vmul.f32 %v3880_v44, %v2072_v28  ;;  %v2041_v54 = vsel %vm364_vm6, %v2038_v16, %v2040_v17  ;;  %v2094_v31 = vmul.f32 %v3848_v8, %v2093_v26 }
 0x1f6   : > { %v2096_v41 = vmul.f32 %v3872_v58, %v2093_v26  ;;  %v2121_v12 = vrot.slane %v2115_v60, 5  ;;  %v2117_v19 = vmul.f32 %v2502_v48, %v2114_v59  ;;  %v2136_v46 = vmul.f32 %v3848_v8, %v2135_v7 }
 0x1f7   : > { %v1359_v57 = vpop.permute.xlu1 %1358  ;;  %v1378_v2 = vpop.permute.xlu0 %1377  ;;  %v2020_v13 = vsel %vm364_vm6, %v2017_v10, %v2019_v6  ;;  %v2100_v4 = vrot.slane %v2094_v31, 5  ;;  %v2137_v6 = vmul.f32 %v3864_v52, %v2135_v7  ;;  %v2138_v14 = vmul.f32 %v3872_v58, %v2135_v7 }
 0x1f8   : > { %v1363_v32 = vadd.f32 %v1359_v57, %v1349_v45  ;;  %v1383_v43 = vadd.f32 %v1378_v2, %v1362_v34  ;;  %v2073_v45 = vmul.f32 %v3875_v22, %v2072_v28  ;;  %v2039_v2 = vsel %vm364_vm6, %v2037_v3, %v2038_v16 }
 0x1f9   : > { %1939 = vrot.lane.b32.xlu1 %v1936_v9, %s2642_s27  ;;  %1958 = vrot.lane.b32.xlu0 %v1955_v40, %s2642_s27  ;;  %v2103_v10 = vrot.slane %v2096_v41, 5  ;;  %v2156_v3 = vstv %s3980_s24  ;;  %v2124_v16 = vrot.slane %v2117_v19, 5  ;;  %v2142_v8 = vrot.slane %v2136_v46, 6 }
 0x1fa   : > { %v2157_v52 = vmul.f32 %v3875_v22, %v2156_v3 }
 0x1fb   : > { %v1380_v47 = vpop.permute.xlu1 %1379  ;;  %v1399_v61 = vpop.permute.xlu0 %1398 }
 0x1fc   : > { %v1384_v5 = vadd.f32 %v1380_v47, %v1363_v32  ;;  %v1404_v35 = vadd.f32 %v1399_v61, %v1383_v43  ;;  %v2079_v32 = vrot.slane %v2073_v45, 4  ;;  %v2075_v43 = vmul.f32 %v3642_v30, %v2072_v28 }
 0x1fd   : > { %1960 = vrot.lane.b32.xlu1 %v1957_v11, %s2642_s27  ;;  %1979 = vrot.lane.b32.xlu0 %v1976_v53, %s2642_s27  ;;  %v2060_v11 = vsel %vm399_vm7, %v2058_v49, %v2059_v63  ;;  %v2080_v53 = vrot.slane %v2074_v25, 4  ;;  %v2143_v45 = vrot.slane %v2137_v6, 6 }
 0x1fe   : > { %v2082_v30 = vrot.slane %v2075_v43, 4 }
 0x1ff   : > { %v1401_v21 = vpop.permute.xlu1 %1400  ;;  %v1420_v27 = vpop.permute.xlu0 %1419 }
 0x200   : > { %v1405_v20 = vadd.f32 %v1401_v21, %v1384_v5  ;;  %v1425_v42 = vadd.f32 %v1420_v27, %v1404_v35  ;;  %v2062_v35 = vsel %vm399_vm7, %v2059_v63, %v2061_v1  ;;  %v2081_v27 = vsel %vm399_vm7, %v2079_v32, %v2080_v53 }
 0x201   : > { %1981 = vrot.lane.b32.xlu1 %v1978_v29, %s2642_s27  ;;  %2000 = vrot.lane.b32.xlu0 %v1997_v23, %s2642_s27  ;;  %v2101_v29 = vrot.slane %v2095_v38, 5  ;;  %v2083_v23 = vsel %vm399_vm7, %v2080_v53, %v2082_v30  ;;  %v2145_v63 = vrot.slane %v2138_v14, 6 }
 0x203   : > { %v1422_v0 = vpop.permute.xlu1 %1421  ;;  %v1441_v62 = vpop.permute.xlu0 %1440  ;;  %v2146_v25 = vsel %vm469_vm9, %v2143_v45, %v2145_v63 }
 0x204   : > { %v1426_v56 = vadd.f32 %v1422_v0, %v1405_v20  ;;  %v1446_v15 = vadd.f32 %v1441_v62, %v1425_v42  ;;  %v2102_v62 = vsel %vm434_vm8, %v2100_v4, %v2101_v29 }
 0x205   : > { %2002 = vrot.lane.b32.xlu1 %v1999_v24, %s2642_s27  ;;  %2021 = vrot.lane.b32.xlu0 %v2018_v51, %s2642_s27  ;;  %v2122_v24 = vrot.slane %v2116_v36, 5 }
 0x207   : > { %v1443_v34 = vpop.permute.xlu1 %1442  ;;  %v1462_v37 = vpop.permute.xlu0 %1461  ;;  %v2123_v51 = vsel %vm434_vm8, %v2121_v12, %v2122_v24  ;;  %v2125_v17 = vsel %vm434_vm8, %v2122_v24, %v2124_v16 }
 0x208   : > { %v1447_v50 = vadd.f32 %v1443_v34, %v1426_v56  ;;  %v1467_v57 = vadd.f32 %v1462_v37, %v1446_v15  ;;  %v2104_v15 = vsel %vm434_vm8, %v2101_v29, %v2103_v10  ;;  %v2158_v34 = vmul.f32 %v3880_v44, %v2156_v3 }
 0x209   : > { %2023 = vrot.lane.b32.xlu1 %v2020_v13, %s2642_s27  ;;  %2042 = vrot.lane.b32.xlu0 %v2039_v2, %s2642_s27  ;;  %v2159_v2 = vmul.f32 %v2502_v48, %v2156_v3 }
 0x20a   : > { %v2164_v58 = vrot.slane %v2158_v34, 6 }
 0x20b   : > { %v1464_v9 = vpop.permute.xlu1 %1463  ;;  %v1483_v40 = vpop.permute.xlu0 %1482  ;;  %v2166_v1 = vrot.slane %v2159_v2, 6 }
 0x20c   : > { %v1468_v47 = vadd.f32 %v1464_v9, %v1447_v50  ;;  %v1488_v61 = vadd.f32 %v1483_v40, %v1467_v57  ;;  %v2144_v50 = vsel %vm469_vm9, %v2142_v8, %v2143_v45  ;;  %v2163_v57 = vrot.slane %v2157_v52, 6 }
 0x20d   : > { %2044 = vrot.lane.b32.xlu1 %v2041_v54, %s2642_s27  ;;  %2063 = vrot.lane.b32.xlu0 %v2060_v11, %s2642_s27  ;;  %v2167_v9 = vsel %vm469_vm9, %v2164_v58, %v2166_v1 }
 0x20e   : > { %v2165_v49 = vsel %vm469_vm9, %v2163_v57, %v2164_v58 }
 0x20f   : > { %v1485_v18 = vpop.permute.xlu1 %1484  ;;  %v1504_v5 = vpop.permute.xlu0 %1503 }
 0x210   : > { %v1489_v33 = vadd.f32 %v1485_v18, %v1468_v47  ;;  %v1509_v21 = vadd.f32 %v1504_v5, %v1488_v61 }
 0x211   : > { %2065 = vrot.lane.b32.xlu1 %v2062_v35, %s2642_s27  ;;  %2084 = vrot.lane.b32.xlu0 %v2081_v27, %s2642_s27 }
 0x213   : > { %v1506_v20 = vpop.permute.xlu1 %1505  ;;  %v1525_v42 = vpop.permute.xlu0 %1524 }
 0x214   : > { %v1510_v28 = vadd.f32 %v1506_v20, %v1489_v33  ;;  %v3991_v0 = vadd.f32 %v1525_v42, %v1509_v21 }
 0x215   : > { %2086 = vrot.lane.b32.xlu1 %v2083_v23, %s2642_s27  ;;  %2105 = vrot.lane.b32.xlu0 %v2102_v62, %s2642_s27 }
 0x217   : > { %v1527_v55 = vpop.permute.xlu1 %1526  ;;  %v1546_v56 = vpop.permute.xlu0 %1545 }
 0x218   : > { %v1531_v39 = vadd.f32 %v1527_v55, %v1510_v28  ;;  %v1551_v20 = vadd.f32 %v1546_v56, %v3991_v0 }
 0x219   : > { %2107 = vrot.lane.b32.xlu1 %v2104_v15, %s2642_s27  ;;  %2126 = vrot.lane.b32.xlu0 %v2123_v51, %s2642_s27 }
 0x21b   : > { %v1548_v37 = vpop.permute.xlu1 %1547  ;;  %v1567_v13 = vpop.permute.xlu0 %1566 }
 0x21c   : > { %v1572_v12 = vadd.f32 %v1567_v13, %v1551_v20  ;;  %v1552_v24 = vadd.f32 %v1548_v37, %v1531_v39 }
 0x21d   : > { %2128 = vrot.lane.b32.xlu1 %v2125_v17, %s2642_s27  ;;  %2147 = vrot.lane.b32.xlu0 %v2144_v50, %s2642_s27 }
 0x21f   : > { %v1569_v22 = vpop.permute.xlu1 %1568  ;;  %v1588_v44 = vpop.permute.xlu0 %1587 }
 0x220   : > { %v1593_v48 = vadd.f32 %v1588_v44, %v1572_v12  ;;  %v1573_v62 = vadd.f32 %v1569_v22, %v1552_v24 }
 0x221   : > { %2149 = vrot.lane.b32.xlu1 %v2146_v25, %s2642_s27  ;;  %2168 = vrot.lane.b32.xlu0 %v2165_v49, %s2642_s27 }
 0x223   : > { %v1590_v32 = vpop.permute.xlu1 %1589  ;;  %v1609_v43 = vpop.permute.xlu0 %1608 }
 0x224   : > { %v1614_v6 = vadd.f32 %v1609_v43, %v1593_v48  ;;  %v1594_v3 = vadd.f32 %v1590_v32, %v1573_v62 }
 0x225   : > { %2170 = vrot.lane.b32.xlu1 %v2167_v9, %s2642_s27  ;;  %s2551_s27 = scalar_lea.vmem %s2550_s26, 512 }
 0x226   : > { %p2553_p4 = scmp.lt.s32.totalorder %s2551_s27, %s2545_s20 }
 0x227   : > { %v1611_v40 = vpop.permute.xlu1 %1610  ;;  %v1623_v54 = vpop.permute.xlu0 %1622 }
 0x228   : > { %v1628_v46 = vadd.f32 %v1623_v54, %v1614_v6  ;;  %v1615_v51 = vadd.f32 %v1611_v40, %v1594_v3  ;;  %p2554_p7 = por %p2553_p4, %p2552_p11 }
 0x22a   : > { %p2555_p10 = pnand %p2554_p7, %p2548_p5 }
 0x22b   : > { %v1625_v11 = vpop.permute.xlu1 %1624  ;;  %v1637_v26 = vpop.permute.xlu0 %1636 }
 0x22c   : > { %v1642_v16 = vadd.f32 %v1637_v26, %v1628_v46  ;;  %v1629_v14 = vadd.f32 %v1625_v11, %v1615_v51 }
 0x22f   : > { %v1639_v59 = vpop.permute.xlu1 %1638  ;;  %v1658_v47 = vpop.permute.xlu0 %1657 }
 0x230   : > { %v1663_v45 = vadd.f32 %v1658_v47, %v1642_v16  ;;  %v1643_v0 = vadd.f32 %v1639_v59, %v1629_v14 }
 0x233   : > { %v1660_v61 = vpop.permute.xlu1 %1659  ;;  %v1679_v53 = vpop.permute.xlu0 %1678 }
 0x234   : > { %v1684_v56 = vadd.f32 %v1679_v53, %v1663_v45  ;;  %v1664_v8 = vadd.f32 %v1660_v61, %v1643_v0 }
 0x237   : > { %v1681_v38 = vpop.permute.xlu1 %1680  ;;  %v1700_v30 = vpop.permute.xlu0 %1699 }
 0x238   : > { %v1705_v13 = vadd.f32 %v1700_v30, %v1684_v56  ;;  %v1685_v17 = vadd.f32 %v1681_v38, %v1664_v8 }
 0x23b   : > { %v1702_v31 = vpop.permute.xlu1 %1701  ;;  %v1721_v18 = vpop.permute.xlu0 %1720 }
 0x23c   : > { %v1726_v63 = vadd.f32 %v1721_v18, %v1705_v13  ;;  %v1706_v50 = vadd.f32 %v1702_v31, %v1685_v17 }
 0x23f   : > { %v1723_v5 = vpop.permute.xlu1 %1722  ;;  %v1742_v35 = vpop.permute.xlu0 %1741 }
 0x240   : > { %v1747_v57 = vadd.f32 %v1742_v35, %v1726_v63  ;;  %v1727_v22 = vadd.f32 %v1723_v5, %v1706_v50  ;;  %v2177_v63 = vstv %s2176_s28 }
 0x243   : > { %v1744_v41 = vpop.permute.xlu1 %1743  ;;  %v1763_v60 = vpop.permute.xlu0 %1762 }
 0x244   : > { %v1768_v44 = vadd.f32 %v1763_v60, %v1747_v57  ;;  %v1748_v25 = vadd.f32 %v1744_v41, %v1727_v22 }
 0x247   : > { %v1765_v36 = vpop.permute.xlu1 %1764  ;;  %v1784_v33 = vpop.permute.xlu0 %1783 }
 0x248   : > { %v1789_v49 = vadd.f32 %v1784_v33, %v1768_v44  ;;  %v1769_v43 = vadd.f32 %v1765_v36, %v1748_v25 }
 0x24b   : > { %v1786_v21 = vpop.permute.xlu1 %1785  ;;  %v1805_v27 = vpop.permute.xlu0 %1804 }
 0x24c   : > { %v1810_v9 = vadd.f32 %v1805_v27, %v1789_v49  ;;  %v1790_v40 = vadd.f32 %v1786_v21, %v1769_v43 }
 0x24f   : > { %v1807_v29 = vpop.permute.xlu1 %1806  ;;  %v1826_v23 = vpop.permute.xlu0 %1825 }
 0x250   : > { %v1831_v54 = vadd.f32 %v1826_v23, %v1810_v9  ;;  %v1811_v59 = vadd.f32 %v1807_v29, %v1790_v40 }
 0x253   : > { %v1828_v4 = vpop.permute.xlu1 %1827  ;;  %v1847_v7 = vpop.permute.xlu0 %1846 }
 0x254   : > { %v1852_v47 = vadd.f32 %v1847_v7, %v1831_v54  ;;  %v1832_v61 = vadd.f32 %v1828_v4, %v1811_v59 }
 0x257   : > { %v1849_v42 = vpop.permute.xlu1 %1848  ;;  %v1868_v10 = vpop.permute.xlu0 %1867 }
 0x258   : > { %v1873_v53 = vadd.f32 %v1868_v10, %v1852_v47  ;;  %v1853_v31 = vadd.f32 %v1849_v42, %v1832_v61 }
 0x25b   : > { %v1870_v19 = vpop.permute.xlu1 %1869  ;;  %v1889_v28 = vpop.permute.xlu0 %1888 }
 0x25c   : > { %v1894_v18 = vadd.f32 %v1889_v28, %v1873_v53  ;;  %v1874_v5 = vadd.f32 %v1870_v19, %v1853_v31 }
 0x25f   : > { %v1891_v55 = vpop.permute.xlu1 %1890  ;;  %v1903_v15 = vpop.permute.xlu0 %1902 }
 0x260   : > { %v1908_v35 = vadd.f32 %v1903_v15, %v1894_v18  ;;  %v1895_v33 = vadd.f32 %v1891_v55, %v1874_v5 }
 0x263   : > { %v1905_v52 = vpop.permute.xlu1 %1904  ;;  %v1917_v34 = vpop.permute.xlu0 %1916 }
 0x264   : > { %v1922_v20 = vadd.f32 %v1917_v34, %v1908_v35  ;;  %v1909_v36 = vadd.f32 %v1905_v52, %v1895_v33 }
 0x267   : > { %v1919_v39 = vpop.permute.xlu1 %1918  ;;  %v1938_v37 = vpop.permute.xlu0 %1937 }
 0x268   : > { %v1943_v27 = vadd.f32 %v1938_v37, %v1922_v20  ;;  %v1923_v12 = vadd.f32 %v1919_v39, %v1909_v36 }
 0x26b   : > { %v1940_v58 = vpop.permute.xlu1 %1939  ;;  %v1959_v2 = vpop.permute.xlu0 %1958 }
 0x26c   : > { %v1964_v24 = vadd.f32 %v1959_v2, %v1943_v27  ;;  %v1944_v29 = vadd.f32 %v1940_v58, %v1923_v12 }
 0x26f   : > { %v1961_v1 = vpop.permute.xlu1 %1960  ;;  %v1980_v32 = vpop.permute.xlu0 %1979 }
 0x270   : > { %v1985_v7 = vadd.f32 %v1980_v32, %v1964_v24  ;;  %v1965_v48 = vadd.f32 %v1961_v1, %v1944_v29 }
 0x273   : > { %v1982_v11 = vpop.permute.xlu1 %1981  ;;  %v2001_v26 = vpop.permute.xlu0 %2000 }
 0x274   : > { %v2006_v62 = vadd.f32 %v2001_v26, %v1985_v7  ;;  %v1986_v42 = vadd.f32 %v1982_v11, %v1965_v48 }
 0x277   : > { %v2003_v38 = vpop.permute.xlu1 %2002  ;;  %v2022_v30 = vpop.permute.xlu0 %2021 }
 0x278   : > { %v2027_v28 = vadd.f32 %v2022_v30, %v2006_v62  ;;  %v2007_v3 = vadd.f32 %v2003_v38, %v1986_v42 }
 0x27b   : > { %v2024_v41 = vpop.permute.xlu1 %2023  ;;  %v2043_v60 = vpop.permute.xlu0 %2042 }
 0x27c   : > { %v2048_v46 = vadd.f32 %v2043_v60, %v2027_v28  ;;  %v2028_v55 = vadd.f32 %v2024_v41, %v2007_v3 }
 0x27f   : > { %v2045_v21 = vpop.permute.xlu1 %2044  ;;  %v2064_v23 = vpop.permute.xlu0 %2063 }
 0x280   : > { %v2069_v15 = vadd.f32 %v2064_v23, %v2048_v46  ;;  %v2049_v14 = vadd.f32 %v2045_v21, %v2028_v55 }
 0x283   : > { %v2066_v4 = vpop.permute.xlu1 %2065  ;;  %v2085_v10 = vpop.permute.xlu0 %2084 }
 0x284   : > { %v2090_v45 = vadd.f32 %v2085_v10, %v2069_v15  ;;  %v2070_v52 = vadd.f32 %v2066_v4, %v2049_v14 }
 0x287   : > { %v2087_v19 = vpop.permute.xlu1 %2086  ;;  %v2106_v6 = vpop.permute.xlu0 %2105 }
 0x288   : > { %v2111_v34 = vadd.f32 %v2106_v6, %v2090_v45  ;;  %v2091_v8 = vadd.f32 %v2087_v19, %v2070_v52 }
 0x28b   : > { %v2108_v51 = vpop.permute.xlu1 %2107  ;;  %v2127_v16 = vpop.permute.xlu0 %2126 }
 0x28c   : > { %v2132_v13 = vadd.f32 %v2127_v16, %v2111_v34  ;;  %v2112_v39 = vadd.f32 %v2108_v51, %v2091_v8 }
 0x28f   : > { %v2129_v0 = vpop.permute.xlu1 %2128  ;;  %v2148_v56 = vpop.permute.xlu0 %2147 }
 0x290   : > { %v2153_v37 = vadd.f32 %v2148_v56, %v2132_v13  ;;  %v2133_v57 = vadd.f32 %v2129_v0, %v2112_v39 }
 0x293   : > { %v2150_v17 = vpop.permute.xlu1 %2149  ;;  %v2169_v50 = vpop.permute.xlu0 %2168 }
 0x294   : > { %v2174_v58 = vadd.f32 %v2169_v50, %v2153_v37  ;;  %v2154_v2 = vadd.f32 %v2150_v17, %v2133_v57 }
 0x296   : > { %v2178_v22 = vadd.f32 %v2177_v63, %v2174_v58 }
 0x297   : > { %v2171_v44 = vpop.permute.xlu1 %2170 }
 0x298   : > { %v2399_v25 = vmul.f32 -1.442695, %v2178_v22  ;;  %v2175_v49 = vadd.f32 %v2171_v44, %v2154_v2 }
 0x29a   : > { %2483 = vpow2.f32 %v2399_v25  ;;  %v2179_v1 = vadd.f32 %v2177_v63, %v2175_v49 }
 0x29c   : > { %v2400_v32 = vmul.f32 -1.442695, %v2179_v1 }
 0x29e   : > { %2485 = vpow2.f32 %v2400_v32 }
 0x2a4   : > { %v2484_v43 = vpop.eup %2483 }
 0x2a5   : > { %v2186_v9 = vadd.f32 1.0, %v2484_v43 }
 0x2a7   : > { %2487 = vrcp.f32 %v2186_v9 }
 0x2a8   : > { %v2486_v40 = vpop.eup %2485 }
 0x2a9   : > { %v2187_v54 = vadd.f32 1.0, %v2486_v40 }
 0x2ab   : > { %2489 = vrcp.f32 %v2187_v54 }
 0x2b1   : > { %v2488_v11 = vpop.eup %2487 }
 0x2b2   : > { %2192 = vst.msk [vmem:[%s160_s12] sm:$0xff] %vm170_vm2, %v2488_v11 }
 0x2b5   : > { %v2490_v26 = vpop.eup %2489 }
 0x2b6   : > { %2193 = vst.msk [vmem:[%s160_s12 + $0x8] sm:$0xff] %vm170_vm2, %v2490_v26 }
 0x2b7   : > { %2558 = shalt.err (!%p2555_p10)
}
 0x2b8   : > { %s2559_s6 = scalar_lea.hbm %s4023_s13, 256  ;;  %s2563_s18 = scalar_lea.hbm %s4078_s3, 512 }
 0x2b9   : > { %p2560_p9 = scmp.ne.s32.totalorder %s4023_s13, %s2559_s6  ;;  %p2564_p3 = scmp.lt.u32.totalorder %s4023_s13, %s4078_s3 }
 0x2ba   : > { %p2565_p6 = scmp.lt.u32.totalorder %s2563_s18, %s2559_s6  ;;  %p2567_p13 = scmp.lt.u32.totalorder %s2559_s6, %s4023_s13 }
 0x2bb   : > { %p2561_p12 = pnand %p2560_p9, %p4117_p0 }
 0x2bc   : > { %p2566_p8 = por %p2565_p6, %p2564_p3 }
 0x2bd   : > { %p2562_p1 = pneg %p2561_p12 }
 0x2be   : > { %p2568_p2 = por %p2567_p13, %p2566_p8 }
 0x2c0   : > { %p2569_p5 = pnand %p2568_p2, %p2562_p1 }
 0x2c2   : > { %2572 = shalt.err (!%p2569_p5)
}
 0x2c3   : > { %s2644_s25 = smov 128   ;;  %s2645_s24 = smov 8  }
 0x2c4   : > { %2410 = dma.vmem_to_hbm [thread:$0]  (%p4117_p0), %s4025_s16, 256, %s4023_s13, %s2195_s14, %s2644_s25, %s2644_s25, %s2645_s24  }
 0x2c5 PF: > { %s2223_s28 = sand.u32 1, %s2609_s0   ;;  %p4118_p11 = scmp.ne.s32.totalorder %s4092_s5, 0 }
 0x2c6   : > { %p4119_p4 = scmp.ge.s32.totalorder %s2629_s22, 2  ;;  %s2224_s11 = scalar_lea.sflag [#allocation9], %s2223_s28 }
 0x2c8   : > { %p2417_p7 = pnand %p4119_p4, %p4118_p11 }
 0x2ca   : > { %2604 = dma.done.wait (!%p2417_p7), %s2224_s11, 256  }
 0x2cb   : > { %2606 = vsyncadd (!%p2417_p7), %s2224_s11, 4294967040  ;;  %s26_s22 = sadd.s32 1, %s2629_s22   ;;  %s4120_s30 = sld [smem:[#allocation14_spill]] }
 0x2cc   : > { %p23_p10 = scmp.ge.s32.totalorder %s26_s22, 4   ;;  %s4121_s0 = smov %s2613_s1 }
 0x2cd   : > { %s4122_s1 = smov %s2617_s19  ;;  %s4123_s19 = smov %s2728_s4 }
 0x2ce   : > { %s4124_s20 = smov %s2625_s21  ;;  %25 = sbr.rel (!%p23_p10) target bundleno = 22 (0x16), region = 81 }
 0x2d1   : > { %s4125_s21 = smov %s4120_s30 }
 0x2d5   :  { %2229 = vsyncpa [#allocation8], 1 }
 0x2d6   :  { %2231 = vsyncpa [#allocation8 + $0x1], 1 }
 0x2d7   :  { %2232 = vsyncpa [#allocation9], 1 }
 0x2d8   :  { %2234 = vsyncpa [#allocation9 + $0x1], 1 }

</bundles_post_ra>
